<compile_context>
chip_gen: v7x
topology: tpu7x:2x2x1
jax: 0.10.0
libtpu: 0.0.40
codegen_flags: <defaults>
</compile_context>

<pallas_src>
import functools

import jax
import jax.numpy as jnp
from jax import lax
from jax.experimental import pallas as pl
from jax.experimental.pallas import tpu as pltpu

KH = KW = 5          # Conv2d kernel_size=5, stride=1, bias=False
BN_EPS = 1e-5        # BatchNorm2d default eps


def _compiler_params():
    return pltpu.CompilerParams(
        dimension_semantics=("parallel",),       # batch-block axis
        vmem_limit_bytes=32 * 1024 * 1024,
    )


def _pick_block(n, target=8):
    """Images per grid step: <=target, divides n, and keeps >=2 grid steps
    when the batch allows it (v7x has two TensorCores)."""
    bn = min(target, n)
    while n % bn:
        bn -= 1
    if bn > 1 and n // bn < 2:
        bn = bn // 2
        while bn > 1 and n % bn:
            bn -= 1
        bn = max(bn, 1)
    return bn


# ------------------------------------------------------------- in-kernel ---

def _im2col(x, oh, ow):
    """x: (BN, H, W, C) -> (BN*OH*OW, KH*KW*C) patch matrix (same dtype).

    The 25 taps are contiguous static slices concatenated along the channel
    axis; the im2col slab lives only in VMEM.
    """
    bn, _, _, c = x.shape
    taps = [x[:, ki:ki + oh, kj:kj + ow, :]
            for ki in range(KH) for kj in range(KW)]
    patches = jnp.concatenate(taps, axis=-1)          # (BN, OH, OW, KH*KW*C)
    return patches.reshape(bn * oh * ow, KH * KW * c)


def _maxpool_2x2(y):
    """y: (BN, H, W, C) -> (BN, H//2, W//2, C), 2x2 / stride-2 max pool.

    Whole-slab reshape+max (exact, VPU) instead of per-row loops / dots.
    """
    bn, h, w, c = y.shape
    ph, pw = h // 2, w // 2
    if h != 2 * ph or w != 2 * pw:                    # PyTorch floor behavior
        y = y[:, :2 * ph, :2 * pw, :]
    t = y.reshape(bn * 2 * ph, pw, 2, c)
    t = jnp.maximum(t[:, :, 0, :], t[:, :, 1, :])     # max over width pairs
    t = t.reshape(bn * ph, 2, pw, c)
    t = jnp.maximum(t[:, 0, :, :], t[:, 1, :, :])     # max over height pairs
    return t.reshape(bn, ph, pw, c)


def _bn_scale_shift(sum_ref, ssq_ref, g_ref, b_ref, cnt):
    """Global batch-norm stats -> per-channel scale/shift (tiny, per step)."""
    mean = jnp.sum(sum_ref[...], axis=0) / cnt                    # (1, C)
    var = jnp.maximum(jnp.sum(ssq_ref[...], axis=0) / cnt - mean * mean, 0.0)
    scale = g_ref[...] * lax.rsqrt(var + BN_EPS)
    shift = b_ref[...] - mean * scale
    return scale, shift


# ---------------------------------------------------------------- kernels ---

def _conv_stats_kernel(x_ref, w_ref, conv_ref, sum_ref, ssq_ref, *, oh, ow):
    """Call A: conv1 (one im2col matmul) + one-pass BN1 statistics."""
    bn = x_ref.shape[0]
    cout = w_ref.shape[1]
    patches = _im2col(x_ref[...], oh, ow)                         # bf16
    conv = jnp.dot(patches, w_ref[...],
                   preferred_element_type=jnp.float32)            # (BN*OH*OW, Cout)
    conv_ref[...] = conv.reshape(bn, oh, ow, cout)
    sum_ref[...] = jnp.sum(conv, axis=0, keepdims=True).reshape(1, 1, cout)
    ssq_ref[...] = jnp.sum(conv * conv, axis=0, keepdims=True).reshape(1, 1, cout)


def _bn_pool_conv_stats_kernel(a_ref, sum_in_ref, ssq_in_ref, g_ref, b_ref,
                               w_ref, conv_ref, sum_ref, ssq_ref, *,
                               cnt, oh, ow):
    """Call B: BN1+ReLU+pool1 + conv2 (one im2col matmul) + BN2 statistics."""
    bn = a_ref.shape[0]
    cout = w_ref.shape[1]
    scale, shift = _bn_scale_shift(sum_in_ref, ssq_in_ref, g_ref, b_ref, cnt)
    y = jnp.maximum(a_ref[...] * scale + shift, 0.0)              # BN + ReLU, f32
    p = _maxpool_2x2(y).astype(jnp.bfloat16)                      # (BN, PH, PW, C1)
    patches = _im2col(p, oh, ow)
    conv = jnp.dot(patches, w_ref[...],
                   preferred_element_type=jnp.float32)            # (BN*OH2*OW2, C2)
    conv_ref[...] = conv.reshape(bn, oh, ow, cout)
    sum_ref[...] = jnp.sum(conv, axis=0, keepdims=True).reshape(1, 1, cout)
    ssq_ref[...] = jnp.sum(conv * conv, axis=0, keepdims=True).reshape(1, 1, cout)


def _bn_pool_linear_kernel(a_ref, sum_in_ref, ssq_in_ref, g_ref, b_ref,
                           wl_ref, bias_ref, o_ref, *, cnt):
    """Call C: BN2+ReLU+pool2 + flatten + Linear (matmul + bias)."""
    bn = a_ref.shape[0]
    dout = wl_ref.shape[1]
    scale, shift = _bn_scale_shift(sum_in_ref, ssq_in_ref, g_ref, b_ref, cnt)
    y = jnp.maximum(a_ref[...] * scale + shift, 0.0)
    p = _maxpool_2x2(y)                                           # (BN, PH, PW, C2)
    flat = p.reshape(bn, -1).astype(jnp.bfloat16)                 # NHWC flatten
    out = jnp.dot(flat, wl_ref[...],
                  preferred_element_type=jnp.float32) + bias_ref[...]
    o_ref[...] = out.reshape(bn, 1, dout)


# ------------------------------------------------------------------ model ---

def forward(params, x_nchw):
    x = jnp.transpose(x_nchw, (0, 2, 3, 1)).astype(jnp.bfloat16)  # NCHW->NHWC, once
    n, h, w, cin = x.shape
    bn = _pick_block(n)
    nblk = n // bn
    cp = _compiler_params()

    # ---- call A: conv1 + BN1 statistics -------------------------------------
    c1 = params["w1"].shape[0]
    oh1, ow1 = h - KH + 1, w - KW + 1
    w1 = (jnp.transpose(params["w1"], (2, 3, 1, 0))               # (KH,KW,Cin,C1)
          .reshape(KH * KW * cin, c1).astype(jnp.bfloat16))
    conv1, sum1, ssq1 = pl.pallas_call(
        functools.partial(_conv_stats_kernel, oh=oh1, ow=ow1),
        out_shape=(jax.ShapeDtypeStruct((n, oh1, ow1, c1), jnp.float32),
                   jax.ShapeDtypeStruct((nblk, 1, c1), jnp.float32),
                   jax.ShapeDtypeStruct((nblk, 1, c1), jnp.float32)),
        grid=(nblk,),
        in_specs=[pl.BlockSpec((bn, h, w, cin), lambda i: (i, 0, 0, 0)),
                  pl.BlockSpec((KH * KW * cin, c1), lambda i: (0, 0))],
        out_specs=(pl.BlockSpec((bn, oh1, ow1, c1), lambda i: (i, 0, 0, 0)),
                   pl.BlockSpec((1, 1, c1), lambda i: (i, 0, 0)),
                   pl.BlockSpec((1, 1, c1), lambda i: (i, 0, 0))),
        compiler_params=cp,
    )(x, w1)

    # ---- call B: BN1+ReLU+pool1 + conv2 + BN2 statistics --------------------
    c2 = params["w2"].shape[0]
    ph1, pw1 = oh1 // 2, ow1 // 2
    oh2, ow2 = ph1 - KH + 1, pw1 - KW + 1
    w2 = (jnp.transpose(params["w2"], (2, 3, 1, 0))
          .reshape(KH * KW * c1, c2).astype(jnp.bfloat16))
    g1 = params["g1"].reshape(1, c1)
    b1 = params["b1"].reshape(1, c1)
    conv2, sum2, ssq2 = pl.pallas_call(
        functools.partial(_bn_pool_conv_stats_kernel,
                          cnt=float(n * oh1 * ow1), oh=oh2, ow=ow2),
        out_shape=(jax.ShapeDtypeStruct((n, oh2, ow2, c2), jnp.float32),
                   jax.ShapeDtypeStruct((nblk, 1, c2), jnp.float32),
                   jax.ShapeDtypeStruct((nblk, 1, c2), jnp.float32)),
        grid=(nblk,),
        in_specs=[pl.BlockSpec((bn, oh1, ow1, c1), lambda i: (i, 0, 0, 0)),
                  pl.BlockSpec((nblk, 1, c1), lambda i: (0, 0, 0)),
                  pl.BlockSpec((nblk, 1, c1), lambda i: (0, 0, 0)),
                  pl.BlockSpec((1, c1), lambda i: (0, 0)),
                  pl.BlockSpec((1, c1), lambda i: (0, 0)),
                  pl.BlockSpec((KH * KW * c1, c2), lambda i: (0, 0))],
        out_specs=(pl.BlockSpec((bn, oh2, ow2, c2), lambda i: (i, 0, 0, 0)),
                   pl.BlockSpec((1, 1, c2), lambda i: (i, 0, 0)),
                   pl.BlockSpec((1, 1, c2), lambda i: (i, 0, 0))),
        compiler_params=cp,
    )(conv1, sum1, ssq1, g1, b1, w2)

    # ---- call C: BN2+ReLU+pool2 + flatten + Linear ---------------------------
    ph2, pw2 = oh2 // 2, ow2 // 2
    hdim = c2 * ph2 * pw2
    wl, bl = params["wl"], params["bl"]
    dout = wl.shape[0]
    assert wl.shape[1] == hdim, (wl.shape, hdim)
    # Fold PyTorch's NCHW (c,h,w) flatten order into the Linear weight so the
    # NHWC activation flattens directly (no transpose in the kernel).
    wl_perm = (wl.reshape(dout, c2, ph2, pw2).transpose(0, 2, 3, 1)
               .reshape(dout, hdim).T.astype(jnp.bfloat16))       # (hdim, dout)
    g2 = params["g2"].reshape(1, c2)
    b2 = params["b2"].reshape(1, c2)
    out = pl.pallas_call(
        functools.partial(_bn_pool_linear_kernel, cnt=float(n * oh2 * ow2)),
        out_shape=jax.ShapeDtypeStruct((n, 1, dout), jnp.float32),
        grid=(nblk,),
        in_specs=[pl.BlockSpec((bn, oh2, ow2, c2), lambda i: (i, 0, 0, 0)),
                  pl.BlockSpec((nblk, 1, c2), lambda i: (0, 0, 0)),
                  pl.BlockSpec((nblk, 1, c2), lambda i: (0, 0, 0)),
                  pl.BlockSpec((1, c2), lambda i: (0, 0)),
                  pl.BlockSpec((1, c2), lambda i: (0, 0)),
                  pl.BlockSpec((hdim, dout), lambda i: (0, 0)),
                  pl.BlockSpec((1, dout), lambda i: (0, 0))],
        out_specs=pl.BlockSpec((bn, 1, dout), lambda i: (i, 0, 0)),
        compiler_params=cp,
    )(conv2, sum2, ssq2, g2, b2, wl_perm, bl.reshape(1, dout))
    return out.reshape(n, dout)


# ----------------------------------------------------------------- params ---

def _xavier_uniform(key, shape, fan_in, fan_out):
    bound = (6.0 / (fan_in + fan_out)) ** 0.5
    return jax.random.uniform(key, shape, jnp.float32, -bound, bound)


def init_params(key, i_c, hdim, dim_out_h):
    k1, k2, k3, k4 = jax.random.split(key, 4)
    return {
        # conv weights in PyTorch (Cout, Cin, KH, KW) layout, xavier_uniform.
        "w1": _xavier_uniform(k1, (32, i_c, 5, 5), i_c * 25, 32 * 25),
        "w2": _xavier_uniform(k2, (64, 32, 5, 5), 32 * 25, 64 * 25),
        # BatchNorm affine params at PyTorch defaults.
        "g1": jnp.ones((32,), jnp.float32), "b1": jnp.zeros((32,), jnp.float32),
        "g2": jnp.ones((64,), jnp.float32), "b2": jnp.zeros((64,), jnp.float32),
        # Linear (dim_out_h, hdim) + bias, PyTorch-default uniform.
        "wl": jax.random.uniform(k3, (dim_out_h, hdim), jnp.float32,
                                 -1.0 / hdim ** 0.5, 1.0 / hdim ** 0.5),
        "bl": jax.random.uniform(k4, (dim_out_h,), jnp.float32,
                                 -1.0 / hdim ** 0.5, 1.0 / hdim ** 0.5),
    }


if __name__ == "__main__":
    # isize=(3,16,16), conv_stride=1: 16 -(conv5)-> 12 -(pool)-> 6 -(conv5)-> 2
    # -(pool)-> 1  => hdim = 64 * 1 * 1 = 64
    batch, isize, dim_out_h = 2, (3, 16, 16), 10
    hdim = 64 * 1 * 1

    key = jax.random.PRNGKey(0)
    kx, kp = jax.random.split(key)
    x = jax.random.normal(kx, (batch,) + isize, dtype=jnp.float32)
    params = init_params(kp, isize[0], hdim, dim_out_h)

    out = jax.jit(forward)(params, x)
    jax.block_until_ready(out)
    assert out.shape == (batch, dim_out_h), out.shape
    assert bool(jnp.all(jnp.isfinite(out)))
    print("KERNEL_OK")
</pallas_src>

<mosaic_0001>
module attributes {stable_mosaic.version = 11 : i64} {
  func.func @_conv_stats_kernel(%arg0: i32, %arg1: memref<1x16x16x3xbf16, #tpu.memory_space<vmem>>, %arg2: memref<75x32xbf16, #tpu.memory_space<vmem>>, %arg3: memref<1x12x12x32xf32, #tpu.memory_space<vmem>>, %arg4: memref<1x1x32xf32, #tpu.memory_space<vmem>>, %arg5: memref<1x1x32xf32, #tpu.memory_space<vmem>>) attributes {dimension_semantics = [#tpu.dimension_semantics<parallel>], iteration_bounds = array<i64: 2>, scalar_prefetch = 0 : i64, scratch_operands = 0 : i64, tpu.core_type = #tpu.core_type<tc>, window_params = [{transform_indices = @transform_0, window_bounds = array<i64: 1, 16, 16, 3>}, {pipeline_mode = #tpu.pipeline_mode<synchronous>, transform_indices = @transform_1, window_bounds = array<i64: 75, 32>}, {transform_indices = @transform_2, window_bounds = array<i64: 1, 12, 12, 32>}, {transform_indices = @transform_3, window_bounds = array<i64: 1, 1, 32>}, {transform_indices = @transform_4, window_bounds = array<i64: 1, 1, 32>}]} {
    %c0 = arith.constant 0 : index
    %c0_0 = arith.constant 0 : index
    %c0_1 = arith.constant 0 : index
    %c0_2 = arith.constant 0 : index
    %0 = vector.load %arg1[%c0, %c0_0, %c0_1, %c0_2] : memref<1x16x16x3xbf16, #tpu.memory_space<vmem>>, vector<1x16x16x3xbf16>
    %1 = vector.extract_strided_slice %0 {offsets = [0, 0, 0, 0], sizes = [1, 12, 12, 3], strides = [1, 1, 1, 1]} : vector<1x16x16x3xbf16> to vector<1x12x12x3xbf16>
    %2 = vector.extract_strided_slice %0 {offsets = [0, 0, 1, 0], sizes = [1, 12, 12, 3], strides = [1, 1, 1, 1]} : vector<1x16x16x3xbf16> to vector<1x12x12x3xbf16>
    %3 = vector.extract_strided_slice %0 {offsets = [0, 0, 2, 0], sizes = [1, 12, 12, 3], strides = [1, 1, 1, 1]} : vector<1x16x16x3xbf16> to vector<1x12x12x3xbf16>
    %4 = vector.extract_strided_slice %0 {offsets = [0, 0, 3, 0], sizes = [1, 12, 12, 3], strides = [1, 1, 1, 1]} : vector<1x16x16x3xbf16> to vector<1x12x12x3xbf16>
    %5 = vector.extract_strided_slice %0 {offsets = [0, 0, 4, 0], sizes = [1, 12, 12, 3], strides = [1, 1, 1, 1]} : vector<1x16x16x3xbf16> to vector<1x12x12x3xbf16>
    %6 = vector.extract_strided_slice %0 {offsets = [0, 1, 0, 0], sizes = [1, 12, 12, 3], strides = [1, 1, 1, 1]} : vector<1x16x16x3xbf16> to vector<1x12x12x3xbf16>
    %7 = vector.extract_strided_slice %0 {offsets = [0, 1, 1, 0], sizes = [1, 12, 12, 3], strides = [1, 1, 1, 1]} : vector<1x16x16x3xbf16> to vector<1x12x12x3xbf16>
    %8 = vector.extract_strided_slice %0 {offsets = [0, 1, 2, 0], sizes = [1, 12, 12, 3], strides = [1, 1, 1, 1]} : vector<1x16x16x3xbf16> to vector<1x12x12x3xbf16>
    %9 = vector.extract_strided_slice %0 {offsets = [0, 1, 3, 0], sizes = [1, 12, 12, 3], strides = [1, 1, 1, 1]} : vector<1x16x16x3xbf16> to vector<1x12x12x3xbf16>
    %10 = vector.extract_strided_slice %0 {offsets = [0, 1, 4, 0], sizes = [1, 12, 12, 3], strides = [1, 1, 1, 1]} : vector<1x16x16x3xbf16> to vector<1x12x12x3xbf16>
    %11 = vector.extract_strided_slice %0 {offsets = [0, 2, 0, 0], sizes = [1, 12, 12, 3], strides = [1, 1, 1, 1]} : vector<1x16x16x3xbf16> to vector<1x12x12x3xbf16>
    %12 = vector.extract_strided_slice %0 {offsets = [0, 2, 1, 0], sizes = [1, 12, 12, 3], strides = [1, 1, 1, 1]} : vector<1x16x16x3xbf16> to vector<1x12x12x3xbf16>
    %13 = vector.extract_strided_slice %0 {offsets = [0, 2, 2, 0], sizes = [1, 12, 12, 3], strides = [1, 1, 1, 1]} : vector<1x16x16x3xbf16> to vector<1x12x12x3xbf16>
    %14 = vector.extract_strided_slice %0 {offsets = [0, 2, 3, 0], sizes = [1, 12, 12, 3], strides = [1, 1, 1, 1]} : vector<1x16x16x3xbf16> to vector<1x12x12x3xbf16>
    %15 = vector.extract_strided_slice %0 {offsets = [0, 2, 4, 0], sizes = [1, 12, 12, 3], strides = [1, 1, 1, 1]} : vector<1x16x16x3xbf16> to vector<1x12x12x3xbf16>
    %16 = vector.extract_strided_slice %0 {offsets = [0, 3, 0, 0], sizes = [1, 12, 12, 3], strides = [1, 1, 1, 1]} : vector<1x16x16x3xbf16> to vector<1x12x12x3xbf16>
    %17 = vector.extract_strided_slice %0 {offsets = [0, 3, 1, 0], sizes = [1, 12, 12, 3], strides = [1, 1, 1, 1]} : vector<1x16x16x3xbf16> to vector<1x12x12x3xbf16>
    %18 = vector.extract_strided_slice %0 {offsets = [0, 3, 2, 0], sizes = [1, 12, 12, 3], strides = [1, 1, 1, 1]} : vector<1x16x16x3xbf16> to vector<1x12x12x3xbf16>
    %19 = vector.extract_strided_slice %0 {offsets = [0, 3, 3, 0], sizes = [1, 12, 12, 3], strides = [1, 1, 1, 1]} : vector<1x16x16x3xbf16> to vector<1x12x12x3xbf16>
    %20 = vector.extract_strided_slice %0 {offsets = [0, 3, 4, 0], sizes = [1, 12, 12, 3], strides = [1, 1, 1, 1]} : vector<1x16x16x3xbf16> to vector<1x12x12x3xbf16>
    %21 = vector.extract_strided_slice %0 {offsets = [0, 4, 0, 0], sizes = [1, 12, 12, 3], strides = [1, 1, 1, 1]} : vector<1x16x16x3xbf16> to vector<1x12x12x3xbf16>
    %22 = vector.extract_strided_slice %0 {offsets = [0, 4, 1, 0], sizes = [1, 12, 12, 3], strides = [1, 1, 1, 1]} : vector<1x16x16x3xbf16> to vector<1x12x12x3xbf16>
    %23 = vector.extract_strided_slice %0 {offsets = [0, 4, 2, 0], sizes = [1, 12, 12, 3], strides = [1, 1, 1, 1]} : vector<1x16x16x3xbf16> to vector<1x12x12x3xbf16>
    %24 = vector.extract_strided_slice %0 {offsets = [0, 4, 3, 0], sizes = [1, 12, 12, 3], strides = [1, 1, 1, 1]} : vector<1x16x16x3xbf16> to vector<1x12x12x3xbf16>
    %25 = vector.extract_strided_slice %0 {offsets = [0, 4, 4, 0], sizes = [1, 12, 12, 3], strides = [1, 1, 1, 1]} : vector<1x16x16x3xbf16> to vector<1x12x12x3xbf16>
    %26 = tpu.concatenate %1, %2, %3, %4, %5, %6, %7, %8, %9, %10, %11, %12, %13, %14, %15, %16 in 3 : vector<1x12x12x3xbf16>, vector<1x12x12x3xbf16>, vector<1x12x12x3xbf16>, vector<1x12x12x3xbf16>, vector<1x12x12x3xbf16>, vector<1x12x12x3xbf16>, vector<1x12x12x3xbf16>, vector<1x12x12x3xbf16>, vector<1x12x12x3xbf16>, vector<1x12x12x3xbf16>, vector<1x12x12x3xbf16>, vector<1x12x12x3xbf16>, vector<1x12x12x3xbf16>, vector<1x12x12x3xbf16>, vector<1x12x12x3xbf16>, vector<1x12x12x3xbf16> -> vector<1x12x12x48xbf16>
    %27 = tpu.concatenate %17, %18, %19, %20, %21, %22, %23, %24, %25 in 3 : vector<1x12x12x3xbf16>, vector<1x12x12x3xbf16>, vector<1x12x12x3xbf16>, vector<1x12x12x3xbf16>, vector<1x12x12x3xbf16>, vector<1x12x12x3xbf16>, vector<1x12x12x3xbf16>, vector<1x12x12x3xbf16>, vector<1x12x12x3xbf16> -> vector<1x12x12x27xbf16>
    %28 = tpu.concatenate %26, %27 in 3 : vector<1x12x12x48xbf16>, vector<1x12x12x27xbf16> -> vector<1x12x12x75xbf16>
    %29 = vector.shape_cast %28 : vector<1x12x12x75xbf16> to vector<144x75xbf16>
    %c0_3 = arith.constant 0 : index
    %c0_4 = arith.constant 0 : index
    %30 = vector.load %arg2[%c0_3, %c0_4] : memref<75x32xbf16, #tpu.memory_space<vmem>>, vector<75x32xbf16>
    %cst = arith.constant dense<0.000000e+00> : vector<144x32xf32>
    %31 = tpu.matmul %29, %30, %cst {dimension_numbers = #tpu.dot_dimension_numbers<[1], [0], [0], [1], [0, 0, 1, 1], [], []>} : vector<144x75xbf16>, vector<75x32xbf16>, vector<144x32xf32> -> vector<144x32xf32>
    %32 = vector.shape_cast %31 : vector<144x32xf32> to vector<1x12x12x32xf32>
    %c0_5 = arith.constant 0 : index
    %c0_6 = arith.constant 0 : index
    %c0_7 = arith.constant 0 : index
    %c0_8 = arith.constant 0 : index
    %33 = vector.load %arg3[%c0_5, %c0_6, %c0_7, %c0_8] : memref<1x12x12x32xf32, #tpu.memory_space<vmem>>, vector<1x12x12x32xf32>
    tpu.vector_store %arg3[%c0_5, %c0_6, %c0_7, %c0_8], %32 {strides = array<i32>} : memref<1x12x12x32xf32, #tpu.memory_space<vmem>>, vector<1x12x12x32xf32>,
    %cst_9 = arith.constant dense<0.000000e+00> : vector<32xf32>
    %34 = vector.multi_reduction <add>, %31, %cst_9 [0] : vector<144x32xf32> to vector<32xf32>
    %35 = vector.shape_cast %34 : vector<32xf32> to vector<1x32xf32>
    %36 = vector.shape_cast %35 : vector<1x32xf32> to vector<1x1x32xf32>
    %c0_10 = arith.constant 0 : index
    %c0_11 = arith.constant 0 : index
    %c0_12 = arith.constant 0 : index
    %37 = vector.load %arg4[%c0_10, %c0_11, %c0_12] : memref<1x1x32xf32, #tpu.memory_space<vmem>>, vector<1x1x32xf32>
    tpu.vector_store %arg4[%c0_10, %c0_11, %c0_12], %36 {strides = array<i32>} : memref<1x1x32xf32, #tpu.memory_space<vmem>>, vector<1x1x32xf32>,
    %38 = arith.mulf %31, %31 : vector<144x32xf32>
    %cst_13 = arith.constant dense<0.000000e+00> : vector<32xf32>
    %39 = vector.multi_reduction <add>, %38, %cst_13 [0] : vector<144x32xf32> to vector<32xf32>
    %40 = vector.shape_cast %39 : vector<32xf32> to vector<1x32xf32>
    %41 = vector.shape_cast %40 : vector<1x32xf32> to vector<1x1x32xf32>
    %c0_14 = arith.constant 0 : index
    %c0_15 = arith.constant 0 : index
    %c0_16 = arith.constant 0 : index
    %42 = vector.load %arg5[%c0_14, %c0_15, %c0_16] : memref<1x1x32xf32, #tpu.memory_space<vmem>>, vector<1x1x32xf32>
    tpu.vector_store %arg5[%c0_14, %c0_15, %c0_16], %41 {strides = array<i32>} : memref<1x1x32xf32, #tpu.memory_space<vmem>>, vector<1x1x32xf32>,
    return
  }
  func.func @transform_0(%arg0: i32) -> (i32, i32, i32, i32) {
    %c0_i32 = arith.constant 0 : i32
    %c0_i32_0 = arith.constant 0 : i32
    %c0_i32_1 = arith.constant 0 : i32
    %c0_i32_2 = arith.constant 0 : i32
    return %arg0, %c0_i32, %c0_i32_0, %c0_i32_1 : i32, i32, i32, i32
  }
  func.func @transform_1(%arg0: i32) -> (i32, i32) {
    %c0_i32 = arith.constant 0 : i32
    %c0_i32_0 = arith.constant 0 : i32
    %c0_i32_1 = arith.constant 0 : i32
    return %c0_i32, %c0_i32_0 : i32, i32
  }
  func.func @transform_2(%arg0: i32) -> (i32, i32, i32, i32) {
    %c0_i32 = arith.constant 0 : i32
    %c0_i32_0 = arith.constant 0 : i32
    %c0_i32_1 = arith.constant 0 : i32
    %c0_i32_2 = arith.constant 0 : i32
    return %arg0, %c0_i32, %c0_i32_0, %c0_i32_1 : i32, i32, i32, i32
  }
  func.func @transform_3(%arg0: i32) -> (i32, i32, i32) {
    %c0_i32 = arith.constant 0 : i32
    %c0_i32_0 = arith.constant 0 : i32
    %c0_i32_1 = arith.constant 0 : i32
    return %arg0, %c0_i32, %c0_i32_0 : i32, i32, i32
  }
  func.func @transform_4(%arg0: i32) -> (i32, i32, i32) {
    %c0_i32 = arith.constant 0 : i32
    %c0_i32_0 = arith.constant 0 : i32
    %c0_i32_1 = arith.constant 0 : i32
    return %arg0, %c0_i32, %c0_i32_0 : i32, i32, i32
  }
}

module attributes {stable_mosaic.version = 11 : i64} {
  func.func @_bn_pool_conv_stats_kernel(%arg0: i32, %arg1: memref<1x12x12x32xf32, #tpu.memory_space<vmem>>, %arg2: memref<2x1x32xf32, #tpu.memory_space<vmem>>, %arg3: memref<2x1x32xf32, #tpu.memory_space<vmem>>, %arg4: memref<1x32xf32, #tpu.memory_space<vmem>>, %arg5: memref<1x32xf32, #tpu.memory_space<vmem>>, %arg6: memref<800x64xbf16, #tpu.memory_space<vmem>>, %arg7: memref<1x2x2x64xf32, #tpu.memory_space<vmem>>, %arg8: memref<1x1x64xf32, #tpu.memory_space<vmem>>, %arg9: memref<1x1x64xf32, #tpu.memory_space<vmem>>) attributes {dimension_semantics = [#tpu.dimension_semantics<parallel>], iteration_bounds = array<i64: 2>, scalar_prefetch = 0 : i64, scratch_operands = 0 : i64, tpu.core_type = #tpu.core_type<tc>, window_params = [{transform_indices = @transform_0, window_bounds = array<i64: 1, 12, 12, 32>}, {pipeline_mode = #tpu.pipeline_mode<synchronous>, transform_indices = @transform_1, window_bounds = array<i64: 2, 1, 32>}, {pipeline_mode = #tpu.pipeline_mode<synchronous>, transform_indices = @transform_2, window_bounds = array<i64: 2, 1, 32>}, {pipeline_mode = #tpu.pipeline_mode<synchronous>, transform_indices = @transform_3, window_bounds = array<i64: 1, 32>}, {pipeline_mode = #tpu.pipeline_mode<synchronous>, transform_indices = @transform_4, window_bounds = array<i64: 1, 32>}, {pipeline_mode = #tpu.pipeline_mode<synchronous>, transform_indices = @transform_5, window_bounds = array<i64: 800, 64>}, {transform_indices = @transform_6, window_bounds = array<i64: 1, 2, 2, 64>}, {transform_indices = @transform_7, window_bounds = array<i64: 1, 1, 64>}, {transform_indices = @transform_8, window_bounds = array<i64: 1, 1, 64>}]} {
    %c0 = arith.constant 0 : index
    %c0_0 = arith.constant 0 : index
    %c0_1 = arith.constant 0 : index
    %0 = vector.load %arg2[%c0, %c0_0, %c0_1] : memref<2x1x32xf32, #tpu.memory_space<vmem>>, vector<2x1x32xf32>
    %cst = arith.constant dense<0.000000e+00> : vector<1x32xf32>
    %1 = vector.multi_reduction <add>, %0, %cst [0] : vector<2x1x32xf32> to vector<1x32xf32>
    %cst_2 = arith.constant 2.880000e+02 : f32
    %2 = vector.broadcast %cst_2 : f32 to vector<1x32xf32>
    %3 = arith.divf %1, %2 : vector<1x32xf32>
    %c0_3 = arith.constant 0 : index
    %c0_4 = arith.constant 0 : index
    %c0_5 = arith.constant 0 : index
    %4 = vector.load %arg3[%c0_3, %c0_4, %c0_5] : memref<2x1x32xf32, #tpu.memory_space<vmem>>, vector<2x1x32xf32>
    %cst_6 = arith.constant dense<0.000000e+00> : vector<1x32xf32>
    %5 = vector.multi_reduction <add>, %4, %cst_6 [0] : vector<2x1x32xf32> to vector<1x32xf32>
    %cst_7 = arith.constant 2.880000e+02 : f32
    %6 = vector.broadcast %cst_7 : f32 to vector<1x32xf32>
    %7 = arith.divf %5, %6 : vector<1x32xf32>
    %8 = arith.mulf %3, %3 : vector<1x32xf32>
    %9 = arith.subf %7, %8 : vector<1x32xf32>
    %cst_8 = arith.constant 0.000000e+00 : f32
    %10 = vector.broadcast %cst_8 : f32 to vector<1x32xf32>
    %11 = arith.maximumf %9, %10 : vector<1x32xf32>
    %c0_9 = arith.constant 0 : index
    %c0_10 = arith.constant 0 : index
    %12 = vector.load %arg4[%c0_9, %c0_10] : memref<1x32xf32, #tpu.memory_space<vmem>>, vector<1x32xf32>
    %cst_11 = arith.constant 9.99999974E-6 : f32
    %13 = vector.broadcast %cst_11 : f32 to vector<1x32xf32>
    %14 = arith.addf %11, %13 : vector<1x32xf32>
    %15 = math.rsqrt %14 : vector<1x32xf32>
    %16 = arith.mulf %12, %15 : vector<1x32xf32>
    %c0_12 = arith.constant 0 : index
    %c0_13 = arith.constant 0 : index
    %17 = vector.load %arg5[%c0_12, %c0_13] : memref<1x32xf32, #tpu.memory_space<vmem>>, vector<1x32xf32>
    %18 = arith.mulf %3, %16 : vector<1x32xf32>
    %19 = arith.subf %17, %18 : vector<1x32xf32>
    %c0_14 = arith.constant 0 : index
    %c0_15 = arith.constant 0 : index
    %c0_16 = arith.constant 0 : index
    %c0_17 = arith.constant 0 : index
    %20 = vector.load %arg1[%c0_14, %c0_15, %c0_16, %c0_17] : memref<1x12x12x32xf32, #tpu.memory_space<vmem>>, vector<1x12x12x32xf32>
    %21 = vector.shape_cast %16 : vector<1x32xf32> to vector<1x1x1x32xf32>
    %22 = vector.broadcast %21 : vector<1x1x1x32xf32> to vector<1x12x12x32xf32>
    %23 = arith.mulf %20, %22 : vector<1x12x12x32xf32>
    %24 = vector.shape_cast %19 : vector<1x32xf32> to vector<1x1x1x32xf32>
    %25 = vector.broadcast %24 : vector<1x1x1x32xf32> to vector<1x12x12x32xf32>
    %26 = arith.addf %23, %25 : vector<1x12x12x32xf32>
    %cst_18 = arith.constant 0.000000e+00 : f32
    %27 = vector.broadcast %cst_18 : f32 to vector<1x12x12x32xf32>
    %28 = arith.maximumf %26, %27 : vector<1x12x12x32xf32>
    %29 = vector.shape_cast %28 : vector<1x12x12x32xf32> to vector<12x6x2x32xf32>
    %30 = vector.extract_strided_slice %29 {offsets = [0, 0, 0, 0], sizes = [12, 6, 1, 32], strides = [1, 1, 1, 1]} : vector<12x6x2x32xf32> to vector<12x6x1x32xf32>
    %31 = vector.shape_cast %30 : vector<12x6x1x32xf32> to vector<12x6x32xf32>
    %32 = vector.extract_strided_slice %29 {offsets = [0, 0, 1, 0], sizes = [12, 6, 1, 32], strides = [1, 1, 1, 1]} : vector<12x6x2x32xf32> to vector<12x6x1x32xf32>
    %33 = vector.shape_cast %32 : vector<12x6x1x32xf32> to vector<12x6x32xf32>
    %34 = arith.maximumf %31, %33 : vector<12x6x32xf32>
    %35 = vector.shape_cast %34 : vector<12x6x32xf32> to vector<6x2x6x32xf32>
    %36 = vector.extract_strided_slice %35 {offsets = [0, 0, 0, 0], sizes = [6, 1, 6, 32], strides = [1, 1, 1, 1]} : vector<6x2x6x32xf32> to vector<6x1x6x32xf32>
    %37 = vector.shape_cast %36 : vector<6x1x6x32xf32> to vector<6x6x32xf32>
    %38 = vector.extract_strided_slice %35 {offsets = [0, 1, 0, 0], sizes = [6, 1, 6, 32], strides = [1, 1, 1, 1]} : vector<6x2x6x32xf32> to vector<6x1x6x32xf32>
    %39 = vector.shape_cast %38 : vector<6x1x6x32xf32> to vector<6x6x32xf32>
    %40 = arith.maximumf %37, %39 : vector<6x6x32xf32>
    %41 = vector.shape_cast %40 : vector<6x6x32xf32> to vector<1x6x6x32xf32>
    %42 = arith.truncf %41 : vector<1x6x6x32xf32> to vector<1x6x6x32xbf16>
    %43 = vector.extract_strided_slice %42 {offsets = [0, 0, 0, 0], sizes = [1, 2, 2, 32], strides = [1, 1, 1, 1]} : vector<1x6x6x32xbf16> to vector<1x2x2x32xbf16>
    %44 = vector.extract_strided_slice %42 {offsets = [0, 0, 1, 0], sizes = [1, 2, 2, 32], strides = [1, 1, 1, 1]} : vector<1x6x6x32xbf16> to vector<1x2x2x32xbf16>
    %45 = vector.extract_strided_slice %42 {offsets = [0, 0, 2, 0], sizes = [1, 2, 2, 32], strides = [1, 1, 1, 1]} : vector<1x6x6x32xbf16> to vector<1x2x2x32xbf16>
    %46 = vector.extract_strided_slice %42 {offsets = [0, 0, 3, 0], sizes = [1, 2, 2, 32], strides = [1, 1, 1, 1]} : vector<1x6x6x32xbf16> to vector<1x2x2x32xbf16>
    %47 = vector.extract_strided_slice %42 {offsets = [0, 0, 4, 0], sizes = [1, 2, 2, 32], strides = [1, 1, 1, 1]} : vector<1x6x6x32xbf16> to vector<1x2x2x32xbf16>
    %48 = vector.extract_strided_slice %42 {offsets = [0, 1, 0, 0], sizes = [1, 2, 2, 32], strides = [1, 1, 1, 1]} : vector<1x6x6x32xbf16> to vector<1x2x2x32xbf16>
    %49 = vector.extract_strided_slice %42 {offsets = [0, 1, 1, 0], sizes = [1, 2, 2, 32], strides = [1, 1, 1, 1]} : vector<1x6x6x32xbf16> to vector<1x2x2x32xbf16>
    %50 = vector.extract_strided_slice %42 {offsets = [0, 1, 2, 0], sizes = [1, 2, 2, 32], strides = [1, 1, 1, 1]} : vector<1x6x6x32xbf16> to vector<1x2x2x32xbf16>
    %51 = vector.extract_strided_slice %42 {offsets = [0, 1, 3, 0], sizes = [1, 2, 2, 32], strides = [1, 1, 1, 1]} : vector<1x6x6x32xbf16> to vector<1x2x2x32xbf16>
    %52 = vector.extract_strided_slice %42 {offsets = [0, 1, 4, 0], sizes = [1, 2, 2, 32], strides = [1, 1, 1, 1]} : vector<1x6x6x32xbf16> to vector<1x2x2x32xbf16>
    %53 = vector.extract_strided_slice %42 {offsets = [0, 2, 0, 0], sizes = [1, 2, 2, 32], strides = [1, 1, 1, 1]} : vector<1x6x6x32xbf16> to vector<1x2x2x32xbf16>
    %54 = vector.extract_strided_slice %42 {offsets = [0, 2, 1, 0], sizes = [1, 2, 2, 32], strides = [1, 1, 1, 1]} : vector<1x6x6x32xbf16> to vector<1x2x2x32xbf16>
    %55 = vector.extract_strided_slice %42 {offsets = [0, 2, 2, 0], sizes = [1, 2, 2, 32], strides = [1, 1, 1, 1]} : vector<1x6x6x32xbf16> to vector<1x2x2x32xbf16>
    %56 = vector.extract_strided_slice %42 {offsets = [0, 2, 3, 0], sizes = [1, 2, 2, 32], strides = [1, 1, 1, 1]} : vector<1x6x6x32xbf16> to vector<1x2x2x32xbf16>
    %57 = vector.extract_strided_slice %42 {offsets = [0, 2, 4, 0], sizes = [1, 2, 2, 32], strides = [1, 1, 1, 1]} : vector<1x6x6x32xbf16> to vector<1x2x2x32xbf16>
    %58 = vector.extract_strided_slice %42 {offsets = [0, 3, 0, 0], sizes = [1, 2, 2, 32], strides = [1, 1, 1, 1]} : vector<1x6x6x32xbf16> to vector<1x2x2x32xbf16>
    %59 = vector.extract_strided_slice %42 {offsets = [0, 3, 1, 0], sizes = [1, 2, 2, 32], strides = [1, 1, 1, 1]} : vector<1x6x6x32xbf16> to vector<1x2x2x32xbf16>
    %60 = vector.extract_strided_slice %42 {offsets = [0, 3, 2, 0], sizes = [1, 2, 2, 32], strides = [1, 1, 1, 1]} : vector<1x6x6x32xbf16> to vector<1x2x2x32xbf16>
    %61 = vector.extract_strided_slice %42 {offsets = [0, 3, 3, 0], sizes = [1, 2, 2, 32], strides = [1, 1, 1, 1]} : vector<1x6x6x32xbf16> to vector<1x2x2x32xbf16>
    %62 = vector.extract_strided_slice %42 {offsets = [0, 3, 4, 0], sizes = [1, 2, 2, 32], strides = [1, 1, 1, 1]} : vector<1x6x6x32xbf16> to vector<1x2x2x32xbf16>
    %63 = vector.extract_strided_slice %42 {offsets = [0, 4, 0, 0], sizes = [1, 2, 2, 32], strides = [1, 1, 1, 1]} : vector<1x6x6x32xbf16> to vector<1x2x2x32xbf16>
    %64 = vector.extract_strided_slice %42 {offsets = [0, 4, 1, 0], sizes = [1, 2, 2, 32], strides = [1, 1, 1, 1]} : vector<1x6x6x32xbf16> to vector<1x2x2x32xbf16>
    %65 = vector.extract_strided_slice %42 {offsets = [0, 4, 2, 0], sizes = [1, 2, 2, 32], strides = [1, 1, 1, 1]} : vector<1x6x6x32xbf16> to vector<1x2x2x32xbf16>
    %66 = vector.extract_strided_slice %42 {offsets = [0, 4, 3, 0], sizes = [1, 2, 2, 32], strides = [1, 1, 1, 1]} : vector<1x6x6x32xbf16> to vector<1x2x2x32xbf16>
    %67 = vector.extract_strided_slice %42 {offsets = [0, 4, 4, 0], sizes = [1, 2, 2, 32], strides = [1, 1, 1, 1]} : vector<1x6x6x32xbf16> to vector<1x2x2x32xbf16>
    %68 = tpu.concatenate %43, %44, %45, %46, %47, %48, %49, %50, %51, %52, %53, %54, %55, %56, %57, %58 in 3 : vector<1x2x2x32xbf16>, vector<1x2x2x32xbf16>, vector<1x2x2x32xbf16>, vector<1x2x2x32xbf16>, vector<1x2x2x32xbf16>, vector<1x2x2x32xbf16>, vector<1x2x2x32xbf16>, vector<1x2x2x32xbf16>, vector<1x2x2x32xbf16>, vector<1x2x2x32xbf16>, vector<1x2x2x32xbf16>, vector<1x2x2x32xbf16>, vector<1x2x2x32xbf16>, vector<1x2x2x32xbf16>, vector<1x2x2x32xbf16>, vector<1x2x2x32xbf16> -> vector<1x2x2x512xbf16>
    %69 = tpu.concatenate %59, %60, %61, %62, %63, %64, %65, %66, %67 in 3 : vector<1x2x2x32xbf16>, vector<1x2x2x32xbf16>, vector<1x2x2x32xbf16>, vector<1x2x2x32xbf16>, vector<1x2x2x32xbf16>, vector<1x2x2x32xbf16>, vector<1x2x2x32xbf16>, vector<1x2x2x32xbf16>, vector<1x2x2x32xbf16> -> vector<1x2x2x288xbf16>
    %70 = tpu.concatenate %68, %69 in 3 : vector<1x2x2x512xbf16>, vector<1x2x2x288xbf16> -> vector<1x2x2x800xbf16>
    %71 = vector.shape_cast %70 : vector<1x2x2x800xbf16> to vector<4x800xbf16>
    %c0_19 = arith.constant 0 : index
    %c0_20 = arith.constant 0 : index
    %72 = vector.load %arg6[%c0_19, %c0_20] : memref<800x64xbf16, #tpu.memory_space<vmem>>, vector<800x64xbf16>
    %cst_21 = arith.constant dense<0.000000e+00> : vector<4x64xf32>
    %73 = tpu.matmul %71, %72, %cst_21 {dimension_numbers = #tpu.dot_dimension_numbers<[1], [0], [0], [1], [0, 0, 1, 1], [], []>} : vector<4x800xbf16>, vector<800x64xbf16>, vector<4x64xf32> -> vector<4x64xf32>
    %74 = vector.shape_cast %73 : vector<4x64xf32> to vector<1x2x2x64xf32>
    %c0_22 = arith.constant 0 : index
    %c0_23 = arith.constant 0 : index
    %c0_24 = arith.constant 0 : index
    %c0_25 = arith.constant 0 : index
    %75 = vector.load %arg7[%c0_22, %c0_23, %c0_24, %c0_25] : memref<1x2x2x64xf32, #tpu.memory_space<vmem>>, vector<1x2x2x64xf32>
    tpu.vector_store %arg7[%c0_22, %c0_23, %c0_24, %c0_25], %74 {strides = array<i32>} : memref<1x2x2x64xf32, #tpu.memory_space<vmem>>, vector<1x2x2x64xf32>,
    %cst_26 = arith.constant dense<0.000000e+00> : vector<64xf32>
    %76 = vector.multi_reduction <add>, %73, %cst_26 [0] : vector<4x64xf32> to vector<64xf32>
    %77 = vector.shape_cast %76 : vector<64xf32> to vector<1x64xf32>
    %78 = vector.shape_cast %77 : vector<1x64xf32> to vector<1x1x64xf32>
    %c0_27 = arith.constant 0 : index
    %c0_28 = arith.constant 0 : index
    %c0_29 = arith.constant 0 : index
    %79 = vector.load %arg8[%c0_27, %c0_28, %c0_29] : memref<1x1x64xf32, #tpu.memory_space<vmem>>, vector<1x1x64xf32>
    tpu.vector_store %arg8[%c0_27, %c0_28, %c0_29], %78 {strides = array<i32>} : memref<1x1x64xf32, #tpu.memory_space<vmem>>, vector<1x1x64xf32>,
    %80 = arith.mulf %73, %73 : vector<4x64xf32>
    %cst_30 = arith.constant dense<0.000000e+00> : vector<64xf32>
    %81 = vector.multi_reduction <add>, %80, %cst_30 [0] : vector<4x64xf32> to vector<64xf32>
    %82 = vector.shape_cast %81 : vector<64xf32> to vector<1x64xf32>
    %83 = vector.shape_cast %82 : vector<1x64xf32> to vector<1x1x64xf32>
    %c0_31 = arith.constant 0 : index
    %c0_32 = arith.constant 0 : index
    %c0_33 = arith.constant 0 : index
    %84 = vector.load %arg9[%c0_31, %c0_32, %c0_33] : memref<1x1x64xf32, #tpu.memory_space<vmem>>, vector<1x1x64xf32>
    tpu.vector_store %arg9[%c0_31, %c0_32, %c0_33], %83 {strides = array<i32>} : memref<1x1x64xf32, #tpu.memory_space<vmem>>, vector<1x1x64xf32>,
    return
  }
  func.func @transform_0(%arg0: i32) -> (i32, i32, i32, i32) {
    %c0_i32 = arith.constant 0 : i32
    %c0_i32_0 = arith.constant 0 : i32
    %c0_i32_1 = arith.constant 0 : i32
    %c0_i32_2 = arith.constant 0 : i32
    return %arg0, %c0_i32, %c0_i32_0, %c0_i32_1 : i32, i32, i32, i32
  }
  func.func @transform_1(%arg0: i32) -> (i32, i32, i32) {
    %c0_i32 = arith.constant 0 : i32
    %c0_i32_0 = arith.constant 0 : i32
    %c0_i32_1 = arith.constant 0 : i32
    %c0_i32_2 = arith.constant 0 : i32
    return %c0_i32, %c0_i32_0, %c0_i32_1 : i32, i32, i32
  }
  func.func @transform_2(%arg0: i32) -> (i32, i32, i32) {
    %c0_i32 = arith.constant 0 : i32
    %c0_i32_0 = arith.constant 0 : i32
    %c0_i32_1 = arith.constant 0 : i32
    %c0_i32_2 = arith.constant 0 : i32
    return %c0_i32, %c0_i32_0, %c0_i32_1 : i32, i32, i32
  }
  func.func @transform_3(%arg0: i32) -> (i32, i32) {
    %c0_i32 = arith.constant 0 : i32
    %c0_i32_0 = arith.constant 0 : i32
    %c0_i32_1 = arith.constant 0 : i32
    return %c0_i32, %c0_i32_0 : i32, i32
  }
  func.func @transform_4(%arg0: i32) -> (i32, i32) {
    %c0_i32 = arith.constant 0 : i32
    %c0_i32_0 = arith.constant 0 : i32
    %c0_i32_1 = arith.constant 0 : i32
    return %c0_i32, %c0_i32_0 : i32, i32
  }
  func.func @transform_5(%arg0: i32) -> (i32, i32) {
    %c0_i32 = arith.constant 0 : i32
    %c0_i32_0 = arith.constant 0 : i32
    %c0_i32_1 = arith.constant 0 : i32
    return %c0_i32, %c0_i32_0 : i32, i32
  }
  func.func @transform_6(%arg0: i32) -> (i32, i32, i32, i32) {
    %c0_i32 = arith.constant 0 : i32
    %c0_i32_0 = arith.constant 0 : i32
    %c0_i32_1 = arith.constant 0 : i32
    %c0_i32_2 = arith.constant 0 : i32
    return %arg0, %c0_i32, %c0_i32_0, %c0_i32_1 : i32, i32, i32, i32
  }
  func.func @transform_7(%arg0: i32) -> (i32, i32, i32) {
    %c0_i32 = arith.constant 0 : i32
    %c0_i32_0 = arith.constant 0 : i32
    %c0_i32_1 = arith.constant 0 : i32
    return %arg0, %c0_i32, %c0_i32_0 : i32, i32, i32
  }
  func.func @transform_8(%arg0: i32) -> (i32, i32, i32) {
    %c0_i32 = arith.constant 0 : i32
    %c0_i32_0 = arith.constant 0 : i32
    %c0_i32_1 = arith.constant 0 : i32
    return %arg0, %c0_i32, %c0_i32_0 : i32, i32, i32
  }
}

module attributes {stable_mosaic.version = 11 : i64} {
  func.func @_bn_pool_linear_kernel(%arg0: i32, %arg1: memref<1x2x2x64xf32, #tpu.memory_space<vmem>>, %arg2: memref<2x1x64xf32, #tpu.memory_space<vmem>>, %arg3: memref<2x1x64xf32, #tpu.memory_space<vmem>>, %arg4: memref<1x64xf32, #tpu.memory_space<vmem>>, %arg5: memref<1x64xf32, #tpu.memory_space<vmem>>, %arg6: memref<64x10xbf16, #tpu.memory_space<vmem>>, %arg7: memref<1x10xf32, #tpu.memory_space<vmem>>, %arg8: memref<1x1x10xf32, #tpu.memory_space<vmem>>) attributes {dimension_semantics = [#tpu.dimension_semantics<parallel>], iteration_bounds = array<i64: 2>, scalar_prefetch = 0 : i64, scratch_operands = 0 : i64, tpu.core_type = #tpu.core_type<tc>, window_params = [{transform_indices = @transform_0, window_bounds = array<i64: 1, 2, 2, 64>}, {pipeline_mode = #tpu.pipeline_mode<synchronous>, transform_indices = @transform_1, window_bounds = array<i64: 2, 1, 64>}, {pipeline_mode = #tpu.pipeline_mode<synchronous>, transform_indices = @transform_2, window_bounds = array<i64: 2, 1, 64>}, {pipeline_mode = #tpu.pipeline_mode<synchronous>, transform_indices = @transform_3, window_bounds = array<i64: 1, 64>}, {pipeline_mode = #tpu.pipeline_mode<synchronous>, transform_indices = @transform_4, window_bounds = array<i64: 1, 64>}, {pipeline_mode = #tpu.pipeline_mode<synchronous>, transform_indices = @transform_5, window_bounds = array<i64: 64, 10>}, {pipeline_mode = #tpu.pipeline_mode<synchronous>, transform_indices = @transform_6, window_bounds = array<i64: 1, 10>}, {transform_indices = @transform_7, window_bounds = array<i64: 1, 1, 10>}]} {
    %c0 = arith.constant 0 : index
    %c0_0 = arith.constant 0 : index
    %c0_1 = arith.constant 0 : index
    %0 = vector.load %arg2[%c0, %c0_0, %c0_1] : memref<2x1x64xf32, #tpu.memory_space<vmem>>, vector<2x1x64xf32>
    %cst = arith.constant dense<0.000000e+00> : vector<1x64xf32>
    %1 = vector.multi_reduction <add>, %0, %cst [0] : vector<2x1x64xf32> to vector<1x64xf32>
    %cst_2 = arith.constant 8.000000e+00 : f32
    %2 = vector.broadcast %cst_2 : f32 to vector<1x64xf32>
    %3 = arith.divf %1, %2 : vector<1x64xf32>
    %c0_3 = arith.constant 0 : index
    %c0_4 = arith.constant 0 : index
    %c0_5 = arith.constant 0 : index
    %4 = vector.load %arg3[%c0_3, %c0_4, %c0_5] : memref<2x1x64xf32, #tpu.memory_space<vmem>>, vector<2x1x64xf32>
    %cst_6 = arith.constant dense<0.000000e+00> : vector<1x64xf32>
    %5 = vector.multi_reduction <add>, %4, %cst_6 [0] : vector<2x1x64xf32> to vector<1x64xf32>
    %cst_7 = arith.constant 8.000000e+00 : f32
    %6 = vector.broadcast %cst_7 : f32 to vector<1x64xf32>
    %7 = arith.divf %5, %6 : vector<1x64xf32>
    %8 = arith.mulf %3, %3 : vector<1x64xf32>
    %9 = arith.subf %7, %8 : vector<1x64xf32>
    %cst_8 = arith.constant 0.000000e+00 : f32
    %10 = vector.broadcast %cst_8 : f32 to vector<1x64xf32>
    %11 = arith.maximumf %9, %10 : vector<1x64xf32>
    %c0_9 = arith.constant 0 : index
    %c0_10 = arith.constant 0 : index
    %12 = vector.load %arg4[%c0_9, %c0_10] : memref<1x64xf32, #tpu.memory_space<vmem>>, vector<1x64xf32>
    %cst_11 = arith.constant 9.99999974E-6 : f32
    %13 = vector.broadcast %cst_11 : f32 to vector<1x64xf32>
    %14 = arith.addf %11, %13 : vector<1x64xf32>
    %15 = math.rsqrt %14 : vector<1x64xf32>
    %16 = arith.mulf %12, %15 : vector<1x64xf32>
    %c0_12 = arith.constant 0 : index
    %c0_13 = arith.constant 0 : index
    %17 = vector.load %arg5[%c0_12, %c0_13] : memref<1x64xf32, #tpu.memory_space<vmem>>, vector<1x64xf32>
    %18 = arith.mulf %3, %16 : vector<1x64xf32>
    %19 = arith.subf %17, %18 : vector<1x64xf32>
    %c0_14 = arith.constant 0 : index
    %c0_15 = arith.constant 0 : index
    %c0_16 = arith.constant 0 : index
    %c0_17 = arith.constant 0 : index
    %20 = vector.load %arg1[%c0_14, %c0_15, %c0_16, %c0_17] : memref<1x2x2x64xf32, #tpu.memory_space<vmem>>, vector<1x2x2x64xf32>
    %21 = vector.shape_cast %16 : vector<1x64xf32> to vector<1x1x1x64xf32>
    %22 = vector.broadcast %21 : vector<1x1x1x64xf32> to vector<1x2x2x64xf32>
    %23 = arith.mulf %20, %22 : vector<1x2x2x64xf32>
    %24 = vector.shape_cast %19 : vector<1x64xf32> to vector<1x1x1x64xf32>
    %25 = vector.broadcast %24 : vector<1x1x1x64xf32> to vector<1x2x2x64xf32>
    %26 = arith.addf %23, %25 : vector<1x2x2x64xf32>
    %cst_18 = arith.constant 0.000000e+00 : f32
    %27 = vector.broadcast %cst_18 : f32 to vector<1x2x2x64xf32>
    %28 = arith.maximumf %26, %27 : vector<1x2x2x64xf32>
    %29 = vector.shape_cast %28 : vector<1x2x2x64xf32> to vector<2x1x2x64xf32>
    %30 = vector.extract_strided_slice %29 {offsets = [0, 0, 0, 0], sizes = [2, 1, 1, 64], strides = [1, 1, 1, 1]} : vector<2x1x2x64xf32> to vector<2x1x1x64xf32>
    %31 = vector.shape_cast %30 : vector<2x1x1x64xf32> to vector<2x1x64xf32>
    %32 = vector.extract_strided_slice %29 {offsets = [0, 0, 1, 0], sizes = [2, 1, 1, 64], strides = [1, 1, 1, 1]} : vector<2x1x2x64xf32> to vector<2x1x1x64xf32>
    %33 = vector.shape_cast %32 : vector<2x1x1x64xf32> to vector<2x1x64xf32>
    %34 = arith.maximumf %31, %33 : vector<2x1x64xf32>
    %35 = vector.shape_cast %34 : vector<2x1x64xf32> to vector<1x2x1x64xf32>
    %36 = vector.extract_strided_slice %35 {offsets = [0, 0, 0, 0], sizes = [1, 1, 1, 64], strides = [1, 1, 1, 1]} : vector<1x2x1x64xf32> to vector<1x1x1x64xf32>
    %37 = vector.shape_cast %36 : vector<1x1x1x64xf32> to vector<1x1x64xf32>
    %38 = vector.extract_strided_slice %35 {offsets = [0, 1, 0, 0], sizes = [1, 1, 1, 64], strides = [1, 1, 1, 1]} : vector<1x2x1x64xf32> to vector<1x1x1x64xf32>
    %39 = vector.shape_cast %38 : vector<1x1x1x64xf32> to vector<1x1x64xf32>
    %40 = arith.maximumf %37, %39 : vector<1x1x64xf32>
    %41 = vector.shape_cast %40 : vector<1x1x64xf32> to vector<1x1x1x64xf32>
    %42 = vector.shape_cast %41 : vector<1x1x1x64xf32> to vector<1x64xf32>
    %43 = arith.truncf %42 : vector<1x64xf32> to vector<1x64xbf16>
    %c0_19 = arith.constant 0 : index
    %c0_20 = arith.constant 0 : index
    %44 = vector.load %arg6[%c0_19, %c0_20] : memref<64x10xbf16, #tpu.memory_space<vmem>>, vector<64x10xbf16>
    %cst_21 = arith.constant dense<0.000000e+00> : vector<1x10xf32>
    %45 = tpu.matmul %43, %44, %cst_21 {dimension_numbers = #tpu.dot_dimension_numbers<[1], [0], [0], [1], [0, 0, 1, 1], [], []>} : vector<1x64xbf16>, vector<64x10xbf16>, vector<1x10xf32> -> vector<1x10xf32>
    %c0_22 = arith.constant 0 : index
    %c0_23 = arith.constant 0 : index
    %46 = vector.load %arg7[%c0_22, %c0_23] : memref<1x10xf32, #tpu.memory_space<vmem>>, vector<1x10xf32>
    %47 = arith.addf %45, %46 : vector<1x10xf32>
    %48 = vector.shape_cast %47 : vector<1x10xf32> to vector<1x1x10xf32>
    %c0_24 = arith.constant 0 : index
    %c0_25 = arith.constant 0 : index
    %c0_26 = arith.constant 0 : index
    %49 = vector.load %arg8[%c0_24, %c0_25, %c0_26] : memref<1x1x10xf32, #tpu.memory_space<vmem>>, vector<1x1x10xf32>
    tpu.vector_store %arg8[%c0_24, %c0_25, %c0_26], %48 {strides = array<i32>} : memref<1x1x10xf32, #tpu.memory_space<vmem>>, vector<1x1x10xf32>,
    return
  }
  func.func @transform_0(%arg0: i32) -> (i32, i32, i32, i32) {
    %c0_i32 = arith.constant 0 : i32
    %c0_i32_0 = arith.constant 0 : i32
    %c0_i32_1 = arith.constant 0 : i32
    %c0_i32_2 = arith.constant 0 : i32
    return %arg0, %c0_i32, %c0_i32_0, %c0_i32_1 : i32, i32, i32, i32
  }
  func.func @transform_1(%arg0: i32) -> (i32, i32, i32) {
    %c0_i32 = arith.constant 0 : i32
    %c0_i32_0 = arith.constant 0 : i32
    %c0_i32_1 = arith.constant 0 : i32
    %c0_i32_2 = arith.constant 0 : i32
    return %c0_i32, %c0_i32_0, %c0_i32_1 : i32, i32, i32
  }
  func.func @transform_2(%arg0: i32) -> (i32, i32, i32) {
    %c0_i32 = arith.constant 0 : i32
    %c0_i32_0 = arith.constant 0 : i32
    %c0_i32_1 = arith.constant 0 : i32
    %c0_i32_2 = arith.constant 0 : i32
    return %c0_i32, %c0_i32_0, %c0_i32_1 : i32, i32, i32
  }
  func.func @transform_3(%arg0: i32) -> (i32, i32) {
    %c0_i32 = arith.constant 0 : i32
    %c0_i32_0 = arith.constant 0 : i32
    %c0_i32_1 = arith.constant 0 : i32
    return %c0_i32, %c0_i32_0 : i32, i32
  }
  func.func @transform_4(%arg0: i32) -> (i32, i32) {
    %c0_i32 = arith.constant 0 : i32
    %c0_i32_0 = arith.constant 0 : i32
    %c0_i32_1 = arith.constant 0 : i32
    return %c0_i32, %c0_i32_0 : i32, i32
  }
  func.func @transform_5(%arg0: i32) -> (i32, i32) {
    %c0_i32 = arith.constant 0 : i32
    %c0_i32_0 = arith.constant 0 : i32
    %c0_i32_1 = arith.constant 0 : i32
    return %c0_i32, %c0_i32_0 : i32, i32
  }
  func.func @transform_6(%arg0: i32) -> (i32, i32) {
    %c0_i32 = arith.constant 0 : i32
    %c0_i32_0 = arith.constant 0 : i32
    %c0_i32_1 = arith.constant 0 : i32
    return %c0_i32, %c0_i32_0 : i32, i32
  }
  func.func @transform_7(%arg0: i32) -> (i32, i32, i32) {
    %c0_i32 = arith.constant 0 : i32
    %c0_i32_0 = arith.constant 0 : i32
    %c0_i32_1 = arith.constant 0 : i32
    return %arg0, %c0_i32, %c0_i32_0 : i32, i32, i32
  }
}

</mosaic_0001>

<bundles_post_ra>
// kernel: forward.5
= control target key start
LH: loop header
LB: loop body
LE: loop exit
PB: predicated region body
PF: predicated region fallthrough
CT: control target
= control target key end

     0   :  { %12 = vsyncpa [#allocation3], 0  ;;  %s797_s0 = inlined_call_operand.vmem [shape: f32[2,2,2,64], index: 0, kind: input, shape index: {}]   ;;  %s798_s1 = inlined_call_operand.vmem [shape: f32[2,1,64], index: 1, kind: input, shape index: {}]   ;;  %s799_s2 = inlined_call_operand.vmem [shape: f32[2,1,64], index: 2, kind: input, shape index: {}]   ;;  %s800_s3 = inlined_call_operand.vmem [shape: f32[1,64], index: 3, kind: input, shape index: {}]   ;;  %s801_s4 = inlined_call_operand.vmem [shape: f32[1,64], index: 4, kind: input, shape index: {}]   ;;  %s802_s5 = inlined_call_operand.vmem [shape: bf16[64,10], index: 5, kind: input, shape index: {}]   ;;  %s803_s6 = inlined_call_operand.vmem [shape: f32[1,10], index: 6, kind: input, shape index: {}]   ;;  %s804_s7 = inlined_call_operand.hbm [shape: f32[2,1,10], index: 7, kind: output, shape index: {}]  }
   0x1   :  { %14 = vsyncpa [#allocation3 + $0x1], 0  ;;  %s664_s24 = smov 0   ;;  %s666_s25 = smov 0  }
   0x2   :  { %s668_s26 = smov 0   ;;  %s670_s27 = smov 0  }
   0x3 LB: > { %s685_s28 = sadd.s32 4294967295, %s619_s27   ;;  %s478_s29 = sadd.s32 4294967294, %s619_s27   ;;  %s619_s27 = sphi %s670_s27, %s810_s27   ;;  %s615_s26 = sphi %s668_s26, %s809_s26   ;;  %s611_s25 = sphi %s666_s25, %s808_s25   ;;  %s607_s24 = sphi %s664_s24, %s807_s24  }
   0x4   : > { %s689_s30 = sadd.s32 1, %s619_s27   ;;  %s179_s8 = sadd.s32 1, %s615_s26 }
   0x5   : > { %s176_s9 = ssub.s32 %s619_s27, %s689_s30  ;;  %p189_p0 = scmp.ne.s32.totalorder %s615_s26, %s611_s25 }
   0x6   : > { %p177_p1 = scmp.eq.s32.totalorder %s176_s9, 0  ;;  %p190_p2 = scmp.eq.s32.totalorder %s685_s28, 1 }
   0x7   : > { %p195_p3 = scmp.ne.s32.totalorder %s611_s25, %s607_s24  ;;  %p196_p4 = scmp.eq.s32.totalorder %s478_s29, 1 }
   0x8   : > { %s700_s10 = scalar_select %p177_p1, %s615_s26, %s179_s8  }
   0x9   : > { %p702_p5 = por %p190_p2, %p189_p0  ;;  %p706_p6 = por %p196_p4, %p195_p3 }
   0xa   : > { %p481_p7 = scmp.ge.s32.totalorder %s619_s27, 1  ;;  %p240_p8 = scmp.lt.s32.totalorder %s619_s27, 3 }
   0xc   : > { %p241_p9 = pnand %p481_p7, %p240_p8 }
   0xd   : > { %v551_v0 = vld [vmem:[%s802_s5] sm:$0xff] (!%p241_p9)   ;;  %v621_v1 = vmov (!%p241_p9), 0.0   ;;  %v552_v2 = vld [vmem:[%s802_s5 + $0x8] sm:$0xff] (!%p241_p9)   ;;  %vm622_vm0 = vmmov (!%p241_p9), 0   ;;  %vm279_vm1 = vcmask (!%p241_p9), 516096   ;;  %v553_v9 = vld [vmem:[%s802_s5 + $0x10] sm:$0xff] (!%p241_p9)   ;;  %v304_v21 = vlaneseq (!%p241_p9) }
   0xe   : > { %244 = sbr.rel (%p241_p9) target bundleno = 287 (0x11f), region = 48  ;;  %498 = vmatprep.subr.bf16.mxu0 (!%p241_p9), %v621_v1  ;;  %506 = vmatprep.mubr.msk.bf16.mxu0 (!%p241_p9), %vm622_vm0, %v621_v1  ;;  %v277_v3 = vld [vmem:[%s798_s1] sm:$0x1] (!%p241_p9)  ;;  %v278_v4 = vld [vmem:[%s798_s1 + $0x1] sm:$0x1] (!%p241_p9)  ;;  %v554_v16 = vld [vmem:[%s802_s5 + $0x18] sm:$0xff] (!%p241_p9)  }
   0xf   : > { %499 = vmatpush3.bf16.msra.mxu0 (!%p241_p9), %v551_v0  ;;  %v280_v5 = vsel (!%p241_p9), %vm279_vm1, %v277_v3, 0.0  ;;  %v281_v6 = vsel (!%p241_p9), %vm279_vm1, %v278_v4, 0.0  ;;  %v285_v7 = vld [vmem:[%s799_s2] sm:$0x1] (!%p241_p9)  ;;  %v286_v8 = vld [vmem:[%s799_s2 + $0x1] sm:$0x1] (!%p241_p9) }
  0x10   : > { %500 = vmatprep.subr.bf16.mxu0 (!%p241_p9), %v621_v1  ;;  %v282_v10 = vadd.f32 (!%p241_p9), %v281_v6, %v280_v5  ;;  %v287_v11 = vsel (!%p241_p9), %vm279_vm1, %v285_v7, 0.0  ;;  %v288_v12 = vsel (!%p241_p9), %vm279_vm1, %v286_v8, 0.0  ;;  %p271_p10 = scmp.lt.s32.totalorder (!%p241_p9), %s685_s28, 1  ;;  %v305_v22 = vshrl.u32 (!%p241_p9), %v304_v21, 7  ;;  %v294_v23 = vld [vmem:[%s800_s3] sm:$0x1] (!%p241_p9) }
  0x11   : > { %v289_v13 = vadd.f32 (!%p241_p9), %v288_v12, %v287_v11  ;;  %v298_v27 = vld [vmem:[%s801_s4] sm:$0x1] (!%p241_p9)  ;;  %vm364_vm2 = vcmask (!%p241_p9), 523264   ;;  %s269_s29 = sand.u32 (!%p241_p9), 1, %s611_s25   ;;  %s489_s13 = sshll.u32 (!%p241_p9), %s685_s28, 4  ;;  %vm408_vm3 = vcmask (!%p241_p9), 73728  }
  0x12   : > { %v284_v14 = vmul.f32 (!%p241_p9), 0.125, %v282_v10  ;;  %v306_v24 = vsub.s32 (!%p241_p9), 0, %v305_v22  ;;  %v339_v46 = vld [vmem:[%s803_s6] sm:$0x1] (!%p241_p9)  ;;  %s270_s14 = scalar_lea.vmem (!%p241_p9), [#allocation2], %s269_s29  ;;  %s755_s18 = scalar_lea.hbm (!%p241_p9), %s804_s7, %s489_s13 }
  0x13   : > { %501 = vmatpush3.bf16.msra.mxu0 (!%p241_p9), %v552_v2  ;;  %v290_v15 = vmul.f32 (!%p241_p9), 0.125, %v289_v13  ;;  %s623_s20 = smov (!%p241_p9), [#allocation2]  }
  0x14   : > { %502 = vmatprep.subr.bf16.mxu0 (!%p241_p9), %v621_v1  ;;  %v291_v17 = vmul.f32 (!%p241_p9), %v284_v14, %v284_v14 }
  0x15   : > { %s272_s15 = scalar_select %p271_p10, %s685_s28, 1 }
  0x16   : > { %v292_v18 = vsub.f32 %v290_v15, %v291_v17  ;;  %s411_s28 = scalar_lea.sflag [#allocation3], %s269_s29 }
  0x17   : > { %503 = vmatpush3.bf16.msra.mxu0 %v553_v9  ;;  %s492_s16 = sshll.u32 %s272_s15, 2  ;;  %s423_s15 = sshll.u32 %s270_s14, 4  ;;  %s757_s15 = int_to_ptr.vmem [resolvable:$true] %s423_s15 }
  0x18   : > { %504 = vmatprep.subr.bf16.mxu0 %v621_v1  ;;  %v293_v19 = vmax.f32 %v292_v18, 0.0  ;;  %s275_s21 = scalar_lea.vmem %s797_s0, %s492_s16  ;;  %s557_s19 = scalar_lea.vmem %s757_s15, 16 }
  0x19   : > { %v301_v28 = vld [vmem:[%s275_s21] sm:$0x3]  ;;  %v302_v29 = vld [vmem:[%s275_s21 + $0x2] sm:$0x3]  ;;  %p558_p11 = scmp.ne.s32.totalorder %s757_s15, %s557_s19  ;;  %s561_s21 = sshll.u32 %s623_s20, 4  ;;  %s562_s21 = int_to_ptr.vmem [resolvable:$false] %s561_s21 }
  0x1a   : > { %v295_v20 = vadd.f32 1e-05, %v293_v19  ;;  %s563_s22 = scalar_lea.vmem %s562_s21, 32  ;;  %p564_p0 = scmp.lt.s32.totalorder %s757_s15, %s562_s21 }
  0x1b   : > { %505 = vmatpush3.bf16.msra.mxu0 %v554_v16  ;;  %p559_p12 = pnand %p558_p11, %p702_p5  ;;  %p565_p1 = scmp.lt.s32.totalorder %s563_s22, %s557_s19 }
  0x1c   : > { %555 = vrsqrt.f32 %v295_v20 }
  0x1d   : > { %p560_p13 = pneg %p559_p12  ;;  %p566_p2 = por %p565_p1, %p564_p0 }
  0x1f   : > { %p567_p3 = pnand %p566_p2, %p560_p13 }
  0x26   : > { %v556_v25 = vpop.eup %555 }
  0x27   : > { %v297_v26 = vmul.f32 %v556_v25, %v294_v23 }
  0x29   : > { %v299_v30 = vmul.f32 %v297_v26, %v284_v14  ;;  %v307_v31 = vrot.slane %v297_v26, %v306_v24 }
  0x2b   : > { %v300_v32 = vsub.f32 %v298_v27, %v299_v30  ;;  %v309_v33 = vmul.f32 %v307_v31, %v301_v28  ;;  %v310_v34 = vmul.f32 %v307_v31, %v302_v29 }
  0x2d   : > { %v315_v35 = vrot.slane %v300_v32, %v306_v24 }
  0x2f   : > { %v317_v36 = vadd.f32 %v315_v35, %v309_v33  ;;  %v318_v37 = vadd.f32 %v315_v35, %v310_v34 }
  0x31   : > { %v319_v38 = vmax.f32 %v317_v36, 0.0  ;;  %v320_v39 = vmax.f32 %v318_v37, 0.0 }
  0x33   : > { %v323_v40 = vrot.slane %v319_v38, 1  ;;  %v324_v41 = vrot.slane %v320_v39, 1 }
  0x35   : > { %v327_v42 = vmax.f32 %v319_v38, %v323_v40  ;;  %v328_v43 = vmax.f32 %v320_v39, %v324_v41 }
  0x37   : > { %v329_v44 = vmax.f32 %v327_v42, %v328_v43 }
  0x39   : > { %v330_v45 = vpack.c.bf16 %v329_v44, %v329_v44 }
  0x3b   : > { %507 = vmatmul.mubr.msk.bf16.vlgmr.msra.gmra.mrb[0].mxu0 %vm364_vm2, %v330_v45 }
 0x10e   : > { %v402_v47 = vpop.f32.mrb[0].mxu0 }
 0x10f   : > { %v403_v48 = vadd.f32 %v402_v47, %v339_v46  ;;  %v508_v49 = vpop.f32.mrb[1].mxu0 }
 0x110   : > { %v405_v50 = vpop.f32.mrb[2].mxu0 }
 0x111   : > { %v509_v51 = vpop.f32.mrb[3].mxu0  ;;  %409 = vst.msk [vmem:[%s270_s14] sm:$0x1] %vm408_vm3, %v403_v48 }
 0x112   : > { %570 = shalt.err (!%p567_p3)
}
 0x113   : > { %s571_s23 = scalar_lea.hbm %s755_s18, 16  ;;  %s575_s9 = scalar_lea.hbm %s804_s7, 32 }
 0x114   : > { %p572_p4 = scmp.ne.s32.totalorder %s755_s18, %s571_s23  ;;  %p576_p9 = scmp.lt.u32.totalorder %s755_s18, %s804_s7 }
 0x115   : > { %p577_p10 = scmp.lt.u32.totalorder %s575_s9, %s571_s23  ;;  %p579_p12 = scmp.lt.u32.totalorder %s571_s23, %s755_s18 }
 0x116   : > { %p573_p7 = pnand %p572_p4, %p702_p5 }
 0x117   : > { %p578_p11 = por %p577_p10, %p576_p9 }
 0x118   : > { %p574_p8 = pneg %p573_p7 }
 0x119   : > { %p580_p13 = por %p579_p12, %p578_p11 }
 0x11b   : > { %p581_p0 = pnand %p580_p13, %p574_p8 }
 0x11d   : > { %584 = shalt.err (!%p581_p0)
}
 0x11e   : > { %510 = dma.vmem_to_hbm [thread:$0]  (%p702_p5), %s757_s15, 16, %s755_s18, %s411_s28  }
 0x11f PF: > { %p516_p1 = scmp.ge.s32.totalorder %s619_s27, 2  ;;  %s435_s16 = sand.u32 1, %s607_s24  }
 0x120   : > { %s436_s17 = scalar_lea.sflag [#allocation3], %s435_s16 }
 0x121   : > { %p513_p2 = pnand %p516_p1, %p706_p6 }
 0x123   : > { %602 = dma.done.wait (!%p513_p2), %s436_s17, 16  }
 0x124   : > { %604 = vsyncadd (!%p513_p2), %s436_s17, 4294967280  ;;  %p17_p3 = scmp.ge.s32.totalorder %s689_s30, 4   ;;  %s807_s24 = smov %s611_s25 }
 0x125   : > { %s808_s25 = smov %s615_s26  ;;  %s809_s26 = smov %s700_s10 }
 0x126   : > { %s810_s27 = smov %s689_s30  ;;  %19 = sbr.rel (!%p17_p3) target bundleno = 3 (0x3), region = 83 }
 0x12d   :  { %440 = vsyncpa [#allocation3], 1 }
 0x12e   :  { %442 = vsyncpa [#allocation3 + $0x1], 1 }

// kernel: forward.4
= control target key start
LH: loop header
LB: loop body
LE: loop exit
PB: predicated region body
PF: predicated region fallthrough
CT: control target
= control target key end

     0   :  { %s2739_s27 = smov 0   ;;  %s3473_s0 = inlined_call_operand.vmem [shape: f32[2,12,12,32], index: 0, kind: input, shape index: {}]   ;;  %s3474_s1 = inlined_call_operand.vmem [shape: f32[2,1,32], index: 1, kind: input, shape index: {}]   ;;  %s3475_s2 = inlined_call_operand.vmem [shape: f32[2,1,32], index: 2, kind: input, shape index: {}]   ;;  %s3476_s3 = inlined_call_operand.vmem [shape: f32[1,32], index: 3, kind: input, shape index: {}]   ;;  %s3477_s4 = inlined_call_operand.vmem [shape: f32[1,32], index: 4, kind: input, shape index: {}]   ;;  %s3478_s5 = inlined_call_operand.vmem [shape: bf16[800,64], index: 5, kind: input, shape index: {}]   ;;  %s3479_s6 = inlined_call_operand.vmem [shape: f32[2,2,2,64], index: 6, kind: output, shape index: {0}]   ;;  %s3480_s7 = inlined_call_operand.vmem [shape: f32[2,1,64], index: 7, kind: output, shape index: {1}]   ;;  %s3481_s8 = inlined_call_operand.vmem [shape: f32[2,1,64], index: 8, kind: output, shape index: {2}]  }
   0x1 LB: > { %s2398_s28 = sadd.s32 4294967295, %s2685_s27   ;;  %p2402_p0 = scmp.ge.s32.totalorder %s2685_s27, 1  ;;  %s2685_s27 = sphi %s2739_s27, %s19_s27  }
   0x2   : > { %p267_p1 = scmp.lt.s32.totalorder %s2685_s27, 3 }
   0x4   : > { %p268_p2 = pnand %p2402_p0, %p267_p1 }
   0x5   : > { %v324_v0 = vld [vmem:[%s3474_s1] sm:$0x1] (!%p268_p2)  ;;  %v325_v1 = vld [vmem:[%s3474_s1 + $0x1] sm:$0x1] (!%p268_p2)  ;;  %vm326_vm0 = vcmask (!%p268_p2), 253952   ;;  %p307_p3 = scmp.lt.s32.totalorder (!%p268_p2), %s2398_s28, 1  ;;  %v373_v15 = vlaneseq (!%p268_p2) }
   0x6   : > { %271 = sbr.rel (%p268_p2) target bundleno = 537 (0x219), region = 44  ;;  %v327_v2 = vsel (!%p268_p2), %vm326_vm0, %v324_v0, 0.0  ;;  %v328_v3 = vsel (!%p268_p2), %vm326_vm0, %v325_v1, 0.0  ;;  %v332_v4 = vld [vmem:[%s3475_s2] sm:$0x1] (!%p268_p2)  ;;  %vm1221_vm1 = vcmask (!%p268_p2), 1041409  }
   0x7   : > { %v333_v5 = vld [vmem:[%s3475_s2 + $0x1] sm:$0x1] (!%p268_p2)  ;;  %v329_v6 = vadd.f32 (!%p268_p2), %v328_v3, %v327_v2  ;;  %v334_v7 = vsel (!%p268_p2), %vm326_vm0, %v332_v4, 0.0  ;;  %v2762_v17 = vshrl.u32 (!%p268_p2), %v373_v15, 7  ;;  %v341_v18 = vld [vmem:[%s3476_s3] sm:$0x1] (!%p268_p2) }
   0x8   : > { %v335_v8 = vsel (!%p268_p2), %vm326_vm0, %v333_v5, 0.0  ;;  %v2687_v20 = vmov (!%p268_p2), 1983009808   ;;  %v345_v23 = vld [vmem:[%s3477_s4] sm:$0x1] (!%p268_p2)  ;;  %s2688_s23 = smov (!%p268_p2), 32  }
   0x9   : > { %v336_v9 = vadd.f32 (!%p268_p2), %v335_v8, %v334_v7  ;;  %v331_v10 = vmul.f32 (!%p268_p2), 0.0034722222, %v329_v6  ;;  %v375_v19 = vsub.s32 (!%p268_p2), 0, %v2762_v17  ;;  %v482_v21 = vunpack.c.l.s4 (!%p268_p2), %v2687_v20  ;;  %s2689_s24 = smov (!%p268_p2), 64  }
   0xa   : > { %vm1376_vm2 = vcmask (!%p268_p2), 261120   ;;  %vm1383_vm3 = vcmask (!%p268_p2), 523264   ;;  %vm1388_vm4 = vcmask (!%p268_p2), 785408   ;;  %vm2693_vm5 = vmmov (!%p268_p2), 0  }
   0xb   : > { %v337_v11 = vmul.f32 (!%p268_p2), 0.0034722222, %v336_v9  ;;  %v338_v12 = vmul.f32 (!%p268_p2), %v331_v10, %v331_v10  ;;  %v483_v36 = vunpack.c.0.s8 (!%p268_p2), %v482_v21  ;;  %vm2274_vm6 = vcmask (!%p268_p2), 519168  }
   0xc   : > { %vm2271_vm7 = vcmask (!%p268_p2), 517120   ;;  %vm2282_vm8 = vcmask (!%p268_p2), 516096  }
   0xd   : > { %v339_v13 = vsub.f32 %v337_v11, %v338_v12  ;;  %s3483_s28 = smov (!%p307_p3, %s2398_s28), 1  ;;  %v2801_v50 = vsub.s32 %v483_v36, %v2762_v17 }
   0xe   : > { %s2611_s15 = smul.u32 192, %s3483_s28  ;;  %s322_s26 = scalar_lea.vmem %s3481_s8, %s3483_s28 }
   0xf   : > { %v340_v14 = vmax.f32 %v339_v13, 0.0 }
  0x10   : > { %s2770_s20 = scalar_lea.vmem %s3473_s0, %s2611_s15  ;;  %s2690_s15 = smov 96  }
  0x11   : > { %v342_v16 = vadd.f32 1e-05, %v340_v14  ;;  %v352_v24 = vld [vmem:[%s2770_s20 + $0x20] sm:$0xff]  ;;  %v354_v25 = vld [vmem:[%s2770_s20 + $0x30] sm:$0xff]  ;;  %v357_v31 = vld [vmem:[%s2770_s20 + $0x48] sm:$0xf] }
  0x12   : > { %v348_v26 = vld [vmem:[%s2770_s20] sm:$0xff]  ;;  %v350_v28 = vld [vmem:[%s2770_s20 + $0x10] sm:$0xff]  ;;  %v359_v32 = vld [vmem:[%s2770_s20 + $0x58] sm:$0xf] }
  0x13   : > { %2677 = vrsqrt.f32 %v342_v16  ;;  %v356_v29 = vld [vmem:[%s2770_s20 + $0x40] sm:$0xff]  ;;  %v358_v30 = vld [vmem:[%s2770_s20 + $0x50] sm:$0xff]  ;;  %v353_v33 = vld [vmem:[%s2770_s20 + $0x28] sm:$0xf] }
  0x14   : > { %v355_v37 = vld [vmem:[%s2770_s20 + $0x38] sm:$0xf]  ;;  %v360_v38 = vld [vmem:[%s2770_s20 + $0x60] sm:$0xff]  ;;  %v361_v39 = vld [vmem:[%s2770_s20 + $0x68] sm:$0xf] }
  0x15   : > { %v362_v40 = vld [vmem:[%s2770_s20 + $0x70] sm:$0xff] }
  0x1d   : > { %v2678_v22 = vpop.eup %2677 }
  0x1e   : > { %v344_v27 = vmul.f32 %v2678_v22, %v341_v18 }
  0x20   : > { %v346_v34 = vmul.f32 %v344_v27, %v331_v10  ;;  %v2785_v35 = vrot.slane %v344_v27, %v375_v19 }
  0x22   : > { %v347_v41 = vsub.f32 %v345_v23, %v346_v34  ;;  %v382_v42 = vmul.f32 %v2785_v35, %v352_v24  ;;  %v384_v43 = vmul.f32 %v2785_v35, %v354_v25  ;;  %v378_v44 = vmul.f32 %v2785_v35, %v348_v26 }
  0x23   : > { %v380_v45 = vmul.f32 %v2785_v35, %v350_v28  ;;  %v386_v46 = vmul.f32 %v2785_v35, %v356_v29  ;;  %v388_v47 = vmul.f32 %v2785_v35, %v358_v30  ;;  %v387_v48 = vmul.f32 %v2785_v35, %v357_v31 }
  0x24   : > { %v2798_v49 = vrot.slane %v347_v41, %v375_v19  ;;  %v389_v51 = vmul.f32 %v2785_v35, %v359_v32  ;;  %v2805_v52 = vmul.f32 %v2785_v35, %v353_v33  ;;  %v2808_v53 = vmul.f32 %v2785_v35, %v355_v37 }
  0x25   : > { %v2811_v54 = vmul.f32 %v2785_v35, %v360_v38  ;;  %v2814_v55 = vmul.f32 %v2785_v35, %v361_v39  ;;  %v2817_v56 = vmul.f32 %v2785_v35, %v362_v40 }
  0x26   : > { %v412_v57 = vadd.f32 %v2798_v49, %v382_v42  ;;  %v414_v58 = vadd.f32 %v2798_v49, %v384_v43  ;;  %v408_v59 = vadd.f32 %v2798_v49, %v378_v44  ;;  %v410_v60 = vadd.f32 %v2798_v49, %v380_v45 }
  0x27   : > { %v416_v61 = vadd.f32 %v2798_v49, %v386_v46  ;;  %v418_v62 = vadd.f32 %v2798_v49, %v388_v47  ;;  %v2826_v63 = vadd.f32 %v2798_v49, %v387_v48  ;;  %v2829_v0 = vadd.f32 %v2798_v49, %v389_v51 }
  0x28   : > { %v436_v1 = vmax.f32 %v412_v57, 0.0  ;;  %v438_v2 = vmax.f32 %v414_v58, 0.0  ;;  %v432_v3 = vmax.f32 %v408_v59, 0.0  ;;  %v434_v4 = vmax.f32 %v410_v60, 0.0 }
  0x29   : > { %v2831_v5 = vmax.f32 %v416_v61, 0.0  ;;  %v2833_v6 = vmax.f32 %v418_v62, 0.0  ;;  %v441_v7 = vmax.f32 %v2826_v63, 0.0  ;;  %v443_v8 = vmax.f32 %v2829_v0, 0.0  ;;  %v363_v62 = vld [vmem:[%s2770_s20 + $0x78] sm:$0xf] }
  0x2a   : > { %v537_v9 = vrot.slane %v436_v1, %v2801_v50  ;;  %v555_v10 = vcombine.high %v438_v2, %v438_v2  ;;  %v562_v11 = vrot.slane %v438_v2, %v2801_v50  ;;  %v530_v12 = vcombine.high %v436_v1, %v436_v1 }
  0x2b   : > { %v480_v13 = vcombine.high %v432_v3, %v432_v3  ;;  %v2840_v14 = vrot.slane %v432_v3, %v2801_v50  ;;  %v505_v15 = vcombine.high %v434_v4, %v434_v4  ;;  %v2843_v16 = vrot.slane %v434_v4, %v2801_v50 }
  0x2c   : > { %v545_v18 = vcombine.high %v537_v9, %v537_v9  ;;  %v570_v19 = vcombine.high %v562_v11, %v562_v11  ;;  %v2418_v20 = vrot.slane %v537_v9, 9  ;;  %v2424_v21 = vrot.slane %v562_v11, 9 }
  0x2d   : > { %v2846_v22 = vrot.slane %v480_v13, %v2801_v50  ;;  %v495_v23 = vcombine.high %v2840_v14, %v2840_v14  ;;  %v2851_v24 = vrot.slane %v505_v15, %v2801_v50  ;;  %v520_v25 = vcombine.high %v2843_v16, %v2843_v16 }
  0x2e   : > { %v2419_v26 = vrot.slane %v545_v18, 9  ;;  %v2425_v27 = vrot.slane %v570_v19, 9  ;;  %v1080_v28 = vmax.f32 %v537_v9, %v2418_v20  ;;  %v1086_v29 = vmax.f32 %v562_v11, %v2424_v21 }
  0x2f   : > { %v2407_v30 = vrot.slane %v495_v23, 9  ;;  %v2408_v31 = vrot.slane %v2846_v22, 9  ;;  %v2413_v32 = vrot.slane %v520_v25, 9  ;;  %v2414_v33 = vrot.slane %v2851_v24, 9 }
  0x30   : > { %v1081_v34 = vmax.f32 %v545_v18, %v2419_v26  ;;  %v1087_v36 = vmax.f32 %v570_v19, %v2425_v27  ;;  %v1146_v37 = vmax.f32 %v1080_v28, %v1086_v29  ;;  %v587_v38 = vrot.slane %v2831_v5, %v2801_v50 }
  0x31   : > { %v1069_v39 = vmax.f32 %v495_v23, %v2407_v30  ;;  %v1070_v40 = vmax.f32 %v2846_v22, %v2408_v31  ;;  %v1075_v41 = vmax.f32 %v520_v25, %v2413_v32  ;;  %v1076_v42 = vmax.f32 %v2851_v24, %v2414_v33 }
  0x32   : > { %v1147_v43 = vmax.f32 %v1081_v34, %v1087_v36  ;;  %v1182_v44 = vpack.c.bf16 %v1146_v37, %v1146_v37  ;;  %v595_v45 = vcombine.high %v587_v38, %v587_v38  ;;  %v612_v46 = vrot.slane %v2833_v6, %v2801_v50 }
  0x33   : > { %v1141_v47 = vmax.f32 %v1069_v39, %v1075_v41  ;;  %v1142_v48 = vmax.f32 %v1070_v40, %v1076_v42  ;;  %v2430_v51 = vrot.slane %v587_v38, 9  ;;  %v2864_v57 = vrot.slane %v530_v12, %v2801_v50 }
  0x34   : > { %v1183_v58 = vpack.c.bf16 %v1147_v43, %v1147_v43  ;;  %v1218_v59 = vunpack.c.l.b16 %v1182_v44  ;;  %v620_v60 = vcombine.high %v612_v46, %v612_v46  ;;  %v2431_v61 = vrot.slane %v595_v45, 9 }
  0x35   : > { %v1177_v1 = vpack.c.bf16 %v1141_v47, %v1141_v47  ;;  %v1178_v2 = vpack.c.bf16 %v1142_v48, %v1142_v48  ;;  %v2436_v3 = vrot.slane %v612_v46, 9  ;;  %v1092_v4 = vmax.f32 %v587_v38, %v2430_v51 }
  0x36   : > { %v1219_v9 = vunpack.c.l.b16 %v1183_v58  ;;  %v2437_v11 = vrot.slane %v620_v60, 9  ;;  %v1093_v13 = vmax.f32 %v595_v45, %v2431_v61  ;;  %v2868_v15 = vrot.slane %v555_v10, %v2801_v50 }
  0x37   : > { %v2870_v18 = vunpack.c.l.b16 %v1177_v1  ;;  %v2872_v19 = vunpack.c.l.b16 %v1178_v2  ;;  %v1098_v12 = vmax.f32 %v612_v46, %v2436_v3  ;;  %v2420_v20 = vrot.slane %v2864_v57, 9 }
  0x38   : > { %v1223_v21 = vrot.slane %v1219_v9, 7  ;;  %v1099_v23 = vmax.f32 %v620_v60, %v2437_v11  ;;  %v2426_v25 = vrot.slane %v2868_v15, 9  ;;  %v603_v26 = vrot.slane %v441_v7, %v2801_v50 }
  0x39   : > { %v1231_v27 = vrot.slane %v2872_v19, 7  ;;  %v1152_v28 = vmax.f32 %v1092_v4, %v1098_v12  ;;  %v1082_v10 = vmax.f32 %v2864_v57, %v2420_v20  ;;  %v393_v29 = vmul.f32 %v2785_v35, %v363_v62 }
  0x3a   : > { %v1224_v30 = vsel %vm1221_vm1, %v1223_v21, %v1218_v59  ;;  %v1153_v31 = vmax.f32 %v1093_v13, %v1099_v23  ;;  %v1088_v32 = vmax.f32 %v2868_v15, %v2426_v25  ;;  %v604_v33 = vcombine.high %v603_v26, %v603_v26 }
  0x3b   : > { %v2884_v34 = vpack.c.b16 %v1224_v30, %v1224_v30  ;;  %v1232_v36 = vsel %vm1221_vm1, %v1231_v27, %v2870_v18  ;;  %v1188_v63 = vpack.c.bf16 %v1152_v28, %v1152_v28  ;;  %v628_v7 = vrot.slane %v443_v8, %v2801_v50 }
  0x3c   : > { %v1235_v37 = vpack.c.b16 %v1232_v36, %v1232_v36  ;;  %v1189_v38 = vpack.c.bf16 %v1153_v31, %v1153_v31  ;;  %v1148_v39 = vmax.f32 %v1082_v10, %v1088_v32  ;;  %v2434_v40 = vrot.slane %v603_v26, 9 }
  0x3d   : > { %1286 = vrot.lane.b32.xlu1 %v2884_v34, %s2688_s23  ;;  %v1281_v41 = vunpack.c.l.b16 %v1188_v63  ;;  %v629_v42 = vcombine.high %v628_v7, %v628_v7  ;;  %v2435_v43 = vrot.slane %v604_v33, 9  ;;  %v2440_v44 = vrot.slane %v628_v7, 9 }
  0x3e   : > { %1237 = vrot.lane.b32.xlu0 %v1235_v37, %s2688_s23  ;;  %v2894_v45 = vunpack.c.l.b16 %v1189_v38  ;;  %v1184_v46 = vpack.c.bf16 %v1148_v39, %v1148_v39  ;;  %v1096_v47 = vmax.f32 %v603_v26, %v2434_v40  ;;  %v413_v0 = vadd.f32 %v2798_v49, %v2805_v52 }
  0x3f   : > { %v2441_v8 = vrot.slane %v629_v42, 9  ;;  %v1097_v48 = vmax.f32 %v604_v33, %v2435_v43  ;;  %v1102_v51 = vmax.f32 %v628_v7, %v2440_v44  ;;  %v415_v58 = vadd.f32 %v2798_v49, %v2808_v53 }
  0x40   : > { %v1283_v59 = vrot.slane %v2894_v45, 7  ;;  %v2901_v60 = vunpack.c.l.b16 %v1184_v46  ;;  %v437_v61 = vmax.f32 %v413_v0, 0.0  ;;  %v420_v62 = vadd.f32 %v2798_v49, %v2811_v54 }
  0x41   : > { %v1103_v1 = vmax.f32 %v629_v42, %v2441_v8  ;;  %v1156_v2 = vmax.f32 %v1096_v47, %v1102_v51  ;;  %v439_v3 = vmax.f32 %v415_v58, 0.0  ;;  %v421_v52 = vadd.f32 %v2798_v49, %v2814_v55 }
  0x42   : > { %v1284_v4 = vsel %vm1221_vm1, %v1283_v59, %v1281_v41  ;;  %v1233_v11 = vrot.slane %v2901_v60, 7  ;;  %v553_v53 = vrot.slane %v437_v61, %v2801_v50  ;;  %v422_v13 = vadd.f32 %v2798_v49, %v2817_v56 }
  0x43   : > { %v2912_v12 = vpack.c.b16 %v1284_v4, %v1284_v4  ;;  %v1157_v20 = vmax.f32 %v1097_v48, %v1103_v1  ;;  %v1192_v21 = vpack.c.bf16 %v1156_v2, %v1156_v2  ;;  %v578_v54 = vrot.slane %v439_v3, %v2801_v50 }
  0x44   : > { %v1234_v23 = vsel %vm1221_vm1, %v1233_v11, %v1219_v9  ;;  %v554_v25 = vcombine.high %v553_v53, %v553_v53  ;;  %v2422_v26 = vrot.slane %v553_v53, 9  ;;  %v423_v55 = vadd.f32 %v2798_v49, %v393_v29 }
  0x45   : > { %1288 = vrot.lane.b32.xlu1 %v2912_v12, %s2688_s23  ;;  %v2919_v27 = vpack.c.b16 %v1234_v23, %v1234_v23  ;;  %v1193_v28 = vpack.c.bf16 %v1157_v20, %v1157_v20  ;;  %v2921_v10 = vunpack.c.l.b16 %v1192_v21  ;;  %v579_v56 = vcombine.high %v578_v54, %v578_v54 }
  0x46   : > { %v2423_v30 = vrot.slane %v554_v25, 9  ;;  %v2428_v31 = vrot.slane %v578_v54, 9  ;;  %v1084_v32 = vmax.f32 %v553_v53, %v2422_v26  ;;  %v444_v33 = vmax.f32 %v420_v62, 0.0 }
  0x47   : > { %1239 = vrot.lane.b32.xlu0 %v2919_v27, %s2688_s23  ;;  %v1314_v9 = vunpack.c.l.b16 %v1193_v28  ;;  %v2429_v36 = vrot.slane %v579_v56, 9  ;;  %v445_v63 = vmax.f32 %v421_v52, 0.0  ;;  %v446_v29 = vmax.f32 %v422_v13, 0.0 }
  0x48   : > { %v1085_v7 = vmax.f32 %v554_v25, %v2423_v30  ;;  %v1090_v37 = vmax.f32 %v578_v54, %v2428_v31  ;;  %v447_v38 = vmax.f32 %v423_v55, 0.0  ;;  %v630_v39 = vcombine.high %v444_v33, %v444_v33 }
  0x49   : > { %v1315_v40 = vrot.slane %v1314_v9, 7  ;;  %v1091_v41 = vmax.f32 %v579_v56, %v2429_v36  ;;  %v653_v42 = vrot.slane %v445_v63, %v2801_v50  ;;  %v655_v43 = vcombine.high %v446_v29, %v446_v29 }
  0x4a   : > { %v1150_v44 = vmax.f32 %v1084_v32, %v1090_v37  ;;  %v2927_v46 = vrot.slane %v630_v39, %v2801_v50  ;;  %v678_v47 = vrot.slane %v447_v38, %v2801_v50  ;;  %v580_v0 = vcombine.high %v2831_v5, %v2831_v5 }
  0x4b   : > { %v1316_v8 = vsel %vm1221_vm1, %v1315_v40, %v2921_v10  ;;  %v1151_v48 = vmax.f32 %v1085_v7, %v1091_v41  ;;  %v2935_v51 = vrot.slane %v655_v43, %v2801_v50  ;;  %v2446_v58 = vrot.slane %v653_v42, 9 }
  0x4c   : > { %v2937_v59 = vpack.c.b16 %v1316_v8, %v1316_v8  ;;  %v1186_v61 = vpack.c.bf16 %v1150_v44, %v1150_v44  ;;  %v646_v62 = vcombine.high %v2927_v46, %v2927_v46  ;;  %v2452_v1 = vrot.slane %v678_v47, 9 }
  0x4d   : > { %v1187_v2 = vpack.c.bf16 %v1151_v48, %v1151_v48  ;;  %v671_v3 = vcombine.high %v2935_v51, %v2935_v51  ;;  %v1108_v5 = vmax.f32 %v653_v42, %v2446_v58  ;;  %v594_v52 = vrot.slane %v580_v0, %v2801_v50 }
  0x4e   : > { %1320 = vrot.lane.b32.xlu1 %v2937_v59, %s2688_s23  ;;  %v2946_v4 = vunpack.c.l.b16 %v1186_v61  ;;  %v2445_v11 = vrot.slane %v646_v62, 9  ;;  %v1114_v53 = vmax.f32 %v678_v47, %v2452_v1  ;;  %v605_v13 = vcombine.high %v2833_v6, %v2833_v6 }
  0x4f   : > { %v1272_v20 = vunpack.c.l.b16 %v1187_v2  ;;  %v2451_v21 = vrot.slane %v671_v3, 9  ;;  %v596_v54 = vcombine.high %v594_v52, %v594_v52  ;;  %v1310_v23 = vrot.slane %v2921_v10, 7 }
  0x50   : > { %v1107_v25 = vmax.f32 %v646_v62, %v2445_v11  ;;  %v1162_v26 = vmax.f32 %v1108_v5, %v1114_v53  ;;  %v619_v55 = vrot.slane %v605_v13, %v2801_v50  ;;  %v2432_v28 = vrot.slane %v594_v52, 9 }
  0x51   : > { %v1275_v56 = vrot.slane %v1272_v20, 7  ;;  %v1113_v30 = vmax.f32 %v671_v3, %v2451_v21  ;;  %v2433_v31 = vrot.slane %v596_v54, 9  ;;  %v637_v32 = vrot.slane %v444_v33, %v2801_v50 }
  0x52   : > { %v1198_v9 = vpack.c.bf16 %v1162_v26, %v1162_v26  ;;  %v621_v36 = vcombine.high %v619_v55, %v619_v55  ;;  %v2438_v63 = vrot.slane %v619_v55, 9  ;;  %v1094_v7 = vmax.f32 %v594_v52, %v2432_v28 }
  0x53   : > { %v1276_v6 = vsel %vm1221_vm1, %v1275_v56, %v2946_v4  ;;  %v1161_v37 = vmax.f32 %v1107_v25, %v1113_v30  ;;  %v1095_v38 = vmax.f32 %v596_v54, %v2433_v31  ;;  %v645_v10 = vcombine.high %v637_v32, %v637_v32 }
  0x54   : > { %v2955_v39 = vpack.c.b16 %v1276_v6, %v1276_v6  ;;  %v2957_v40 = vunpack.c.l.b16 %v1198_v9  ;;  %v2439_v41 = vrot.slane %v621_v36, 9  ;;  %v1100_v43 = vmax.f32 %v619_v55, %v2438_v63 }
  0x55   : > { %v1197_v44 = vpack.c.bf16 %v1161_v37, %v1161_v37  ;;  %v662_v0 = vrot.slane %v446_v29, %v2801_v50  ;;  %v2442_v33 = vrot.slane %v637_v32, 9  ;;  %v2443_v8 = vrot.slane %v645_v10, 9 }
  0x56   : > { %1318 = vrot.lane.b32.xlu0 %v2955_v39, %s2688_s23  ;;  %v1349_v48 = vrot.slane %v2957_v40, 7  ;;  %v1101_v58 = vmax.f32 %v621_v36, %v2439_v41  ;;  %v1154_v61 = vmax.f32 %v1094_v7, %v1100_v43  ;;  %v654_v62 = vcombine.high %v653_v42, %v653_v42 }
  0x57   : > { %v2963_v1 = vunpack.c.l.b16 %v1197_v44  ;;  %v670_v2 = vcombine.high %v662_v0, %v662_v0  ;;  %v2448_v3 = vrot.slane %v662_v0, 9  ;;  %v1104_v5 = vmax.f32 %v637_v32, %v2442_v33  ;;  %v351_v44 = vld [vmem:[%s2770_s20 + $0x18] sm:$0xf] }
  0x58   : > { %v1155_v52 = vmax.f32 %v1095_v38, %v1101_v58  ;;  %v1190_v11 = vpack.c.bf16 %v1154_v61, %v1154_v61  ;;  %v1105_v53 = vmax.f32 %v645_v10, %v2443_v8  ;;  %v679_v13 = vcombine.high %v678_v47, %v678_v47  ;;  %v349_v38 = vld [vmem:[%s2770_s20 + $0x8] sm:$0xf] }
  0x59   : > { %v1350_v29 = vsel %vm1221_vm1, %v1349_v48, %v2963_v1  ;;  %v2449_v20 = vrot.slane %v670_v2, 9  ;;  %v1110_v21 = vmax.f32 %v662_v0, %v2448_v3  ;;  %v2447_v54 = vrot.slane %v654_v62, 9 }
  0x5a   : > { %v2967_v25 = vpack.c.b16 %v1350_v29, %v1350_v29  ;;  %v1191_v26 = vpack.c.bf16 %v1155_v52, %v1155_v52  ;;  %v2969_v42 = vunpack.c.l.b16 %v1190_v11  ;;  %v2453_v55 = vrot.slane %v679_v13, 9 }
  0x5b   : > { %v1111_v28 = vmax.f32 %v670_v2, %v2449_v20  ;;  %v1158_v56 = vmax.f32 %v1104_v5, %v1110_v21  ;;  %v1109_v30 = vmax.f32 %v654_v62, %v2447_v54  ;;  %v546_v47 = vcombine.high %v2864_v57, %v2864_v57 }
  0x5c   : > { %1354 = vrot.lane.b32.xlu1 %v2967_v25, %s2688_s23  ;;  %v2975_v31 = vunpack.c.l.b16 %v1191_v26  ;;  %v1292_v32 = vrot.slane %v2969_v42, 7  ;;  %v1115_v9 = vmax.f32 %v679_v13, %v2453_v55  ;;  %v571_v36 = vcombine.high %v2868_v15, %v2868_v15 }
  0x5d   : > { %v1159_v63 = vmax.f32 %v1105_v53, %v1111_v28  ;;  %v1194_v7 = vpack.c.bf16 %v1158_v56, %v1158_v56  ;;  %v2421_v6 = vrot.slane %v546_v47, 9  ;;  %v1261_v37 = vrot.slane %v2946_v4, 7 }
  0x5e   : > { %v1311_v57 = vsel %vm1221_vm1, %v1310_v23, %v2975_v31  ;;  %v1293_v10 = vsel %vm1221_vm1, %v1292_v32, %v2894_v45  ;;  %v1163_v41 = vmax.f32 %v1109_v30, %v1115_v9  ;;  %v2427_v43 = vrot.slane %v571_v36, 9 }
  0x5f   : > { %v2987_v0 = vpack.c.b16 %v1311_v57, %v1311_v57  ;;  %v2989_v33 = vpack.c.b16 %v1293_v10, %v1293_v10  ;;  %v1195_v15 = vpack.c.bf16 %v1159_v63, %v1159_v63  ;;  %v1324_v8 = vunpack.c.l.b16 %v1194_v7 }
  0x60   : > { %v1199_v48 = vpack.c.bf16 %v1163_v41, %v1163_v41  ;;  %v1083_v58 = vmax.f32 %v546_v47, %v2421_v6  ;;  %v1089_v61 = vmax.f32 %v571_v36, %v2427_v43  ;;  %v379_v4 = vmul.f32 %v2785_v35, %v349_v38  ;;  %v364_v6 = vld [vmem:[%s2770_s20 + $0x80] sm:$0xff] }
  0x61   : > { %1352 = vrot.lane.b32.xlu0 %v2987_v0, %s2688_s23  ;;  %1297 = vrot.lane.b32.xlu1 %v2989_v33, %s2689_s24  ;;  %v2996_v45 = vunpack.c.l.b16 %v1195_v15  ;;  %v381_v23 = vmul.f32 %v2785_v35, %v351_v44  ;;  %v496_v62 = vcombine.high %v2846_v22, %v2846_v22  ;;  %v521_v2 = vcombine.high %v2851_v24, %v2851_v24  ;;  %v366_v15 = vld [vmem:[%s2770_s20 + $0x90] sm:$0xff] }
  0x62   : > { %v1357_v3 = vunpack.c.l.b16 %v1199_v48  ;;  %v1149_v5 = vmax.f32 %v1083_v58, %v1089_v61  ;;  %v409_v52 = vadd.f32 %v2798_v49, %v379_v4  ;;  %v2444_v11 = vrot.slane %v2927_v46, 9  ;;  %v370_v61 = vld [vmem:[%s2770_s20 + $0xb0] sm:$0xff]  ;;  %v2628_v4 = vld [vmem:[%s3478_s5] sm:$0xff]  }
  0x63   : > { %v1326_v53 = vrot.slane %v2996_v45, 7  ;;  %v411_v13 = vadd.f32 %v2798_v49, %v381_v23  ;;  %v2409_v29 = vrot.slane %v496_v62, 9  ;;  %v2415_v20 = vrot.slane %v521_v2, 9 }
  0x64   : > { %v1358_v21 = vrot.slane %v1357_v3, 7  ;;  %v1185_v54 = vpack.c.bf16 %v1149_v5, %v1149_v5  ;;  %v433_v26 = vmax.f32 %v409_v52, 0.0  ;;  %v2450_v22 = vrot.slane %v2935_v51, 9 }
  0x65   : > { %1295 = vrot.lane.b32.xlu0 %v2919_v27, %s2689_s24  ;;  %v1327_v24 = vsel %vm1221_vm1, %v1326_v53, %v1324_v8  ;;  %v435_v55 = vmax.f32 %v411_v13, 0.0  ;;  %v1071_v28 = vmax.f32 %v496_v62, %v2409_v29  ;;  %v1077_v56 = vmax.f32 %v521_v2, %v2415_v20  ;;  %v368_v8 = vld [vmem:[%s2770_s20 + $0xa0] sm:$0xff] }
  0x66   : > { %v3011_v30 = vpack.c.b16 %v1327_v24, %v1327_v24  ;;  %v1359_v47 = vsel %vm1221_vm1, %v1358_v21, %v2957_v40  ;;  %v1244_v32 = vunpack.c.l.b16 %v1185_v54  ;;  %v3016_v9 = vrot.slane %v433_v26, %v2801_v50 }
  0x67   : > { %v3018_v36 = vpack.c.b16 %v1359_v47, %v1359_v47  ;;  %v3021_v27 = vrot.slane %v435_v55, %v2801_v50  ;;  %v1143_v63 = vmax.f32 %v1071_v28, %v1077_v56  ;;  %v1106_v7 = vmax.f32 %v2927_v46, %v2444_v11  ;;  %v2629_v28 = vld [vmem:[%s3478_s5 + $0xc0] sm:$0xff]   ;;  %v2630_v56 = vld [vmem:[%s3478_s5 + $0x48] sm:$0xff]  }
  0x68   : > { %1331 = vrot.lane.b32.xlu1 %v3011_v30, %s2689_s24  ;;  %v1262_v40 = vsel %vm1221_vm1, %v1261_v37, %v1244_v32  ;;  %v2410_v38 = vrot.slane %v3016_v9, 9  ;;  %v1112_v57 = vmax.f32 %v2935_v51, %v2450_v22  ;;  %v1247_v10 = vrot.slane %v1244_v32, 7  ;;  %v2631_v47 = vld [vmem:[%s3478_s5 + $0x80] sm:$0xff]   ;;  %2556 = vmatprep.subr.bf16.mxu1 %v2629_v28 }
  0x69   : > { %1329 = vrot.lane.b32.xlu0 %v2912_v12, %s2689_s24  ;;  %v3032_v41 = vpack.c.b16 %v1262_v40, %v1262_v40  ;;  %v2416_v43 = vrot.slane %v3021_v27, 9  ;;  %v1179_v46 = vpack.c.bf16 %v1143_v63, %v1143_v63  ;;  %v1301_v44 = vrot.slane %v2975_v31, 7  ;;  %v2627_v12 = vld [vmem:[%s3478_s5 + $0x40] sm:$0xff]   ;;  %2557 = vmatpush3.bf16.msra.mxu1 %v2631_v47 }
  0x6a   : > { %v1072_v37 = vmax.f32 %v3016_v9, %v2410_v38  ;;  %v1160_v48 = vmax.f32 %v1106_v7, %v1112_v57  ;;  %v1248_v51 = vsel %vm1221_vm1, %v1247_v10, %v2901_v60  ;;  %v394_v58 = vmul.f32 %v2785_v35, %v364_v6  ;;  %v365_v60 = vld [vmem:[%s2770_s20 + $0x88] sm:$0xf]  ;;  %2534 = vmatprep.subr.bf16.mxu0 %v2627_v12 }
  0x6b   : > { %v1078_v31 = vmax.f32 %v3021_v27, %v2416_v43  ;;  %v1243_v23 = vunpack.c.l.b16 %v1179_v46  ;;  %v3050_v62 = vpack.c.b16 %v1248_v51, %v1248_v51  ;;  %v1302_v2 = vsel %vm1221_vm1, %v1301_v44, %v2969_v42  ;;  %2535 = vmatpush3.bf16.msra.mxu0 %v2628_v4  ;;  %v2632_v6 = vld [vmem:[%s3478_s5 + $0x8] sm:$0xff]  }
  0x6c   : > { %1363 = vrot.lane.b32.xlu1 %v3018_v36, %s2689_s24  ;;  %v1196_v3 = vpack.c.bf16 %v1160_v48, %v1160_v48  ;;  %v3057_v5 = vpack.c.b16 %v1302_v2, %v1302_v2  ;;  %v396_v52 = vmul.f32 %v2785_v35, %v366_v15  ;;  %v424_v11 = vadd.f32 %v2798_v49, %v394_v58  ;;  %v2633_v58 = vld [vmem:[%s3478_s5 + $0xc8] sm:$0xff]  }
  0x6d   : > { %1361 = vrot.lane.b32.xlu0 %v2937_v59, %s2689_s24  ;;  %v1144_v53 = vmax.f32 %v1072_v37, %v1078_v31  ;;  %v1245_v13 = vrot.slane %v1243_v23, 7  ;;  %v398_v29 = vmul.f32 %v2785_v35, %v368_v8  ;;  %v400_v42 = vmul.f32 %v2785_v35, %v370_v61  ;;  %2536 = vmatprep.subr.bf16.mxu0 %v2630_v56  ;;  %v2635_v61 = vld [vmem:[%s3478_s5 + $0x88] sm:$0xff]  }
  0x6e   : > { %v3065_v20 = vunpack.c.l.b16 %v1196_v3  ;;  %v426_v21 = vadd.f32 %v2798_v49, %v396_v52  ;;  %v3068_v54 = vmax.f32 %v424_v11, 0.0  ;;  %v3071_v26 = vmul.f32 %v2785_v35, %v365_v60  ;;  %v2636_v60 = vld [vmem:[%s3478_s5 + $0x10] sm:$0xff]   ;;  %2558 = vmatprep.subr.bf16.mxu1 %v2633_v58 }
  0x6f   : > { %v1180_v22 = vpack.c.bf16 %v1144_v53, %v1144_v53  ;;  %v3075_v59 = vsel %vm1221_vm1, %v1245_v13, %v2872_v19  ;;  %v428_v24 = vadd.f32 %v2798_v49, %v398_v29  ;;  %v430_v55 = vadd.f32 %v2798_v49, %v400_v42  ;;  %2537 = vmatpush3.bf16.msra.mxu0 %v2632_v6  ;;  %v2638_v6 = vld [vmem:[%s3478_s5 + $0x58] sm:$0xff]  }
  0x70   : > { %1267 = vrot.lane.b32.xlu1 %v3032_v41, %s2690_s15  ;;  %v1335_v19 = vrot.slane %v3065_v20, 7  ;;  %v1249_v32 = vpack.c.b16 %v3075_v59, %v3075_v59  ;;  %v3093_v63 = vmax.f32 %v426_v21, 0.0  ;;  %v687_v7 = vrot.slane %v3068_v54, %v2801_v50  ;;  %2559 = vmatpush3.bf16.msra.mxu1 %v2635_v61 }
  0x71   : > { %v3100_v40 = vunpack.c.l.b16 %v1180_v22  ;;  %v452_v38 = vmax.f32 %v428_v24, 0.0  ;;  %v454_v57 = vmax.f32 %v430_v55, 0.0  ;;  %v680_v10 = vcombine.high %v3068_v54, %v3068_v54  ;;  %v2637_v55 = vld [vmem:[%s3478_s5 + $0xd0] sm:$0xff]  }
  0x72   : > { %v1336_v43 = vsel %vm1221_vm1, %v1335_v19, %v2996_v45  ;;  %v695_v46 = vcombine.high %v687_v7, %v687_v7  ;;  %v712_v44 = vrot.slane %v3093_v63, %v2801_v50  ;;  %v2454_v15 = vrot.slane %v687_v7, 9  ;;  %v2634_v45 = vld [vmem:[%s3478_s5 + $0x50] sm:$0xff]   ;;  %2560 = vmatprep.subr.bf16.mxu1 %v2637_v55 }
  0x73   : > { %v1259_v8 = vrot.slane %v3100_v40, 7  ;;  %v3109_v37 = vpack.c.b16 %v1336_v43, %v1336_v43  ;;  %v730_v48 = vcombine.high %v452_v38, %v452_v38  ;;  %v3112_v51 = vrot.slane %v452_v38, %v2801_v50  ;;  %2538 = vmatprep.subr.bf16.mxu0 %v2634_v45  ;;  %v2639_v38 = vld [vmem:[%s3478_s5 + $0x90] sm:$0xff]  }
  0x74   : > { %v720_v12 = vcombine.high %v712_v44, %v712_v44  ;;  %v2455_v4 = vrot.slane %v695_v46, 9  ;;  %v2460_v31 = vrot.slane %v712_v44, 9  ;;  %v1116_v2 = vmax.f32 %v687_v7, %v2454_v15  ;;  %2539 = vmatpush3.bf16.msra.mxu0 %v2636_v60  ;;  %v367_v7 = vld [vmem:[%s2770_s20 + $0x98] sm:$0xf]  ;;  %2561 = vmatpush3.bf16.msra.mxu1 %v2639_v38 }
  0x75   : > { %v1260_v3 = vsel %vm1221_vm1, %v1259_v8, %v1243_v23  ;;  %1340 = vrot.lane.b32.xlu1 %v3109_v37, %s2690_s15  ;;  %v3130_v52 = vrot.slane %v730_v48, %v2801_v50  ;;  %v745_v11 = vcombine.high %v3112_v51, %v3112_v51  ;;  %v755_v53 = vcombine.high %v454_v57, %v454_v57 }
  0x76   : > { %v1263_v13 = vpack.c.b16 %v1260_v3, %v1260_v3  ;;  %v2461_v29 = vrot.slane %v720_v12, 9  ;;  %v1117_v42 = vmax.f32 %v695_v46, %v2455_v4  ;;  %v1122_v21 = vmax.f32 %v712_v44, %v2460_v31  ;;  %v2640_v46 = vld [vmem:[%s3478_s5 + $0x18] sm:$0xff]   ;;  %2540 = vmatprep.subr.bf16.mxu0 %v2638_v6  ;;  %v2645_v6 = vld [vmem:[%s3478_s5 + $0xe0] sm:$0xff]  }
  0x77   : > { %v3135_v54 = vrot.slane %v454_v57, %v2801_v50  ;;  %v3138_v23 = vrot.slane %v755_v53, %v2801_v50  ;;  %v2467_v22 = vrot.slane %v745_v11, 9  ;;  %v2468_v24 = vrot.slane %v3130_v52, 9  ;;  %v2641_v4 = vld [vmem:[%s3478_s5 + $0xd8] sm:$0xff]  }
  0x78   : > { %1265 = vrot.lane.b32.xlu0 %v1263_v13, %s2690_s15  ;;  %v1123_v28 = vmax.f32 %v720_v12, %v2461_v29  ;;  %v1164_v56 = vmax.f32 %v1116_v2, %v1122_v21  ;;  %v694_v47 = vrot.slane %v680_v10, %v2801_v50  ;;  %v705_v19 = vcombine.high %v3093_v63, %v3093_v63 }
  0x79   : > { %1253 = vrot.lane.b32.xlu1 %v3050_v62, %s2689_s24  ;;  %v770_v57 = vcombine.high %v3135_v54, %v3135_v54  ;;  %v2474_v10 = vrot.slane %v3138_v23, 9  ;;  %v1129_v43 = vmax.f32 %v745_v11, %v2467_v22  ;;  %v1130_v63 = vmax.f32 %v3130_v52, %v2468_v24  ;;  %2541 = vmatpush3.bf16.msra.mxu0 %v2640_v46  ;;  %v2642_v11 = vld [vmem:[%s3478_s5 + $0x60] sm:$0xff]  }
  0x7a   : > { %v1165_v44 = vmax.f32 %v1117_v42, %v1123_v28  ;;  %v1200_v15 = vpack.c.bf16 %v1164_v56, %v1164_v56  ;;  %v719_v8 = vrot.slane %v705_v19, %v2801_v50  ;;  %v2456_v48 = vrot.slane %v694_v47, 9  ;;  %2562 = vmatprep.subr.bf16.mxu1 %v2641_v4  ;;  %v2644_v42 = vld [vmem:[%s3478_s5 + $0x20] sm:$0xff]   ;;  %2542 = vmatprep.subr.bf16.mxu0 %v2642_v11 }
  0x7b   : > { %v2473_v58 = vrot.slane %v770_v57, 9  ;;  %v1136_v45 = vmax.f32 %v3138_v23, %v2474_v10  ;;  %v397_v61 = vmul.f32 %v2785_v35, %v367_v7  ;;  %v425_v12 = vadd.f32 %v2798_v49, %v3071_v26  ;;  %v2643_v26 = vld [vmem:[%s3478_s5 + $0x98] sm:$0xff]  }
  0x7c   : > { %1338 = vrot.lane.b32.xlu0 %v2989_v33, %s2690_s15  ;;  %v1201_v31 = vpack.c.bf16 %v1165_v44, %v1165_v44  ;;  %v1367_v2 = vunpack.c.l.b16 %v1200_v15  ;;  %v2462_v60 = vrot.slane %v719_v8, 9  ;;  %v1118_v3 = vmax.f32 %v694_v47, %v2456_v48  ;;  %2563 = vmatpush3.bf16.msra.mxu1 %v2643_v26  ;;  %v2650_v26 = vld [vmem:[%s3478_s5 + $0x70] sm:$0xff]  }
  0x7d   : > { %1306 = vrot.lane.b32.xlu1 %v3057_v5, %s2690_s15  ;;  %v1135_v53 = vmax.f32 %v770_v57, %v2473_v58  ;;  %v1172_v13 = vmax.f32 %v1130_v63, %v1136_v45  ;;  %v427_v29 = vadd.f32 %v2798_v49, %v397_v61  ;;  %v449_v33 = vmax.f32 %v425_v12, 0.0  ;;  %2543 = vmatpush3.bf16.msra.mxu0 %v2644_v42  ;;  %v2647_v63 = vld [vmem:[%s3478_s5 + $0xa0] sm:$0xff]  }
  0x7e   : > { %v3186_v21 = vunpack.c.l.b16 %v1201_v31  ;;  %v1124_v22 = vmax.f32 %v719_v8, %v2462_v60  ;;  %v696_v24 = vcombine.high %v694_v47, %v694_v47  ;;  %v721_v55 = vcombine.high %v719_v8, %v719_v8  ;;  %2564 = vmatprep.subr.bf16.mxu1 %v2645_v6  ;;  %v2649_v60 = vld [vmem:[%s3478_s5 + $0xe8] sm:$0xff]  }
  0x7f   : > { %v1171_v28 = vmax.f32 %v1129_v43, %v1135_v53  ;;  %v1208_v56 = vpack.c.bf16 %v1172_v13, %v1172_v13  ;;  %v451_v19 = vmax.f32 %v427_v29, 0.0  ;;  %v703_v7 = vrot.slane %v449_v33, %v2801_v50  ;;  %v2646_v43 = vld [vmem:[%s3478_s5 + $0x68] sm:$0xff]   ;;  %v2652_v13 = vld [vmem:[%s3478_s5 + $0x30] sm:$0xff]  }
  0x80   : > { %1251 = vrot.lane.b32.xlu0 %v1249_v32, %s2689_s24  ;;  %v1369_v47 = vrot.slane %v3186_v21, 7  ;;  %v1166_v38 = vmax.f32 %v1118_v3, %v1124_v22  ;;  %v2457_v57 = vrot.slane %v696_v24, 9  ;;  %v2463_v10 = vrot.slane %v721_v55, 9  ;;  %v2648_v32 = vld [vmem:[%s3478_s5 + $0x28] sm:$0xff]   ;;  %2544 = vmatprep.subr.bf16.mxu0 %v2646_v43  ;;  %v2655_v43 = vld [vmem:[%s3478_s5 + $0xb0] sm:$0xff]  }
  0x81   : > { %v1207_v46 = vpack.c.bf16 %v1171_v28, %v1171_v28  ;;  %v3203_v44 = vunpack.c.l.b16 %v1208_v56  ;;  %v728_v15 = vrot.slane %v451_v19, %v2801_v50  ;;  %v2458_v59 = vrot.slane %v703_v7, 9  ;;  %2565 = vmatpush3.bf16.msra.mxu1 %v2647_v63  ;;  %2545 = vmatpush3.bf16.msra.mxu0 %v2648_v32  ;;  %v2651_v53 = vld [vmem:[%s3478_s5 + $0xa8] sm:$0xff]  }
  0x82   : > { %v1370_v8 = vsel %vm1221_vm1, %v1369_v47, %v1367_v2  ;;  %v1202_v48 = vpack.c.bf16 %v1166_v38, %v1166_v38  ;;  %v1119_v58 = vmax.f32 %v696_v24, %v2457_v57  ;;  %v1125_v45 = vmax.f32 %v721_v55, %v2463_v10  ;;  %2566 = vmatprep.subr.bf16.mxu1 %v2649_v60  ;;  %v369_v6 = vld [vmem:[%s2770_s20 + $0xa8] sm:$0xf]  ;;  %v371_v10 = vld [vmem:[%s2770_s20 + $0xb8] sm:$0xf]  ;;  %s2533_s20 = sshll.u32 %s3483_s28, 2 }
  0x83   : > { %v3210_v61 = vpack.c.b16 %v1370_v8, %v1370_v8  ;;  %v3212_v12 = vunpack.c.l.b16 %v1207_v46  ;;  %v1476_v4 = vrot.slane %v3203_v44, 7  ;;  %v2464_v31 = vrot.slane %v728_v15, 9  ;;  %2546 = vmatprep.subr.bf16.mxu0 %v2650_v26  ;;  %s316_s21 = scalar_lea.vmem %s3479_s6, %s2533_s20 }
  0x84   : > { %1304 = vrot.lane.b32.xlu0 %v3050_v62, %s2690_s15  ;;  %v3220_v2 = vunpack.c.l.b16 %v1202_v48  ;;  %v1120_v3 = vmax.f32 %v703_v7, %v2458_v59  ;;  %v1167_v11 = vmax.f32 %v1119_v58, %v1125_v45  ;;  %v746_v33 = vcombine.high %v3130_v52, %v3130_v52  ;;  %v2653_v52 = vld [vmem:[%s3478_s5 + $0xf0] sm:$0xff]  }
  0x85   : > { %1374 = vrot.lane.b32.xlu1 %v3210_v61, %s2690_s15  ;;  %v1477_v62 = vsel %vm1221_vm1, %v1476_v4, %v3212_v12  ;;  %v1126_v29 = vmax.f32 %v728_v15, %v2464_v31  ;;  %v1344_v55 = vrot.slane %v2963_v1, 7  ;;  %v771_v56 = vcombine.high %v3138_v23, %v3138_v23  ;;  %2567 = vmatpush3.bf16.msra.mxu1 %v2651_v53  ;;  %v2654_v23 = vld [vmem:[%s3478_s5 + $0x78] sm:$0xff]  }
  0x86   : > { %v1478_v42 = vpack.c.b16 %v1477_v62, %v1477_v62  ;;  %v1437_v22 = vrot.slane %v3220_v2, 7  ;;  %v1203_v24 = vpack.c.bf16 %v1167_v11, %v1167_v11  ;;  %v2469_v19 = vrot.slane %v746_v33, 9  ;;  %2547 = vmatpush3.bf16.msra.mxu0 %v2652_v13  ;;  %2568 = vmatprep.subr.bf16.mxu1 %v2653_v52  ;;  %v2657_v31 = vld [vmem:[%s3478_s5 + $0xf8] sm:$0xff]  }
  0x87   : > { %v1168_v28 = vmax.f32 %v1120_v3, %v1126_v29  ;;  %v704_v38 = vcombine.high %v703_v7, %v703_v7  ;;  %v729_v57 = vcombine.high %v728_v15, %v728_v15  ;;  %v2475_v46 = vrot.slane %v771_v56, 9  ;;  %2548 = vmatprep.subr.bf16.mxu0 %v2654_v23  ;;  %v2658_v53 = vld [vmem:[%s3478_s5 + $0xb8] sm:$0xff]  }
  0x88   : > { %1372 = vrot.lane.b32.xlu0 %v3011_v30, %s2690_s15  ;;  %v1438_v47 = vsel %vm1221_vm1, %v1437_v22, %v3186_v21  ;;  %v1441_v1 = vunpack.c.l.b16 %v1203_v24  ;;  %v1131_v59 = vmax.f32 %v746_v33, %v2469_v19  ;;  %v2656_v21 = vld [vmem:[%s3478_s5 + $0x38] sm:$0xff]   ;;  %v1345_v7 = vsel %vm1221_vm1, %v1344_v55, %v3065_v20 }
  0x89   : > { %1481 = vrot.lane.b32.xlu1 %v1478_v42, %s2688_s23  ;;  %v3257_v63 = vpack.c.b16 %v1438_v47, %v1438_v47  ;;  %v1204_v30 = vpack.c.bf16 %v1168_v28, %v1168_v28  ;;  %v2459_v15 = vrot.slane %v704_v38, 9  ;;  %v2465_v32 = vrot.slane %v729_v57, 9  ;;  %2569 = vmatpush3.bf16.msra.mxu1 %v2655_v43 }
  0x8a   : > { %v399_v8 = vmul.f32 %v2785_v35, %v369_v6  ;;  %v1442_v58 = vrot.slane %v1441_v1, 7  ;;  %v1137_v45 = vmax.f32 %v771_v56, %v2475_v46  ;;  %v401_v4 = vmul.f32 %v2785_v35, %v371_v10  ;;  %2549 = vmatpush3.bf16.msra.mxu0 %v2656_v21  ;;  %v2659_v35 = vld [vmem:[%s3478_s5 + $0x140] sm:$0xff]   ;;  %2570 = vmatprep.subr.bf16.mxu1 %v2657_v31 }
  0x8b   : > { %v1450_v48 = vunpack.c.l.b16 %v1204_v30  ;;  %v1121_v20 = vmax.f32 %v704_v38, %v2459_v15  ;;  %v1127_v60 = vmax.f32 %v729_v57, %v2465_v32  ;;  %v2691_v3 = vmov 1966171168   ;;  %2578 = vmatprep.subr.bf16.mxu0 %v2659_v35 }
  0x8c   : > { %1479 = vrot.lane.b32.xlu0 %v3257_v63, %s2688_s23  ;;  %v1550_v11 = vunpack.c.l.s4 %v2691_v3  ;;  %v429_v26 = vadd.f32 %v2798_v49, %v399_v8  ;;  %v3278_v62 = vpack.c.b16 %v1345_v7, %v1345_v7  ;;  %v1173_v29 = vmax.f32 %v1131_v59, %v1137_v45 }
  0x8d   : > { %v1451_v13 = vrot.slane %v1450_v48, 7  ;;  %v431_v33 = vadd.f32 %v2798_v49, %v401_v4  ;;  %v1169_v42 = vmax.f32 %v1121_v20, %v1127_v60  ;;  %v504_v24 = vcombine.high %v3016_v9, %v3016_v9  ;;  %2571 = vmatpush3.bf16.msra.mxu1 %v2658_v53 }
  0x8e   : > { %v453_v22 = vmax.f32 %v429_v26, 0.0  ;;  %v529_v55 = vcombine.high %v3021_v27, %v3021_v27  ;;  %v1443_v56 = vsel %vm1221_vm1, %v1442_v58, %v3220_v2  ;;  %v1209_v19 = vpack.c.bf16 %v1173_v29, %v1173_v29 }
  0x8f   : > { %v1452_v28 = vsel %vm1221_vm1, %v1451_v13, %v1441_v1  ;;  %v455_v6 = vmax.f32 %v431_v33, 0.0  ;;  %v1205_v49 = vpack.c.bf16 %v1169_v42, %v1169_v42  ;;  %v2411_v9 = vrot.slane %v504_v24, 9 }
  0x90   : > { %v1453_v52 = vpack.c.b16 %v1452_v28, %v1452_v28  ;;  %1454 = vrot.lane.b32.xlu0 %v2967_v25, %s2689_s24  ;;  %v753_v47 = vrot.slane %v453_v22, %v2801_v50  ;;  %v1484_v38 = vunpack.c.l.b16 %v1209_v19  ;;  %v2417_v57 = vrot.slane %v529_v55, 9 }
  0x91   : > { %v778_v27 = vrot.slane %v455_v6, %v2801_v50  ;;  %v1444_v1 = vpack.c.b16 %v1443_v56, %v1443_v56  ;;  %v1459_v10 = vunpack.c.l.b16 %v1205_v49  ;;  %v1073_v23 = vmax.f32 %v504_v24, %v2411_v9 }
  0x92   : > { %1456 = vrot.lane.b32.xlu1 %v1453_v52, %s2689_s24  ;;  %v2470_v2 = vrot.slane %v753_v47, 9  ;;  %v1485_v43 = vrot.slane %v1484_v38, 7  ;;  %v1551_v30 = vunpack.c.0.s8 %v1550_v11  ;;  %v1079_v59 = vmax.f32 %v529_v55, %v2417_v57 }
  0x93   : > { %v2476_v46 = vrot.slane %v778_v27, 9  ;;  %v1460_v25 = vrot.slane %v1459_v10, 7  ;;  %v2466_v45 = vrot.slane %v3112_v51, 9  ;;  %v2472_v4 = vrot.slane %v3135_v54, 9 }
  0x94   : > { %1445 = vrot.lane.b32.xlu0 %v3278_v62, %s2688_s23  ;;  %v1132_v21 = vmax.f32 %v753_v47, %v2470_v2  ;;  %v1486_v7 = vsel %vm1221_vm1, %v1485_v43, %v3203_v44  ;;  %v1145_v32 = vmax.f32 %v1073_v23, %v1079_v59  ;;  %v3304_v20 = vsub.s32 %v1551_v30, %v2762_v17 }
  0x95   : > { %v1138_v15 = vmax.f32 %v778_v27, %v2476_v46  ;;  %v1487_v8 = vpack.c.b16 %v1486_v7, %v1486_v7  ;;  %v1461_v58 = vsel %vm1221_vm1, %v1460_v25, %v1450_v48  ;;  %v1128_v44 = vmax.f32 %v3112_v51, %v2466_v45 }
  0x96   : > { %1447 = vrot.lane.b32.xlu1 %v1444_v1, %s2688_s23  ;;  %v3301_v31 = vpack.c.b16 %v1461_v58, %v1461_v58  ;;  %v1181_v3 = vpack.c.bf16 %v1145_v32, %v1145_v32  ;;  %v1134_v11 = vmax.f32 %v3135_v54, %v2472_v4  ;;  %v754_v26 = vcombine.high %v753_v47, %v753_v47  ;;  %s319_s23 = scalar_lea.vmem %s3480_s7, %s3483_s28 }
  0x97   : > { %v1174_v60 = vmax.f32 %v1132_v21, %v1138_v15  ;;  %v779_v53 = vcombine.high %v778_v27, %v778_v27  ;;  %v1471_v24 = vrot.slane %v3212_v12, 7  ;;  %v2692_v49 = vmov 0.0  }
  0x98   : > { %1488 = vrot.lane.b32.xlu0 %v1444_v1, %s2689_s24  ;;  %v1576_v48 = vrot.slane %v3301_v31, %v3304_v20  ;;  %v1271_v13 = vunpack.c.l.b16 %v1181_v3  ;;  %v1170_v29 = vmax.f32 %v1128_v44, %v1134_v11  ;;  %v2471_v17 = vrot.slane %v754_v26, 9  ;;  %2603 = vmatprep.subr.bf16.mxu1 %v2692_v49 }
  0x99   : > { %v1210_v35 = vpack.c.bf16 %v1174_v60, %v1174_v60  ;;  %v2477_v33 = vrot.slane %v779_v53, 9  ;;  %v2406_v21 = vrot.slane %v2840_v14, 9  ;;  %v2412_v7 = vrot.slane %v2843_v16, 9 }
  0x9a   : > { %1490 = vrot.lane.b32.xlu1 %v1487_v8, %s2689_s24  ;;  %v1273_v22 = vrot.slane %v1271_v13, 7  ;;  %v1206_v51 = vpack.c.bf16 %v1170_v29, %v1170_v29  ;;  %v1133_v54 = vmax.f32 %v754_v26, %v2471_v17 }
  0x9b   : > { %v1493_v42 = vunpack.c.l.b16 %v1210_v35  ;;  %v1139_v55 = vmax.f32 %v779_v53, %v2477_v33  ;;  %v1068_v8 = vmax.f32 %v2840_v14, %v2406_v21  ;;  %v1074_v58 = vmax.f32 %v2843_v16, %v2412_v7 }
  0x9c   : > { %1463 = vrot.lane.b32.xlu0 %v3018_v36, %s2690_s15  ;;  %v1274_v56 = vsel %vm1221_vm1, %v1273_v22, %v3100_v40  ;;  %v1469_v19 = vunpack.c.l.b16 %v1206_v51  ;;  %v1220_v53 = vrot.slane %v2870_v18, 7 }
  0x9d   : > { %v1494_v28 = vrot.slane %v1493_v42, 7  ;;  %v1175_v6 = vmax.f32 %v1133_v54, %v1139_v55  ;;  %v1140_v60 = vmax.f32 %v1068_v8, %v1074_v58  ;;  %v1277_v14 = vpack.c.b16 %v1274_v56, %v1274_v56 }
  0x9e   : > { %1465 = vrot.lane.b32.xlu1 %v3301_v31, %s2690_s15  ;;  %v3323_v36 = vsel %vm1221_vm1, %v1471_v24, %v1469_v19  ;;  %v2671_v31 = vld [vmem:[%s3478_s5 + $0x128] sm:$0xff]  }
  0x9f   : > { %v1495_v12 = vsel %vm1221_vm1, %v1494_v28, %v1484_v38  ;;  %v1211_v9 = vpack.c.bf16 %v1175_v6, %v1175_v6  ;;  %v1176_v44 = vpack.c.bf16 %v1140_v60, %v1140_v60 }
  0xa0   : > { %v1496_v47 = vpack.c.b16 %v1495_v12, %v1495_v12  ;;  %1497 = vrot.lane.b32.xlu0 %v1453_v52, %s2690_s15 }
  0xa1   : > { %v1502_v40 = vunpack.c.l.b16 %v1211_v9  ;;  %v1216_v35 = vunpack.c.l.b16 %v1176_v44 }
  0xa2   : > { %1499 = vrot.lane.b32.xlu1 %v1496_v47, %s2690_s15 }
  0xa3   : > { %v1503_v27 = vrot.slane %v1502_v40, 7  ;;  %v1222_v17 = vsel %vm1221_vm1, %v1220_v53, %v1216_v35 }
  0xa5   : > { %v1504_v57 = vsel %vm1221_vm1, %v1503_v27, %v1493_v42  ;;  %v1225_v42 = vpack.c.b16 %v1222_v17, %v1222_v17 }
  0xa6   : > { %v1505_v1 = vpack.c.b16 %v1504_v57, %v1504_v57 }
  0xa8   : > { %v3328_v10 = vrot.slane %v1505_v1, %v3304_v20 }
  0xaf   : > { %v1287_v2 = vpop.permute.xlu1 %1286 }
  0xb0   : > { %v1238_v23 = vpop.permute.xlu0 %1237  ;;  %v1395_v56 = vsel %vm1376_vm2, %v1277_v14, %v1287_v2  ;;  %v2660_v14 = vld [vmem:[%s3478_s5 + $0x100] sm:$0xff]  }
  0xb1   : > { %v1379_v18 = vsel %vm1376_vm2, %v1225_v42, %v1238_v23 }
  0xb7   : > { %v1289_v38 = vpop.permute.xlu1 %1288 }
  0xb8   : > { %v1398_v22 = vsel %vm1376_vm2, %v2955_v39, %v1289_v38 }
  0xb9   : > { %v1240_v43 = vpop.permute.xlu0 %1239 }
  0xba   : > { %v1382_v24 = vsel %vm1376_vm2, %v2884_v34, %v1240_v43 }
  0xc0   : > { %v1321_v30 = vpop.permute.xlu1 %1320 }
  0xc1   : > { %v1412_v39 = vsel %vm1376_vm2, %v2987_v0, %v1321_v30 }
  0xc8   : > { %v1319_v52 = vpop.permute.xlu0 %1318 }
  0xc9   : > { %v1409_v38 = vsel %vm1376_vm2, %v3032_v41, %v1319_v52 }
  0xce   : > { %v1355_v46 = vpop.permute.xlu1 %1354 }
  0xcf   : > { %v1426_v34 = vsel %vm1376_vm2, %v3278_v62, %v1355_v46 }
  0xd3   : > { %v1353_v59 = vpop.permute.xlu0 %1352  ;;  %v1298_v25 = vpop.permute.xlu1 %1297 }
  0xd4   : > { %v1402_v54 = vsel %vm1383_vm3, %v1398_v22, %v1298_v25  ;;  %v1423_v43 = vsel %vm1376_vm2, %v3057_v5, %v1353_v59 }
  0xd7   : > { %v1296_v15 = vpop.permute.xlu0 %1295 }
  0xd8   : > { %v1400_v6 = vsel %vm1383_vm3, %v1395_v56, %v1296_v15  ;;  %v2663_v56 = vld [vmem:[%s3478_s5 + $0x150] sm:$0xff]  }
  0xda   : > { %v1332_v32 = vpop.permute.xlu1 %1331 }
  0xdb   : > { %v1330_v45 = vpop.permute.xlu0 %1329  ;;  %v1416_v12 = vsel %vm1383_vm3, %v1412_v39, %v1332_v32 }
  0xdc   : > { %v1414_v46 = vsel %vm1383_vm3, %v1409_v38, %v1330_v45 }
  0xde   : > { %v1364_v4 = vpop.permute.xlu1 %1363 }
  0xdf   : > { %v1362_v11 = vpop.permute.xlu0 %1361  ;;  %v1430_v40 = vsel %vm1383_vm3, %v1426_v34, %v1364_v4  ;;  %v2672_v34 = vld [vmem:[%s3478_s5 + $0x188] sm:$0xff]  }
  0xe0   : > { %v1428_v25 = vsel %vm1383_vm3, %v1423_v43, %v1362_v11  ;;  %v2666_v43 = vld [vmem:[%s3478_s5 + $0x118] sm:$0xff]  }
  0xe2   : > { %v1268_v3 = vpop.permute.xlu1 %1267 }
  0xe7   : > { %v1341_v26 = vpop.permute.xlu1 %1340 }
  0xe8   : > { %v1420_v0 = vsel %vm1388_vm4, %v1416_v12, %v1341_v26 }
  0xea   : > { %v1266_v13 = vpop.permute.xlu0 %1265 }
  0xeb   : > { %v1254_v29 = vpop.permute.xlu1 %1253 }
  0xec   : > { %v1387_v55 = vsel %vm1383_vm3, %v1382_v24, %v1254_v29 }
  0xed   : > { %v1392_v47 = vsel %vm1388_vm4, %v1387_v55, %v1268_v3  ;;  %v2662_v55 = vld [vmem:[%s3478_s5 + $0x108] sm:$0xff]  }
  0xee   : > { %v1339_v33 = vpop.permute.xlu0 %1338 }
  0xef   : > { %v1307_v16 = vpop.permute.xlu1 %1306  ;;  %v1418_v15 = vsel %vm1388_vm4, %v1414_v46, %v1339_v33 }
  0xf0   : > { %v1406_v19 = vsel %vm1388_vm4, %v1402_v54, %v1307_v16  ;;  %v2661_v16 = vld [vmem:[%s3478_s5 + $0x148] sm:$0xff]  }
  0xf1   : > { %v1594_v27 = vcombine.low %v1392_v47, %v1406_v19 }
  0xf2   : > { %v1252_v51 = vpop.permute.xlu0 %1251 }
  0xf3   : > { %v1385_v28 = vsel %vm1383_vm3, %v1379_v18, %v1252_v51  ;;  %v1603_v32 = vrot.slane %v1594_v27, %v3304_v20  ;;  %v2669_v51 = vld [vmem:[%s3478_s5 + $0x180] sm:$0xff]  }
  0xf4   : > { %v1390_v57 = vsel %vm1388_vm4, %v1385_v28, %v1266_v13  ;;  %v1473_v28 = vpack.c.b16 %v3323_v36, %v3323_v36 }
  0xf6   : > { %v1305_v9 = vpop.permute.xlu0 %1304 }
  0xf7   : > { %v1404_v1 = vsel %vm1388_vm4, %v1400_v6, %v1305_v9  ;;  %v1375_v2 = vpop.permute.xlu1 %1374  ;;  %v2664_v9 = vld [vmem:[%s3478_s5 + $0x110] sm:$0xff]  }
  0xf8   : > { %v1546_v23 = vcombine.low %v1390_v57, %v1404_v1  ;;  %v1434_v62 = vsel %vm1388_vm4, %v1430_v40, %v1375_v2 }
  0xf9   : > { %v1595_v30 = vcombine.low %v1420_v0, %v1434_v62 }
  0xfa   : > { %v1555_v21 = vrot.slane %v1546_v23, %v3304_v20  ;;  %v1373_v7 = vpop.permute.xlu0 %1372 }
  0xfb   : > { %v1610_v8 = vrot.slane %v1595_v30, %v3304_v20  ;;  %v1432_v58 = vsel %vm1388_vm4, %v1428_v25, %v1373_v7  ;;  %v1482_v59 = vpop.permute.xlu1 %1481  ;;  %v2667_v30 = vld [vmem:[%s3478_s5 + $0x160] sm:$0xff]  }
  0xfc   : > { %v1547_v41 = vcombine.low %v1418_v15, %v1432_v58  ;;  %v1525_v40 = vsel %vm1376_vm2, %v1473_v28, %v1482_v59  ;;  %v2668_v15 = vld [vmem:[%s3478_s5 + $0x120] sm:$0xff]  }
  0xfd   : > { %v1625_v52 = vcombine.low %v1603_v32, %v1610_v8  ;;  %v2670_v32 = vld [vmem:[%s3478_s5 + $0x168] sm:$0xff]  }
  0xfe   : > { %v1562_v5 = vrot.slane %v1547_v41, %v3304_v20  ;;  %v1480_v4 = vpop.permute.xlu0 %1479 }
  0xff   : > { %v1633_v45 = vrot.slane %v1625_v52, %v3304_v20  ;;  %v1522_v36 = vsel %vm1376_vm2, %v3210_v61, %v1480_v4 }
 0x100   : > { %v1577_v60 = vcombine.low %v1555_v21, %v1562_v5  ;;  %v2674_v5 = vld [vmem:[%s3478_s5 + $0x130] sm:$0xff]  }
 0x102   : > { %v1585_v3 = vrot.slane %v1577_v60, %v3304_v20  ;;  %v1455_v44 = vpop.permute.xlu0 %1454  ;;  %v2676_v60 = vld [vmem:[%s3478_s5 + $0x138] sm:$0xff]  }
 0x104   : > { %v1457_v11 = vpop.permute.xlu1 %1456  ;;  %v2478_v26 = vcombine.low %v1585_v3, %v1633_v45  ;;  %v2675_v45 = vld [vmem:[%s3478_s5 + $0x178] sm:$0xff]  }
 0x106   : > { %v1446_v53 = vpop.permute.xlu0 %1445  ;;  %v1750_v35 = vrot.slane %v2478_v26, %v3304_v20 }
 0x107   : > { %v1508_v19 = vsel %vm1376_vm2, %v3109_v37, %v1446_v53 }
 0x108   : > { %v1448_v13 = vpop.permute.xlu1 %1447  ;;  %v1758_v29 = vcombine.high %v1750_v35, %v1750_v35  ;;  %v1766_v17 = vrot.slane %v1750_v35, %v3304_v20  ;;  %v1513_v12 = vsel %vm1383_vm3, %v1508_v19, %v1455_v44 }
 0x109   : > { %v1511_v37 = vsel %vm1376_vm2, %v3257_v63, %v1448_v13  ;;  %v2665_v63 = vld [vmem:[%s3478_s5 + $0x158] sm:$0xff]  }
 0x10a   : > { %v1489_v33 = vpop.permute.xlu0 %1488  ;;  %v1780_v42 = vrot.slane %v1758_v29, %v3304_v20  ;;  %v1788_v18 = vcombine.high %v1766_v17, %v1766_v17  ;;  %v1515_v57 = vsel %vm1383_vm3, %v1511_v37, %v1457_v11 }
 0x10b   : > { %v1527_v6 = vsel %vm1383_vm3, %v1522_v36, %v1489_v33 }
 0x10c   : > { %v1491_v22 = vpop.permute.xlu1 %1490  ;;  %2132 = vmatprep.mubr.bf16.mxu0 %v1780_v42  ;;  %v1790_v24 = vcombine.high %v1780_v42, %v1780_v42 }
 0x10d   : > { %2133 = vmatmul.mubr.bf16.vlgmr.msra.gmra.mrb[0].mxu0 %v1766_v17 }
 0x10e   : > { %2579 = vmatpush3.bf16.msra.mxu0 %v2660_v14  ;;  %2172 = vmatprep.mubr.bf16.mxu1 %v1790_v24  ;;  %v1464_v54 = vpop.permute.xlu0 %1463 }
 0x10f   : > { %2173 = vmatmul.mubr.bf16.vlgmr.msra.gmra.mrb[0].mxu1 %v1788_v18  ;;  %2580 = vmatprep.subr.bf16.mxu0 %v2661_v16  ;;  %v1517_v27 = vsel %vm1388_vm4, %v1513_v12, %v1464_v54 }
 0x110   : > { %v1466_v39 = vpop.permute.xlu1 %1465  ;;  %2604 = vmatpush3.bf16.msra.mxu1 %v2669_v51  ;;  %2607 = vmatprep.mubr.msk.bf16.mxu1 %vm2693_vm5, %v2692_v49 }
 0x111   : > { %2605 = vmatprep.subr.bf16.mxu1 %v2692_v49  ;;  %v1529_v49 = vsel %vm1383_vm3, %v1525_v40, %v1491_v22  ;;  %v1519_v0 = vsel %vm1388_vm4, %v1515_v57, %v1466_v39 }
 0x112   : > { %2581 = vmatpush3.bf16.msra.mxu0 %v2662_v55  ;;  %v1498_v47 = vpop.permute.xlu0 %1497 }
 0x113   : > { %v1531_v61 = vsel %vm1388_vm4, %v1527_v6, %v1498_v47  ;;  %2582 = vmatprep.subr.bf16.mxu0 %v2663_v56 }
 0x114   : > { %v1500_v1 = vpop.permute.xlu1 %1499  ;;  %v1548_v2 = vcombine.low %v1517_v27, %v1531_v61  ;;  %2606 = vmatpush3.bf16.msra.mxu1 %v2672_v34 }
 0x115   : > { %v1533_v23 = vsel %vm1388_vm4, %v1529_v49, %v1500_v1 }
 0x116   : > { %v1596_v62 = vcombine.low %v1519_v0, %v1533_v23  ;;  %v1569_v38 = vrot.slane %v1548_v2, %v3304_v20  ;;  %2583 = vmatpush3.bf16.msra.mxu0 %v2664_v9 }
 0x117   : > { %2584 = vmatprep.subr.bf16.mxu0 %v2665_v63 }
 0x118   : > { %v1617_v46 = vrot.slane %v1596_v62, %v3304_v20  ;;  %v1578_v25 = vcombine.low %v1569_v38, %v1576_v48 }
 0x11a   : > { %v1626_v21 = vcombine.low %v1617_v46, %v3328_v10  ;;  %v1592_v7 = vrot.slane %v1578_v25, %v3304_v20  ;;  %2585 = vmatpush3.bf16.msra.mxu0 %v2666_v43  ;;  %v2673_v10 = vld [vmem:[%s3478_s5 + $0x170] sm:$0xff]  }
 0x11b   : > { %2586 = vmatprep.subr.bf16.mxu0 %v2667_v30 }
 0x11c   : > { %v1640_v8 = vrot.slane %v1626_v21, %v3304_v20 }
 0x11e   : > { %2587 = vmatpush3.bf16.msra.mxu0 %v2668_v15  ;;  %v2479_v48 = vcombine.low %v1592_v7, %v1640_v8 }
 0x11f   : > { %2588 = vmatprep.subr.bf16.mxu0 %v2670_v32 }
 0x120   : > { %v1757_v58 = vrot.slane %v2479_v48, %v3304_v20 }
 0x122   : > { %2589 = vmatpush3.bf16.msra.mxu0 %v2671_v31  ;;  %v1759_v41 = vcombine.high %v1757_v58, %v1757_v58  ;;  %v1773_v52 = vrot.slane %v1757_v58, %v3304_v20 }
 0x123   : > { %2590 = vmatprep.subr.bf16.mxu0 %v2673_v10 }
 0x124   : > { %v1787_v59 = vrot.slane %v1759_v41, %v3304_v20  ;;  %v1789_v4 = vcombine.high %v1773_v52, %v1773_v52 }
 0x126   : > { %2212 = vmatprep.mubr.bf16.mxu0 %v1787_v59  ;;  %2608 = vmatmul.mubr.msk.bf16.vlgmr.msra.gmra.mrb[4].mxu1 %vm1376_vm2, %v1789_v4 }
 0x127   : > { %2591 = vmatpush3.bf16.msra.mxu0 %v2674_v5 }
 0x128   : > { %2592 = vmatprep.subr.bf16.mxu0 %v2675_v45 }
 0x12b   : > { %2593 = vmatpush3.bf16.msra.mxu0 %v2676_v60 }
 0x12e   : > { %2213 = vmatmul.mubr.bf16.vlgmr.msra.gmra.mrb[4].mxu0 %v1773_v52 }
 0x1e0   : > { %v2550_v3 = vpop.f32.mrb[0].mxu0 }
 0x1e1   : > { %v2551_v44 = vpop.f32.mrb[1].mxu0 }
 0x1e2   : > { %v2552_v11 = vadd.f32 %v2551_v44, %v2550_v3  ;;  %v2553_v20 = vpop.f32.mrb[2].mxu0  ;;  %v2572_v26 = vpop.f32.mrb[0].mxu1 }
 0x1e3   : > { %v2554_v53 = vpop.f32.mrb[3].mxu0  ;;  %v2573_v35 = vpop.f32.mrb[1].mxu1 }
 0x1e4   : > { %v2574_v13 = vadd.f32 %v2573_v35, %v2572_v26  ;;  %v2575_v29 = vpop.f32.mrb[2].mxu1 }
 0x1e5   : > { %v2576_v17 = vpop.f32.mrb[3].mxu1 }
 0x1e6   : > { %v2175_v33 = vadd.f32 %v2574_v13, %v2552_v11 }
 0x1f9   : > { %v2254_v42 = vpop.f32.mrb[4].mxu1 }
 0x1fa   : > { %v2609_v14 = vpop.f32.mrb[5].mxu1 }
 0x1fb   : > { %v2257_v16 = vpop.f32.mrb[6].mxu1 }
 0x1fc   : > { %v2610_v22 = vpop.f32.mrb[7].mxu1 }
 0x201   : > { %v2594_v24 = vpop.f32.mrb[4].mxu0 }
 0x202   : > { %v2595_v51 = vpop.f32.mrb[5].mxu0 }
 0x203   : > { %v2596_v18 = vadd.f32 %v2595_v51, %v2594_v24  ;;  %v2597_v54 = vpop.f32.mrb[6].mxu0 }
 0x204   : > { %v2598_v55 = vpop.f32.mrb[7].mxu0 }
 0x205   : > { %v2215_v28 = vadd.f32 %v2596_v18, %v2175_v33 }
 0x207   : > { %v2255_v19 = vadd.f32 %v2254_v42, %v2215_v28 }
 0x209   : > { %v2267_v56 = vrot.slane %v2255_v19, %v2801_v50  ;;  %v2275_v39 = vsel %vm2274_vm6, %v2255_v19, 0.0  ;;  %v2284_v34 = vmul.f32 %v2255_v19, %v2255_v19 }
 0x20a   : > { %v2276_v36 = vrot.slane %v2275_v39, 4 }
 0x20b   : > { %v2268_v37 = vcombine.high %v2267_v56, %v2267_v56  ;;  %2272 = vst.msk [vmem:[%s316_s21] sm:$0x3] %vm2271_vm7, %v2267_v56  ;;  %v2285_v6 = vsel %vm2274_vm6, %v2284_v34, 0.0 }
 0x20c   : > { %v2277_v12 = vadd.f32 %v2276_v36, %v2275_v39  ;;  %v2286_v47 = vrot.slane %v2285_v6, 4 }
 0x20d   : > { %2273 = vst.msk [vmem:[%s316_s21 + $0x2] sm:$0x3] %vm2271_vm7, %v2268_v37 }
 0x20e   : > { %v2278_v9 = vrot.slane %v2277_v12, 2  ;;  %v2287_v40 = vadd.f32 %v2286_v47, %v2285_v6 }
 0x210   : > { %v2279_v27 = vadd.f32 %v2278_v9, %v2277_v12  ;;  %v2288_v61 = vrot.slane %v2287_v40, 2 }
 0x212   : > { %v2280_v63 = vrot.slane %v2279_v27, 1  ;;  %v2289_v49 = vadd.f32 %v2288_v61, %v2287_v40 }
 0x214   : > { %v2281_v50 = vadd.f32 %v2280_v63, %v2279_v27  ;;  %v2290_v57 = vrot.slane %v2289_v49, 1 }
 0x216   : > { %2283 = vst.msk [vmem:[%s319_s23] sm:$0x1] %vm2282_vm8, %v2281_v50  ;;  %v2291_v1 = vadd.f32 %v2290_v57, %v2289_v49 }
 0x218   : > { %2292 = vst.msk [vmem:[%s322_s26] sm:$0x1] %vm2282_vm8, %v2291_v1 }
 0x219 PF: > { %s19_s27 = sadd.s32 1, %s2685_s27  }
 0x21a   : > { %p16_p4 = scmp.ge.s32.totalorder %s19_s27, 4  }
 0x21c   :  { %18 = sbr.rel (!%p16_p4) target bundleno = 1 (0x1), region = 98 }

// kernel: forward.3
= control target key start
LH: loop header
LB: loop body
LE: loop exit
PB: predicated region body
PF: predicated region fallthrough
CT: control target
= control target key end

     0   :  { %s2629_s15 = smov 0   ;;  %s4274_s0 = inlined_call_operand.vmem [shape: bf16[2,16,16,3], index: 0, kind: input, shape index: {}]   ;;  %s4275_s1 = inlined_call_operand.vmem [shape: bf16[75,32], index: 1, kind: input, shape index: {}]   ;;  %s4276_s2 = inlined_call_operand.vmem [shape: f32[2,12,12,32], index: 2, kind: output, shape index: {0}]   ;;  %s4277_s3 = inlined_call_operand.vmem [shape: f32[2,1,32], index: 3, kind: output, shape index: {1}]   ;;  %s4278_s4 = inlined_call_operand.vmem [shape: f32[2,1,32], index: 4, kind: output, shape index: {2}]  }
   0x1 LB: > { %s2402_s16 = sadd.s32 4294967295, %s2582_s15   ;;  %p2406_p0 = scmp.ge.s32.totalorder %s2582_s15, 1  ;;  %s2582_s15 = sphi %s2629_s15, %s15_s15  }
   0x2   : > { %p167_p1 = scmp.lt.s32.totalorder %s2582_s15, 3 }
   0x4   : > { %p168_p2 = pnand %p2406_p0, %p167_p1 }
   0x6   : > { %171 = sbr.rel (%p168_p2) target bundleno = 833 (0x341), region = 28 }
   0xd   : > { %p199_p3 = scmp.lt.s32.totalorder %s2402_s16, 1  ;;  %s2584_s21 = smov 3   ;;  %vm851_vm0 = vcmask 23552   ;;  %vm901_vm1 = vcmask 72704   ;;  %vm876_vm2 = vcmask 48128   ;;  %vm926_vm3 = vcmask 97280  }
   0xe   : > { %s2585_s22 = smov 6   ;;  %s2586_s23 = smov 9   ;;  %vm951_vm4 = vcmask 121856   ;;  %vm976_vm5 = vcmask 146432   ;;  %vm1001_vm6 = vcmask 171008   ;;  %vm1026_vm7 = vcmask 195584  }
   0xf   : > { %s4583_s16 = smov (!%p199_p3, %s2402_s16), 1  ;;  %s2587_s24 = smov 12   ;;  %vm1990_vm8 = vcmask 1044480   ;;  %vm1991_vm9 = vcmask 1045504   ;;  %vm4347_vm10 = vmmov 0   ;;  %vm1051_vm11 = vcmask 220160  }
  0x10   : > { %s2442_s17 = sshll.u32 %s4583_s16, 7  ;;  %s2588_s25 = smov 18   ;;  %vm4350_vm12 = vcmask 244736   ;;  %vm1101_vm13 = vcmask 269312   ;;  %vm1126_vm14 = vcmask 293888   ;;  %vm1151_vm15 = vcmask 318464  }
  0x11   : > { %s2643_s20 = scalar_lea.vmem %s4274_s0, %s2442_s17  ;;  %s2589_s26 = smov 15  }
  0x12   : > { %v2646_v0 = vld [vmem:[%s2643_s20 + $0x10] sm:$0xff]   ;;  %v2649_v1 = vld [vmem:[%s2643_s20] sm:$0xff]   ;;  %v2656_v6 = vld [vmem:[%s2643_s20 + $0x18] sm:$0xff]   ;;  %s2590_s27 = smov 21   ;;  %s2591_s28 = smov 24  }
  0x13   : > { %v4280_v2 = vshrl.u32 %v2646_v0, 16  ;;  %v4279_v3 = vshll.u32 %v2646_v0, 16  ;;  %v309_v4 = vshrl.u32 %v2649_v1, 16  ;;  %v311_v5 = vshll.u32 %v2649_v1, 16  ;;  %v2659_v7 = vld [vmem:[%s2643_s20 + $0x8] sm:$0xff]   ;;  %v2679_v17 = vld [vmem:[%s2643_s20 + $0x20] sm:$0xff]  }
  0x14   : > { %v330_v10 = vshrl.u32 %v2656_v6, 16  ;;  %v332_v12 = vshll.u32 %v2656_v6, 16  ;;  %v4283_v13 = vshrl.u32 %v2659_v7, 16  ;;  %v4282_v14 = vshll.u32 %v2659_v7, 16  ;;  %v2674_v15 = vld [vmem:[%s2643_s20 + $0x28] sm:$0xff]   ;;  %v2701_v24 = vld [vmem:[%s2643_s20 + $0x38] sm:$0xff]  }
  0x15   : > { %v327_v8 = vrot.slane %v4279_v3, 1  ;;  %v313_v9 = vrot.slane %v311_v5, 1  ;;  %v2688_v20 = vshrl.u32 %v2674_v15, 16  ;;  %v2692_v21 = vshll.u32 %v2674_v15, 16  ;;  %v2712_v27 = vld [vmem:[%s2643_s20 + $0x30] sm:$0xff]   ;;  %v2727_v34 = vld [vmem:[%s2643_s20 + $0x48] sm:$0xff]  }
  0x16   : > { %v334_v18 = vrot.slane %v332_v12, 1  ;;  %v320_v19 = vrot.slane %v4282_v14, 1  ;;  %v2695_v22 = vshrl.u32 %v2679_v17, 16  ;;  %v2698_v23 = vshll.u32 %v2679_v17, 16  ;;  %v2730_v35 = vld [vmem:[%s2643_s20 + $0x40] sm:$0xff]   ;;  %v2741_v39 = vld [vmem:[%s2643_s20 + $0x58] sm:$0xff]  }
  0x17   : > { %v2668_v11 = vor.u32 %v327_v8, %v4280_v2  ;;  %v314_v16 = vor.u32 %v313_v9, %v309_v4  ;;  %v348_v28 = vrot.slane %v2692_v21, 1  ;;  %v358_v30 = vshrl.u32 %v2701_v24, 16  ;;  %v2747_v43 = vld [vmem:[%s2643_s20 + $0x50] sm:$0xff]   ;;  %s2592_s29 = smov 27   ;;  %s2593_s30 = smov 30  }
  0x18   : > { %v2705_v25 = vor.u32 %v334_v18, %v330_v10  ;;  %v2709_v26 = vor.u32 %v320_v19, %v4283_v13  ;;  %v341_v29 = vrot.slane %v2698_v23, 1  ;;  %v360_v31 = vshll.u32 %v2701_v24, 16  ;;  %s2594_s5 = smov 33   ;;  %s2595_s6 = smov 36  }
  0x19   : > { %396 = vrot.lane.b32.xlu1 %v2668_v11, %s2584_s21  ;;  %392 = vrot.lane.b32.xlu0 %v314_v16, %s2584_s21  ;;  %v2721_v32 = vshrl.u32 %v2712_v27, 16  ;;  %v2724_v33 = vshll.u32 %v2712_v27, 16  ;;  %v2735_v36 = vor.u32 %v348_v28, %v2688_v20  ;;  %v374_v41 = vshll.u32 %v2727_v34, 16  ;;  %s2596_s9 = smov 39   ;;  %s2598_s10 = smov 42  }
  0x1a   : > { %v2738_v37 = vor.u32 %v341_v29, %v2695_v22  ;;  %v362_v38 = vrot.slane %v360_v31, 1  ;;  %v367_v42 = vshll.u32 %v2730_v35, 16  ;;  %v372_v45 = vshrl.u32 %v2727_v34, 16  ;;  %s2599_s19 = smov 45  }
  0x1b   : > { %v355_v40 = vrot.slane %v2724_v33, 1  ;;  %v376_v46 = vrot.slane %v374_v41, 1  ;;  %v388_v47 = vshll.u32 %v2741_v39, 16  ;;  %v365_v49 = vshrl.u32 %v2730_v35, 16 }
  0x1c   : > { %v2751_v44 = vor.u32 %v362_v38, %v358_v30  ;;  %v369_v50 = vrot.slane %v367_v42, 1  ;;  %v381_v51 = vshll.u32 %v2747_v43, 16  ;;  %v386_v53 = vshrl.u32 %v2741_v39, 16 }
  0x1d   : > { %398 = vrot.lane.b32.xlu1 %v2705_v25, %s2584_s21  ;;  %394 = vrot.lane.b32.xlu0 %v2709_v26, %s2584_s21  ;;  %v2758_v48 = vor.u32 %v355_v40, %v2721_v32  ;;  %v2764_v52 = vor.u32 %v376_v46, %v372_v45  ;;  %v390_v54 = vrot.slane %v388_v47, 1  ;;  %v379_v56 = vshrl.u32 %v2747_v43, 16 }
  0x1e   : > { %4352 = vst [vmem:[#allocation2_spill] sm:$0xff] %v2751_v44  ;;  %v2769_v55 = vor.u32 %v369_v50, %v365_v49  ;;  %v383_v57 = vrot.slane %v381_v51, 1  ;;  %v1266_v59 = vrot.slane %v358_v30, 7  ;;  %v473_v60 = vrot.slane %v358_v30, 1 }
  0x1f   : > { %4353 = vst [vmem:[#allocation3_spill] sm:$0xff] %v2758_v48  ;;  %4354 = vst [vmem:[#allocation4_spill] sm:$0xff] %v2764_v52  ;;  %v2774_v58 = vor.u32 %v390_v54, %v386_v53  ;;  %v4281_v62 = vrot.slane %v2659_v7, 1  ;;  %v474_v63 = vrot.slane %v360_v31, 2  ;;  %v416_v8 = vrot.slane %v2649_v1, 1 }
  0x20   : > { %4355 = vst [vmem:[#allocation5_spill] sm:$0xff] %v2769_v55  ;;  %v2778_v61 = vor.u32 %v383_v57, %v379_v56  ;;  %v2782_v9 = vor.u32 %v1266_v59, %v360_v31  ;;  %v479_v16 = vrot.slane %v372_v45, 1  ;;  %v480_v18 = vrot.slane %v374_v41, 2 }
  0x21   : > { %402 = vrot.lane.b32.xlu1 %v2735_v36, %s2584_s21  ;;  %400 = vrot.lane.b32.xlu0 %v2738_v37, %s2584_s21  ;;  %4356 = vst [vmem:[#allocation6_spill] sm:$0xff] %v2774_v58  ;;  %v2784_v19 = vor.u32 %v474_v63, %v473_v60  ;;  %v482_v28 = vrot.slane %v379_v56, 1  ;;  %v483_v29 = vrot.slane %v381_v51, 2  ;;  %v1272_v38 = vrot.slane %v379_v56, 7 }
  0x22   : > { %4357 = vst [vmem:[#allocation7_spill] sm:$0xff] %v2778_v61  ;;  %v2788_v30 = vor.u32 %v480_v18, %v479_v16  ;;  %v1268_v40 = vrot.slane %v365_v49, 7  ;;  %v476_v46 = vrot.slane %v365_v49, 1  ;;  %v477_v50 = vrot.slane %v367_v42, 2 }
  0x23   : > { %4358 = vst [vmem:[#allocation8_spill] sm:$0xff] %v2784_v19  ;;  %v2792_v31 = vor.u32 %v483_v29, %v482_v28  ;;  %v2794_v54 = vor.u32 %v1272_v38, %v381_v51  ;;  %v1274_v57 = vrot.slane %v386_v53, 7  ;;  %v1270_v59 = vrot.slane %v372_v45, 7 }
  0x24   : > { %4359 = vst [vmem:[#allocation9_spill] sm:$0xff] %v2788_v30  ;;  %v2796_v60 = vor.u32 %v1268_v40, %v367_v42  ;;  %v2798_v56 = vor.u32 %v477_v50, %v476_v46  ;;  %v485_v63 = vrot.slane %v386_v53, 1  ;;  %v486_v49 = vrot.slane %v388_v47, 2 }
  0x25   : > { %406 = vrot.lane.b32.xlu1 %v2751_v44, %s2584_s21  ;;  %404 = vrot.lane.b32.xlu0 %v2758_v48, %s2584_s21  ;;  %4360 = vst [vmem:[#allocation10_spill] sm:$0xff] %v2792_v31  ;;  %v2800_v3 = vor.u32 %v1274_v57, %v388_v47  ;;  %v2802_v16 = vor.u32 %v1270_v59, %v374_v41  ;;  %v2808_v51 = vrot.slane %v2656_v6, 1  ;;  %v2812_v42 = vrot.slane %v2646_v0, 1 }
  0x26   : > { %4361 = vst [vmem:[#allocation11_spill] sm:$0xff] %v2798_v56  ;;  %v461_v45 = vrot.slane %v330_v10, 1  ;;  %v462_v41 = vrot.slane %v332_v12, 2  ;;  %v2818_v47 = vor.u32 %v486_v49, %v485_v63  ;;  %v2823_v53 = vrot.slane %v2679_v17, 1 }
  0x27   : > { %v464_v18 = vrot.slane %v2695_v22, 1  ;;  %v1260_v10 = vrot.slane %v2695_v22, 7  ;;  %v1262_v38 = vrot.slane %v2688_v20, 7  ;;  %v467_v40 = vrot.slane %v2688_v20, 1 }
  0x28   : > { %4362 = vst [vmem:[#allocation12_spill] sm:$0xff] %v2818_v47  ;;  %v2829_v28 = vor.u32 %v462_v41, %v461_v45  ;;  %v468_v46 = vrot.slane %v2692_v21, 2  ;;  %v1264_v57 = vrot.slane %v2721_v32, 7  ;;  %v471_v59 = vrot.slane %v2724_v33, 2 }
  0x29   : > { %410 = vrot.lane.b32.xlu1 %v2764_v52, %s2584_s21  ;;  %408 = vrot.lane.b32.xlu0 %v2769_v55, %s2584_s21  ;;  %v1261_v29 = vor.u32 %v1260_v10, %v2698_v23  ;;  %v1263_v22 = vor.u32 %v1262_v38, %v2692_v21  ;;  %v470_v21 = vrot.slane %v2721_v32, 1  ;;  %v2884_v49 = vrot.slane %v2712_v27, 1 }
  0x2a   : > { %v2862_v50 = vor.u32 %v468_v46, %v467_v40  ;;  %v1265_v20 = vor.u32 %v1264_v57, %v2724_v33  ;;  %v2892_v32 = vrot.slane %v309_v4, 1  ;;  %v2896_v33 = vrot.slane %v311_v5, 2 }
  0x2b   : > { %v2879_v63 = vor.u32 %v471_v59, %v470_v21  ;;  %4366 = vst [vmem:[#allocation16_spill] sm:$0xff] %v2884_v49  ;;  %v2907_v41 = vrot.slane %v2701_v24, 1  ;;  %v2918_v4 = vrot.slane %v2747_v43, 1  ;;  %v2923_v5 = vrot.slane %v2727_v34, 1 }
  0x2c   : > { %4364 = vst [vmem:[#allocation14_spill] sm:$0xff] %v2862_v50 }
  0x2d   : > { %414 = vrot.lane.b32.xlu1 %v2774_v58, %s2584_s21  ;;  %412 = vrot.lane.b32.xlu0 %v2778_v61, %s2584_s21  ;;  %4365 = vst [vmem:[#allocation15_spill] sm:$0xff] %v2879_v63  ;;  %4367 = vst [vmem:[#allocation17_spill] sm:$0xff] %v2907_v41 }
  0x2e   : > { %4368 = vst [vmem:[#allocation18_spill] sm:$0xff] %v2918_v4  ;;  %4369 = vst [vmem:[#allocation19_spill] sm:$0xff] %v2923_v5 }
  0x31   : > { %430 = vrot.lane.b32.xlu1 %v4281_v62, %s2585_s22  ;;  %428 = vrot.lane.b32.xlu0 %v416_v8, %s2585_s22  ;;  %v465_v8 = vrot.slane %v2698_v23, 2  ;;  %v2854_v23 = vrot.slane %v2674_v15, 1  ;;  %v2555_v62 = vld [vmem:[%s2643_s20 + $0x68] sm:$0xff]  }
  0x33   : > { %v2834_v12 = vor.u32 %v465_v8, %v464_v18  ;;  %4363 = vst [vmem:[#allocation13_spill] sm:$0xff] %v2854_v23  ;;  %v2981_v8 = vrot.slane %v2741_v39, 1 }
  0x35   : > { %434 = vrot.lane.b32.xlu1 %v2808_v51, %s2585_s22  ;;  %432 = vrot.lane.b32.xlu0 %v2812_v42, %s2585_s22  ;;  %4374 = vst [vmem:[#allocation24_spill] sm:$0xff] %v2981_v8 }
  0x39   : > { %436 = vrot.lane.b32.xlu1 %v2823_v53, %s2585_s22  ;;  %494 = vrot.lane.b32.xlu0 %v2829_v28, %s2586_s23 }
  0x3d   : > { %496 = vrot.lane.b32.xlu1 %v2834_v12, %s2586_s23  ;;  %1289 = vrot.lane.b32.xlu0 %v1261_v29, %s2587_s24 }
  0x41   : > { %590 = vrot.lane.b32.xlu1 %v2738_v37, %s2588_s25  ;;  %559 = vrot.lane.b32.xlu0 %v2679_v17, %s2589_s26 }
  0x45   : > { %561 = vrot.lane.b32.xlu1 %v2674_v15, %s2589_s26  ;;  %1291 = vrot.lane.b32.xlu0 %v1263_v22, %s2587_s24 }
  0x49   : > { %592 = vrot.lane.b32.xlu1 %v2735_v36, %s2588_s25  ;;  %615 = vrot.lane.b32.xlu0 %v2823_v53, %s2590_s27 }
  0x4d   : > { %617 = vrot.lane.b32.xlu1 %v2854_v23, %s2590_s27  ;;  %642 = vrot.lane.b32.xlu0 %v2834_v12, %s2591_s28 }
  0x51   : > { %644 = vrot.lane.b32.xlu1 %v2862_v50, %s2591_s28  ;;  %438 = vrot.lane.b32.xlu0 %v2854_v23, %s2585_s22 }
  0x55   : > { %1293 = vrot.lane.b32.xlu1 %v1265_v20, %s2587_s24  ;;  %498 = vrot.lane.b32.xlu0 %v2862_v50, %s2586_s23 }
  0x59   : > { %594 = vrot.lane.b32.xlu1 %v2758_v48, %s2588_s25  ;;  %563 = vrot.lane.b32.xlu0 %v2712_v27, %s2589_s26 }
  0x5d   : > { %646 = vrot.lane.b32.xlu1 %v2879_v63, %s2591_s28  ;;  %619 = vrot.lane.b32.xlu0 %v2884_v49, %s2590_s27 }
  0x61   : > { %500 = vrot.lane.b32.xlu1 %v2879_v63, %s2586_s23  ;;  %440 = vrot.lane.b32.xlu0 %v2884_v49, %s2585_s22 }
  0x65   : > { %565 = vrot.lane.b32.xlu1 %v2701_v24, %s2589_s26  ;;  %1295 = vrot.lane.b32.xlu0 %v2782_v9, %s2587_s24  ;;  %v2932_v9 = vrot.slane %v2730_v35, 1 }
  0x67   : > { %4370 = vst [vmem:[#allocation20_spill] sm:$0xff] %v2932_v9 }
  0x69   : > { %621 = vrot.lane.b32.xlu1 %v2907_v41, %s2590_s27  ;;  %596 = vrot.lane.b32.xlu0 %v2751_v44, %s2588_s25 }
  0x6d   : > { %442 = vrot.lane.b32.xlu1 %v2907_v41, %s2585_s22  ;;  %648 = vrot.lane.b32.xlu0 %v2784_v19, %s2591_s28 }
  0x71   : > { %448 = vrot.lane.b32.xlu1 %v2918_v4, %s2585_s22  ;;  %446 = vrot.lane.b32.xlu0 %v2923_v5, %s2585_s22 }
  0x75   : > { %506 = vrot.lane.b32.xlu1 %v2788_v30, %s2586_s23  ;;  %502 = vrot.lane.b32.xlu0 %v2784_v19, %s2586_s23 }
  0x79   : > { %444 = vrot.lane.b32.xlu1 %v2932_v9, %s2585_s22  ;;  %508 = vrot.lane.b32.xlu0 %v2792_v31, %s2586_s23 }
  0x7d   : > { %1301 = vrot.lane.b32.xlu1 %v2794_v54, %s2587_s24  ;;  %1297 = vrot.lane.b32.xlu0 %v2796_v60, %s2587_s24 }
  0x81   : > { %504 = vrot.lane.b32.xlu1 %v2798_v56, %s2586_s23  ;;  %1303 = vrot.lane.b32.xlu0 %v2800_v3, %s2587_s24 }
  0x85   : > { %571 = vrot.lane.b32.xlu1 %v2747_v43, %s2589_s26  ;;  %567 = vrot.lane.b32.xlu0 %v2730_v35, %s2589_s26 }
  0x89   : > { %598 = vrot.lane.b32.xlu1 %v2769_v55, %s2588_s25  ;;  %573 = vrot.lane.b32.xlu0 %v2741_v39, %s2589_s26 }
  0x8b   : > { %v2956_v54 = vpop.permute.xlu1 %396  ;;  %v2958_v60 = vpop.permute.xlu0 %392 }
  0x8c   : > { %4371 = vst [vmem:[#allocation21_spill] sm:$0xff] %v2956_v54  ;;  %4372 = vst [vmem:[#allocation22_spill] sm:$0xff] %v2958_v60 }
  0x8d   : > { %604 = vrot.lane.b32.xlu1 %v2774_v58, %s2588_s25  ;;  %602 = vrot.lane.b32.xlu0 %v2778_v61, %s2588_s25 }
  0x8f   : > { %v2964_v3 = vpop.permute.xlu1 %398  ;;  %v2966_v35 = vpop.permute.xlu0 %394 }
  0x90   : > { %4373 = vst [vmem:[#allocation23_spill] sm:$0xff] %v2966_v35 }
  0x91   : > { %569 = vrot.lane.b32.xlu1 %v2727_v34, %s2589_s26  ;;  %1299 = vrot.lane.b32.xlu0 %v2802_v16, %s2587_s24  ;;  %v2554_v34 = vld [vmem:[%s2643_s20 + $0x60] sm:$0xff]  }
  0x92   : > { %v580_v39 = vshll.u32 %v2554_v34, 16  ;;  %v578_v46 = vshrl.u32 %v2554_v34, 16 }
  0x93   : > { %v2972_v43 = vpop.permute.xlu1 %402  ;;  %v2974_v18 = vpop.permute.xlu0 %400 }
  0x94   : > { %v582_v57 = vrot.slane %v580_v39, 1  ;;  %v1276_v2 = vrot.slane %v578_v46, 7  ;;  %v633_v58 = vrot.slane %v578_v46, 1 }
  0x95   : > { %627 = vrot.lane.b32.xlu1 %v2918_v4, %s2590_s27  ;;  %623 = vrot.lane.b32.xlu0 %v2932_v9, %s2590_s27  ;;  %v715_v4 = vshrl.u32 %v2555_v62, 16 }
  0x96   : > { %v3014_v59 = vor.u32 %v582_v57, %v578_v46  ;;  %v1277_v13 = vor.u32 %v1276_v2, %v580_v39  ;;  %v3027_v57 = vrot.slane %v2554_v34, 1 }
  0x97   : > { %v2983_v10 = vpop.permute.xlu1 %406  ;;  %v2985_v29 = vpop.permute.xlu0 %404  ;;  %v1278_v54 = vrot.slane %v715_v4, 7 }
  0x98   : > { %4375 = vst [vmem:[#allocation25_spill] sm:$0xff] %v2983_v10  ;;  %4382 = vst [vmem:[#allocation32_spill] sm:$0xff] %v3014_v59 }
  0x99   : > { %600 = vrot.lane.b32.xlu1 %v2764_v52, %s2588_s25  ;;  %629 = vrot.lane.b32.xlu0 %v2981_v8, %s2590_s27  ;;  %4384 = vst [vmem:[#allocation34_spill] sm:$0xff] %v3027_v57 }
  0x9b   : > { %v2992_v16 = vpop.permute.xlu1 %410  ;;  %v2994_v38 = vpop.permute.xlu0 %408 }
  0x9c   : > { %4376 = vst [vmem:[#allocation26_spill] sm:$0xff] %v2992_v16  ;;  %4377 = vst [vmem:[#allocation27_spill] sm:$0xff] %v2994_v38 }
  0x9d   : > { %654 = vrot.lane.b32.xlu1 %v2792_v31, %s2591_s28  ;;  %650 = vrot.lane.b32.xlu0 %v2798_v56, %s2591_s28  ;;  %v634_v31 = vrot.slane %v580_v39, 2  ;;  %v2557_v56 = vld [vmem:[%s2643_s20 + $0x78] sm:$0xff]  }
  0x9e   : > { %v1283_v44 = vshrl.u32 %v2557_v56, 16 }
  0x9f   : > { %v3000_v22 = vpop.permute.xlu1 %414  ;;  %v3002_v40 = vpop.permute.xlu0 %412 }
  0xa0   : > { %4378 = vst [vmem:[#allocation28_spill] sm:$0xff] %v3000_v22  ;;  %4379 = vst [vmem:[#allocation29_spill] sm:$0xff] %v3002_v40  ;;  %v1334_v52 = vrot.slane %v1283_v44, 1 }
  0xa1   : > { %625 = vrot.lane.b32.xlu1 %v2923_v5, %s2590_s27  ;;  %656 = vrot.lane.b32.xlu0 %v2818_v47, %s2591_s28 }
  0xa3   : > { %v3008_v20 = vpop.permute.xlu1 %430  ;;  %v3010_v21 = vpop.permute.xlu0 %428 }
  0xa4   : > { %4380 = vst [vmem:[#allocation30_spill] sm:$0xff] %v3008_v20  ;;  %4381 = vst [vmem:[#allocation31_spill] sm:$0xff] %v3010_v21 }
  0xa5   : > { %652 = vrot.lane.b32.xlu1 %v2788_v30, %s2591_s28  ;;  %450 = vrot.lane.b32.xlu0 %v2981_v8, %s2585_s22  ;;  %v3034_v8 = vor.u32 %v634_v31, %v633_v58 }
  0xa7   : > { %v3019_v45 = vpop.permute.xlu1 %434  ;;  %v3021_v14 = vpop.permute.xlu0 %432  ;;  %4385 = vst [vmem:[#allocation35_spill] sm:$0xff] %v3034_v8 }
  0xa8   : > { %4383 = vst [vmem:[#allocation33_spill] sm:$0xff] %v3021_v14  ;;  %v717_v14 = vshll.u32 %v2555_v62, 16 }
  0xa9   : > { %1233 = vrot.lane.b32.xlu1 %v3014_v59, %s2584_s21  ;;  %510 = vrot.lane.b32.xlu0 %v2818_v47, %s2586_s23 }
  0xaa   : > { %v1279_v46 = vor.u32 %v1278_v54, %v717_v14  ;;  %v719_v58 = vrot.slane %v717_v14, 1  ;;  %v2556_v54 = vld [vmem:[%s2643_s20 + $0x70] sm:$0xff]   ;;  %v771_v38 = vrot.slane %v717_v14, 2 }
  0xab   : > { %v3029_v61 = vpop.permute.xlu1 %436  ;;  %v3031_v22 = vpop.permute.xlu0 %494  ;;  %v1227_v60 = vshrl.u32 %v2556_v54, 16  ;;  %v1229_v40 = vshll.u32 %v2556_v54, 16  ;;  %v1239_v63 = vrot.slane %v2556_v54, 1 }
  0xac   : > { %v3057_v35 = vor.u32 %v719_v58, %v715_v4 }
  0xad   : > { %1305 = vrot.lane.b32.xlu1 %v1277_v13, %s2587_s24  ;;  %1240 = vrot.lane.b32.xlu0 %v3027_v57, %s2585_s22  ;;  %v1280_v10 = vrot.slane %v1227_v60, 7  ;;  %v1247_v16 = vrot.slane %v1229_v40, 2 }
  0xae   : > { %4389 = vst [vmem:[#allocation39_spill] sm:$0xff] %v3057_v35 }
  0xaf   : > { %v3038_v2 = vpop.permute.xlu1 %496  ;;  %v3040_v39 = vpop.permute.xlu0 %1289 }
  0xb1   : > { %1249 = vrot.lane.b32.xlu1 %v3034_v8, %s2586_s23  ;;  %575 = vrot.lane.b32.xlu0 %v2554_v34, %s2589_s26 }
  0xb3   : > { %v3045_v47 = vpop.permute.xlu1 %590  ;;  %v3047_v13 = vpop.permute.xlu0 %559 }
  0xb4   : > { %4386 = vst [vmem:[#allocation36_spill] sm:$0xff] %v3045_v47  ;;  %4387 = vst [vmem:[#allocation37_spill] sm:$0xff] %v3047_v13 }
  0xb5   : > { %1307 = vrot.lane.b32.xlu1 %v1279_v46, %s2587_s24  ;;  %606 = vrot.lane.b32.xlu0 %v3014_v59, %s2588_s25  ;;  %v3068_v46 = vrot.slane %v2555_v62, 1  ;;  %v770_v59 = vrot.slane %v715_v4, 1  ;;  %v1281_v4 = vor.u32 %v1280_v10, %v1229_v40 }
  0xb7   : > { %v3052_v31 = vpop.permute.xlu1 %561  ;;  %v3054_v20 = vpop.permute.xlu0 %1291  ;;  %4392 = vst [vmem:[#allocation42_spill] sm:$0xff] %v3068_v46 }
  0xb8   : > { %4388 = vst [vmem:[#allocation38_spill] sm:$0xff] %v3052_v31 }
  0xb9   : > { %1313 = vrot.lane.b32.xlu1 %v2555_v62, %s2589_s26  ;;  %631 = vrot.lane.b32.xlu0 %v3027_v57, %s2590_s27  ;;  %v3078_v57 = vor.u32 %v771_v38, %v770_v59 }
  0xbb   : > { %v3062_v34 = vpop.permute.xlu1 %592  ;;  %v3064_v21 = vpop.permute.xlu0 %615  ;;  %4395 = vst [vmem:[#allocation45_spill] sm:$0xff] %v3078_v57 }
  0xbc   : > { %4390 = vst [vmem:[#allocation40_spill] sm:$0xff] %v3062_v34  ;;  %4391 = vst [vmem:[#allocation41_spill] sm:$0xff] %v3064_v21 }
  0xbd   : > { %1321 = vrot.lane.b32.xlu1 %v3057_v35, %s2588_s25  ;;  %658 = vrot.lane.b32.xlu0 %v3034_v8, %s2591_s28  ;;  %v1231_v8 = vrot.slane %v1229_v40, 1  ;;  %v1286_v40 = vshll.u32 %v2557_v56, 16 }
  0xbf   : > { %v3072_v58 = vpop.permute.xlu1 %617  ;;  %v3074_v19 = vpop.permute.xlu0 %642  ;;  %v1232_v41 = vor.u32 %v1231_v8, %v1227_v60  ;;  %v1335_v48 = vrot.slane %v1286_v40, 2 }
  0xc0   : > { %4393 = vst [vmem:[#allocation43_spill] sm:$0xff] %v3072_v58  ;;  %4394 = vst [vmem:[#allocation44_spill] sm:$0xff] %v3074_v19 }
  0xc1   : > { %1328 = vrot.lane.b32.xlu1 %v3068_v46, %s2590_s27  ;;  %1235 = vrot.lane.b32.xlu0 %v3057_v35, %s2584_s21  ;;  %v1246_v35 = vrot.slane %v1227_v60, 1  ;;  %v1285_v60 = vrot.slane %v1283_v44, 7 }
  0xc3   : > { %v3082_v14 = vpop.permute.xlu1 %644  ;;  %v3084_v62 = vpop.permute.xlu0 %438 }
  0xc4   : > { %4396 = vst [vmem:[#allocation46_spill] sm:$0xff] %v3082_v14 }
  0xc5   : > { %1337 = vrot.lane.b32.xlu1 %v3078_v57, %s2591_s28  ;;  %1242 = vrot.lane.b32.xlu0 %v3068_v46, %s2585_s22  ;;  %v1248_v46 = vor.u32 %v1247_v16, %v1246_v35  ;;  %v1288_v35 = vor.u32 %v1286_v40, %v1285_v60  ;;  %v1319_v16 = vrot.slane %v1286_v40, 1 }
  0xc7   : > { %v3090_v38 = vpop.permute.xlu1 %1293  ;;  %v3092_v59 = vpop.permute.xlu0 %498  ;;  %v1320_v49 = vor.u32 %v1319_v16, %v1283_v44  ;;  %v512_v44 = vrot.slane %v2649_v1, 2 }
  0xc9   : > { %1309 = vrot.lane.b32.xlu1 %v1281_v4, %s2587_s24  ;;  %1251 = vrot.lane.b32.xlu0 %v3078_v57, %s2586_s23 }
  0xcb   : > { %v3098_v30 = vpop.permute.xlu1 %594  ;;  %v3100_v10 = vpop.permute.xlu0 %563 }
  0xcc   : > { %4397 = vst [vmem:[#allocation47_spill] sm:$0xff] %v3098_v30  ;;  %4398 = vst [vmem:[#allocation48_spill] sm:$0xff] %v3100_v10 }
  0xcd   : > { %1323 = vrot.lane.b32.xlu1 %v1232_v41, %s2588_s25  ;;  %1315 = vrot.lane.b32.xlu0 %v2556_v54, %s2589_s26 }
  0xcf   : > { %v3104_v9 = vpop.permute.xlu1 %646  ;;  %v3106_v8 = vpop.permute.xlu0 %619 }
  0xd0   : > { %4399 = vst [vmem:[#allocation49_spill] sm:$0xff] %v3104_v9  ;;  %4400 = vst [vmem:[#allocation50_spill] sm:$0xff] %v3106_v8 }
  0xd1   : > { %1339 = vrot.lane.b32.xlu1 %v1248_v46, %s2591_s28  ;;  %1330 = vrot.lane.b32.xlu0 %v1239_v63, %s2590_s27 }
  0xd3   : > { %v3110_v4 = vpop.permute.xlu1 %500  ;;  %v3112_v57 = vpop.permute.xlu0 %440 }
  0xd5   : > { %1244 = vrot.lane.b32.xlu1 %v1239_v63, %s2585_s22  ;;  %1237 = vrot.lane.b32.xlu0 %v1232_v41, %s2584_s21  ;;  %v1336_v63 = vor.u32 %v1335_v48, %v1334_v52  ;;  %v1327_v41 = vrot.slane %v2557_v56, 1 }
  0xd7   : > { %v3116_v54 = vpop.permute.xlu1 %565  ;;  %v3118_v5 = vpop.permute.xlu0 %1295 }
  0xd8   : > { %4401 = vst [vmem:[#allocation51_spill] sm:$0xff] %v3116_v54 }
  0xd9   : > { %1311 = vrot.lane.b32.xlu1 %v1288_v35, %s2587_s24  ;;  %1253 = vrot.lane.b32.xlu0 %v1248_v46, %s2586_s23  ;;  %v4405_v46 = vshrl.u32 %v2659_v7, 16  ;;  %v4406_v35 = vshll.u32 %v2659_v7, 16 }
  0xdb   : > { %v3122_v55 = vpop.permute.xlu1 %621  ;;  %v3124_v50 = vpop.permute.xlu0 %596  ;;  %v455_v40 = vrot.slane %v4405_v46, 1 }
  0xdc   : > { %4402 = vst [vmem:[#allocation52_spill] sm:$0xff] %v3122_v55  ;;  %4403 = vst [vmem:[#allocation53_spill] sm:$0xff] %v3124_v50 }
  0xdd   : > { %1325 = vrot.lane.b32.xlu1 %v1320_v49, %s2588_s25  ;;  %1317 = vrot.lane.b32.xlu0 %v2557_v56, %s2589_s26  ;;  %v456_v49 = vrot.slane %v4406_v35, 2  ;;  %v4408_v56 = vor.u32 %v2896_v33, %v2892_v32 }
  0xdf   : > { %v3128_v60 = vpop.permute.xlu1 %442  ;;  %v3130_v23 = vpop.permute.xlu0 %648  ;;  %v457_v1 = vor.u32 %v456_v49, %v455_v40  ;;  %v4411_v40 = vrot.slane %v2659_v7, 1 }
  0xe0   : > { %4404 = vst [vmem:[#allocation54_spill] sm:$0xff] %v3130_v23 }
  0xe1   : > { %1341 = vrot.lane.b32.xlu1 %v1336_v63, %s2591_s28  ;;  %1332 = vrot.lane.b32.xlu0 %v1327_v41, %s2590_s27  ;;  %v513_v41 = vrot.slane %v2659_v7, 2 }
  0xe3   : > { %v3139_v48 = vpop.permute.xlu1 %448  ;;  %v3141_v52 = vpop.permute.xlu0 %446 }
  0xe4   : > { %4407 = vst [vmem:[#allocation55_spill] sm:$0xff] %v3139_v48 }
  0xe5   : > { %524 = vrot.lane.b32.xlu1 %v512_v44, %s2587_s24  ;;  %488 = vrot.lane.b32.xlu0 %v4408_v56, %s2586_s23 }
  0xe7   : > { %v3148_v16 = vpop.permute.xlu1 %506  ;;  %v3150_v63 = vpop.permute.xlu0 %502 }
  0xe9   : > { %553 = vrot.lane.b32.xlu1 %v2659_v7, %s2589_s26  ;;  %490 = vrot.lane.b32.xlu0 %v457_v1, %s2586_s23 }
  0xeb   : > { %v3156_v46 = vpop.permute.xlu1 %444  ;;  %v3158_v44 = vpop.permute.xlu0 %508 }
  0xec   : > { %4409 = vst [vmem:[#allocation56_spill] sm:$0xff] %v3156_v46  ;;  %4410 = vst [vmem:[#allocation57_spill] sm:$0xff] %v3158_v44  ;;  %v4415_v46 = vshll.u32 %v2646_v0, 16 }
  0xed   : > { %584 = vrot.lane.b32.xlu1 %v2709_v26, %s2588_s25  ;;  %526 = vrot.lane.b32.xlu0 %v513_v41, %s2587_s24  ;;  %v4414_v26 = vshrl.u32 %v2646_v0, 16 }
  0xee   : > { %v459_v44 = vrot.slane %v4415_v46, 2  ;;  %v514_v46 = vrot.slane %v2646_v0, 2 }
  0xef   : > { %v3163_v32 = vpop.permute.xlu1 %1301  ;;  %v3165_v33 = vpop.permute.xlu0 %1297  ;;  %v458_v56 = vrot.slane %v4414_v26, 1 }
  0xf1   : > { %609 = vrot.lane.b32.xlu1 %v4411_v40, %s2590_s27  ;;  %555 = vrot.lane.b32.xlu0 %v2646_v0, %s2589_s26 }
  0xf3   : > { %v3172_v35 = vpop.permute.xlu1 %504  ;;  %v3174_v49 = vpop.permute.xlu0 %1303 }
  0xf4   : > { %4412 = vst [vmem:[#allocation58_spill] sm:$0xff] %v3172_v35  ;;  %4413 = vst [vmem:[#allocation59_spill] sm:$0xff] %v3174_v49 }
  0xf5   : > { %636 = vrot.lane.b32.xlu1 %v457_v1, %s2591_s28  ;;  %586 = vrot.lane.b32.xlu0 %v2668_v11, %s2588_s25  ;;  %v460_v1 = vor.u32 %v459_v44, %v458_v56 }
  0xf7   : > { %v3183_v7 = vpop.permute.xlu1 %571  ;;  %v3185_v40 = vpop.permute.xlu0 %567 }
  0xf8   : > { %4416 = vst [vmem:[#allocation60_spill] sm:$0xff] %v3183_v7 }
  0xf9   : > { %661 = vrot.lane.b32.xlu1 %v513_v41, %s2592_s29  ;;  %611 = vrot.lane.b32.xlu0 %v2812_v42, %s2590_s27 }
  0xfb   : > { %v3190_v35 = vpop.permute.xlu1 %598  ;;  %v3192_v26 = vpop.permute.xlu0 %573 }
  0xfc   : > { %4417 = vst [vmem:[#allocation61_spill] sm:$0xff] %v3190_v35  ;;  %4418 = vst [vmem:[#allocation62_spill] sm:$0xff] %v3192_v26 }
  0xfd   : > { %690 = vrot.lane.b32.xlu1 %v2646_v0, %s2593_s30  ;;  %638 = vrot.lane.b32.xlu0 %v460_v1, %s2591_s28 }
  0xff   : > { %v3198_v49 = vpop.permute.xlu1 %604  ;;  %v3200_v48 = vpop.permute.xlu0 %602 }
 0x100   : > { %4419 = vst [vmem:[#allocation63_spill] sm:$0xff] %v3198_v49  ;;  %4420 = vst [vmem:[#allocation64_spill] sm:$0xff] %v3200_v48 }
 0x101   : > { %663 = vrot.lane.b32.xlu1 %v514_v46, %s2592_s29  ;;  %492 = vrot.lane.b32.xlu0 %v460_v1, %s2586_s23  ;;  %s2601_s23 = smov 48  }
 0x103   : > { %v3204_v41 = vpop.permute.xlu1 %569  ;;  %v3206_v44 = vpop.permute.xlu0 %1299 }
 0x104   : > { %4421 = vst [vmem:[#allocation65_spill] sm:$0xff] %v3204_v41  ;;  %4422 = vst [vmem:[#allocation66_spill] sm:$0xff] %v3206_v44  ;;  %v859_v41 = vsel %vm851_vm0, %v2656_v6, %v2964_v3 }
 0x105   : > { %528 = vrot.lane.b32.xlu1 %v514_v46, %s2587_s24  ;;  %721 = vrot.lane.b32.xlu0 %v2668_v11, %s2594_s5  ;;  %v884_v44 = vsel %vm876_vm2, %v859_v41, %v3019_v45 }
 0x107   : > { %v3211_v0 = vpop.permute.xlu1 %627  ;;  %v3213_v56 = vpop.permute.xlu0 %623 }
 0x108   : > { %4423 = vst [vmem:[#allocation67_spill] sm:$0xff] %v3211_v0  ;;  %4424 = vst [vmem:[#allocation68_spill] sm:$0xff] %v3213_v56 }
 0x109   : > { %746 = vrot.lane.b32.xlu1 %v2812_v42, %s2595_s6  ;;  %692 = vrot.lane.b32.xlu0 %v2656_v6, %s2593_s30  ;;  %v3230_v42 = vsel %vm901_vm1, %v884_v44, %v3031_v22  ;;  %v2558_v22 = vld [vmem:[%s4275_s1] sm:$0xff]   ;;  %v4318_v44 = vmov 0.0  }
 0x10a   : > { %4427 = vst [vmem:[#allocation71_spill] sm:$0xff] %v3230_v42  ;;  %v1362_v3 = vsel %vm926_vm3, %v3230_v42, %v3040_v39  ;;  %2457 = vmatprep.subr.bf16.mxu0 %v4318_v44  ;;  %2503 = vmatprep.subr.bf16.mxu1 %v4318_v44  ;;  %v4467_v42 = vld [vmem:[#allocation26_spill] sm:$0xff] }
 0x10b   : > { %v3222_v11 = vpop.permute.xlu1 %600  ;;  %v3226_v49 = vpop.permute.xlu0 %629  ;;  %v1385_v45 = vsel %vm951_vm4, %v1362_v3, %v3047_v13  ;;  %v861_v3 = vsel %vm851_vm0, %v2679_v17, %v2974_v18  ;;  %2458 = vmatpush3.bf16.msra.mxu0 %v2558_v22  ;;  %2508 = vmatpush3.bf16.msra.mxu1 %v2558_v22 }
 0x10c   : > { %4425 = vst [vmem:[#allocation69_spill] sm:$0xff] %v3222_v11  ;;  %4426 = vst [vmem:[#allocation70_spill] sm:$0xff] %v3226_v49  ;;  %v1400_v39 = vsel %vm976_vm5, %v1385_v45, %v3045_v47  ;;  %v886_v45 = vsel %vm876_vm2, %v861_v3, %v3029_v61  ;;  %2459 = vmatprep.subr.bf16.mxu0 %v4318_v44  ;;  %2504 = vmatprep.subr.bf16.mxu1 %v4318_v44 }
 0x10d   : > { %723 = vrot.lane.b32.xlu1 %v2705_v25, %s2594_s5  ;;  %557 = vrot.lane.b32.xlu0 %v2656_v6, %s2589_s26  ;;  %v3271_v18 = vsel %vm901_vm1, %v886_v45, %v3038_v2 }
 0x10e   : > { %4431 = vst [vmem:[#allocation75_spill] sm:$0xff] %v3271_v18  ;;  %v1364_v61 = vsel %vm926_vm3, %v3271_v18, %v3054_v20  ;;  %v2560_v20 = vld [vmem:[%s4275_s1 + $0x10] sm:$0xff]  }
 0x10f   : > { %v3241_v41 = vpop.permute.xlu1 %654  ;;  %v3243_v11 = vpop.permute.xlu0 %650 }
 0x110   : > { %4428 = vst [vmem:[#allocation72_spill] sm:$0xff] %v3241_v41  ;;  %4429 = vst [vmem:[#allocation73_spill] sm:$0xff] %v3243_v11 }
 0x111   : > { %588 = vrot.lane.b32.xlu1 %v2705_v25, %s2588_s25  ;;  %773 = vrot.lane.b32.xlu0 %v460_v1, %s2596_s9  ;;  %v1415_v25 = vsel %vm1001_vm6, %v1400_v39, %v3064_v21  ;;  %v2559_v39 = vld [vmem:[%s4275_s1 + $0x8] sm:$0xff]  }
 0x112   : > { %v1430_v1 = vsel %vm1026_vm7, %v1415_v25, %v3074_v19  ;;  %2460 = vmatpush3.bf16.msra.mxu0 %v2559_v39  ;;  %2509 = vmatpush3.bf16.msra.mxu1 %v2559_v39 }
 0x113   : > { %v3259_v13 = vpop.permute.xlu1 %625  ;;  %v3266_v47 = vpop.permute.xlu0 %656  ;;  %v1447_v22 = vshll.u32 %v1430_v1, 16  ;;  %2461 = vmatprep.subr.bf16.mxu0 %v4318_v44  ;;  %2505 = vmatprep.subr.bf16.mxu1 %v4318_v44  ;;  %v1445_v18 = vshrl.u32 %v1430_v1, 16  ;;  %v2600_v1 = vmov 65535  }
 0x114   : > { %4430 = vst [vmem:[#allocation74_spill] sm:$0xff] %v3266_v47 }
 0x115   : > { %798 = vrot.lane.b32.xlu1 %v514_v46, %s2598_s10  ;;  %748 = vrot.lane.b32.xlu0 %v2808_v51, %s2595_s6  ;;  %v1386_v46 = vsel %vm951_vm4, %v1364_v61, %v3052_v31  ;;  %v1449_v39 = vrot.slane %v1447_v22, 1  ;;  %v515_v22 = vrot.slane %v2656_v6, 2 }
 0x116   : > { %v1401_v25 = vsel %vm976_vm5, %v1386_v46, %v3062_v34  ;;  %2462 = vmatpush3.bf16.msra.mxu0 %v2560_v20  ;;  %2510 = vmatpush3.bf16.msra.mxu1 %v2560_v20 }
 0x117   : > { %v3283_v3 = vpop.permute.xlu1 %652  ;;  %v3285_v2 = vpop.permute.xlu0 %450  ;;  %v1416_v45 = vsel %vm1001_vm6, %v1401_v25, %v3072_v58  ;;  %2463 = vmatprep.subr.bf16.mxu0 %v4318_v44  ;;  %2506 = vmatprep.subr.bf16.mxu1 %v4318_v44  ;;  %v1450_v46 = vor.u32 %v1449_v39, %v1445_v18  ;;  %v863_v44 = vsel %vm851_vm0, %v2674_v15, %v2972_v43 }
 0x118   : > { %v1431_v31 = vsel %vm1026_vm7, %v1416_v45, %v3082_v14  ;;  %v1992_v45 = vsel %vm1990_vm8, 4294967295, %v2600_v1  ;;  %v888_v39 = vsel %vm876_vm2, %v863_v44, %v3084_v62  ;;  %vm4351_vm8 = vcmask 343040  }
 0x119   : > { %775 = vrot.lane.b32.xlu1 %v2829_v28, %s2596_s9  ;;  %613 = vrot.lane.b32.xlu0 %v2808_v51, %s2590_s27  ;;  %v2561_v51 = vld [vmem:[%s4275_s1 + $0x18] sm:$0xff]   ;;  %v1453_v25 = vshll.u32 %v1431_v31, 16  ;;  %v1993_v18 = vsel %vm1991_vm9, %v1992_v45, 0  ;;  %v3335_v1 = vsel %vm901_vm1, %v888_v39, %v3092_v59  ;;  %v1451_v62 = vshrl.u32 %v1431_v31, 16 }
 0x11a   : > { %2464 = vmatpush3.bf16.msra.mxu0 %v2561_v51  ;;  %2511 = vmatpush3.bf16.msra.mxu1 %v2561_v51  ;;  %4433 = vst [vmem:[#allocation76_spill] sm:$0xff] %v3335_v1  ;;  %v1366_v44 = vsel %vm926_vm3, %v3335_v1, %v3090_v38  ;;  %vm1201_vm9 = vcmask 367616  }
 0x11b   : > { %v3302_v61 = vpop.permute.xlu1 %1233  ;;  %v3306_v19 = vpop.permute.xlu0 %510  ;;  %v1455_v43 = vrot.slane %v1453_v25, 1  ;;  %v1387_v59 = vsel %vm951_vm4, %v1366_v44, %v3100_v10  ;;  %v516_v44 = vrot.slane %v2679_v17, 2 }
 0x11c   : > { %v1402_v38 = vsel %vm976_vm5, %v1387_v59, %v3098_v30 }
 0x11d   : > { %640 = vrot.lane.b32.xlu1 %v2829_v28, %s2591_s28  ;;  %827 = vrot.lane.b32.xlu0 %v2656_v6, %s2599_s19  ;;  %v2562_v28 = vld [vmem:[%s4275_s1 + $0x20] sm:$0x3f]   ;;  %v4432_v6 = vmov 0.0   ;;  %v1456_v31 = vor.u32 %v1455_v43, %v1451_v62  ;;  %v1417_v25 = vsel %vm1001_vm6, %v1402_v38, %v3106_v8 }
 0x11e   : > { %2465 = vmatprep.subr.bf16.mxu0 %v4432_v6  ;;  %v1995_v58 = vand.u32 %v2562_v28, %v1993_v18  ;;  %2507 = vmatprep.subr.bf16.mxu1 %v4432_v6  ;;  %v1432_v18 = vsel %vm1026_vm7, %v1417_v25, %v3104_v9 }
 0x11f   : > { %v3318_v20 = vpop.permute.xlu1 %1305  ;;  %v3326_v14 = vpop.permute.xlu0 %1240  ;;  %2467 = vmatprep.mubr.msk.bf16.mxu0 %vm4347_vm10, %v4432_v6  ;;  %2487 = vmatprep.mubr.msk.bf16.mxu1 %vm4347_vm10, %v4432_v6  ;;  %v1459_v43 = vshll.u32 %v1432_v18, 16  ;;  %vm4349_vm10 = vcmask 392192  }
 0x120   : > { %2466 = vmatpush3.bf16.msra.mxu0 %v1995_v58  ;;  %2512 = vmatpush3.bf16.msra.mxu1 %v1995_v58 }
 0x121   : > { %1517 = vrot.lane.b32.xlu1 %v1450_v46, %s2601_s23  ;;  %800 = vrot.lane.b32.xlu0 %v515_v22, %s2598_s10 }
 0x123   : > { %v3338_v34 = vpop.permute.xlu1 %1249  ;;  %v3340_v51 = vpop.permute.xlu0 %575 }
 0x125   : > { %829 = vrot.lane.b32.xlu1 %v2679_v17, %s2599_s19  ;;  %665 = vrot.lane.b32.xlu0 %v515_v22, %s2592_s29 }
 0x127   : > { %v3354_v58 = vpop.permute.xlu1 %1307  ;;  %v3356_v46 = vpop.permute.xlu0 %606 }
 0x129   : > { %1519 = vrot.lane.b32.xlu1 %v1456_v31, %s2601_s23  ;;  %694 = vrot.lane.b32.xlu0 %v2679_v17, %s2593_s30  ;;  %v1461_v31 = vrot.slane %v1459_v43, 1 }
 0x12b   : > { %v3365_v28 = vpop.permute.xlu1 %1313  ;;  %v3367_v45 = vpop.permute.xlu0 %631 }
 0x12c   : > { %4434 = vst [vmem:[#allocation77_spill] sm:$0xff] %v3365_v28 }
 0x12d   : > { %530 = vrot.lane.b32.xlu1 %v515_v22, %s2587_s24  ;;  %725 = vrot.lane.b32.xlu0 %v2738_v37, %s2594_s5  ;;  %v1457_v37 = vshrl.u32 %v1432_v18, 16 }
 0x12f   : > { %v3374_v39 = vpop.permute.xlu1 %1321  ;;  %v3376_v62 = vpop.permute.xlu0 %658  ;;  %v1462_v17 = vor.u32 %v1461_v31, %v1457_v37  ;;  %v2563_v31 = vld [vmem:[%s2643_s20 + $0x28] sm:$0xff]  }
 0x130   : > { %4435 = vst [vmem:[#allocation78_spill] sm:$0xff] %v3374_v39  ;;  %v517_v9 = vrot.slane %v2563_v31, 2 }
 0x131   : > { %777 = vrot.lane.b32.xlu1 %v2834_v12, %s2596_s9  ;;  %750 = vrot.lane.b32.xlu0 %v2823_v53, %s2595_s6  ;;  %v865_v53 = vsel %vm851_vm0, %v2712_v27, %v2985_v29 }
 0x132   : > { %v890_v25 = vsel %vm876_vm2, %v865_v53, %v3112_v57  ;;  %v3415_v57 = vrot.slane %v2712_v27, 2  ;;  %v3431_v27 = vrot.slane %v2701_v24, 2 }
 0x133   : > { %v3383_v59 = vpop.permute.xlu1 %1328  ;;  %v3385_v22 = vpop.permute.xlu0 %1235  ;;  %v3405_v18 = vsel %vm901_vm1, %v890_v25, %v3110_v4 }
 0x134   : > { %4436 = vst [vmem:[#allocation79_spill] sm:$0xff] %v3383_v59  ;;  %4437 = vst [vmem:[#allocation80_spill] sm:$0xff] %v3385_v22  ;;  %v1368_v29 = vsel %vm926_vm3, %v3405_v18, %v3118_v5  ;;  %v4469_v59 = vld [vmem:[#allocation25_spill] sm:$0xff] }
 0x135   : > { %831 = vrot.lane.b32.xlu1 %v2674_v15, %s2599_s19  ;;  %802 = vrot.lane.b32.xlu0 %v516_v44, %s2598_s10  ;;  %4441 = vst [vmem:[#allocation84_spill] sm:$0xff] %v3405_v18  ;;  %v1388_v4 = vsel %vm951_vm4, %v1368_v29, %v3116_v54 }
 0x137   : > { %v3390_v38 = vpop.permute.xlu1 %1337  ;;  %v3395_v12 = vpop.permute.xlu0 %1242 }
 0x138   : > { %4438 = vst [vmem:[#allocation81_spill] sm:$0xff] %v3390_v38  ;;  %4439 = vst [vmem:[#allocation82_spill] sm:$0xff] %v3395_v12  ;;  %v4465_v12 = vld [vmem:[#allocation9_spill] sm:$0xff] }
 0x139   : > { %667 = vrot.lane.b32.xlu1 %v516_v44, %s2592_s29  ;;  %1521 = vrot.lane.b32.xlu0 %v1462_v17, %s2601_s23  ;;  %v1403_v17 = vsel %vm976_vm5, %v1388_v4, %v3124_v50  ;;  %v4447_v4 = vld [vmem:[#allocation13_spill] sm:$0xff] }
 0x13a   : > { %v1418_v5 = vsel %vm1001_vm6, %v1403_v17, %v3122_v55  ;;  %v4450_v17 = vld [vmem:[#allocation14_spill] sm:$0xff]  ;;  %v4468_v38 = vld [vmem:[#allocation17_spill] sm:$0xff] }
 0x13b   : > { %v3401_v15 = vpop.permute.xlu1 %1309  ;;  %v3407_v43 = vpop.permute.xlu0 %1251  ;;  %v1433_v29 = vsel %vm1026_vm7, %v1418_v5, %v3130_v23 }
 0x13c   : > { %4440 = vst [vmem:[#allocation83_spill] sm:$0xff] %v3401_v15  ;;  %4442 = vst [vmem:[#allocation85_spill] sm:$0xff] %v3407_v43 }
 0x13d   : > { %727 = vrot.lane.b32.xlu1 %v2735_v36, %s2594_s5  ;;  %696 = vrot.lane.b32.xlu0 %v2563_v31, %s2593_s30  ;;  %v2564_v31 = vld [vmem:[%s2643_s20 + $0x30] sm:$0xff]  }
 0x13f   : > { %v3419_v37 = vpop.permute.xlu1 %1323  ;;  %v3423_v53 = vpop.permute.xlu0 %1315 }
 0x140   : > { %4443 = vst [vmem:[#allocation86_spill] sm:$0xff] %v3419_v37  ;;  %4444 = vst [vmem:[#allocation87_spill] sm:$0xff] %v3423_v53  ;;  %v4464_v53 = vld [vmem:[#allocation2_spill] sm:$0xff] }
 0x141   : > { %536 = vrot.lane.b32.xlu1 %v3415_v57, %s2587_s24  ;;  %532 = vrot.lane.b32.xlu0 %v516_v44, %s2587_s24  ;;  %v1465_v44 = vshll.u32 %v1433_v29, 16 }
 0x143   : > { %v3433_v36 = vpop.permute.xlu1 %1339  ;;  %v3437_v25 = vpop.permute.xlu0 %1330  ;;  %v1467_v5 = vrot.slane %v1465_v44, 1 }
 0x144   : > { %4445 = vst [vmem:[#allocation88_spill] sm:$0xff] %v3433_v36  ;;  %4446 = vst [vmem:[#allocation89_spill] sm:$0xff] %v3437_v25  ;;  %v4461_v25 = vld [vmem:[#allocation19_spill] sm:$0xff] }
 0x145   : > { %752 = vrot.lane.b32.xlu1 %v4447_v4, %s2595_s6  ;;  %538 = vrot.lane.b32.xlu0 %v3431_v27, %s2587_s24  ;;  %v1463_v4 = vshrl.u32 %v1433_v29, 16 }
 0x147   : > { %v3445_v24 = vpop.permute.xlu1 %1244  ;;  %v3447_v8 = vpop.permute.xlu0 %1237  ;;  %v1468_v1 = vor.u32 %v1467_v5, %v1463_v4  ;;  %v3490_v4 = vld [vmem:[%s2643_s20 + $0x48] sm:$0xff]  }
 0x148   : > { %4448 = vst [vmem:[#allocation13_spill] sm:$0xff] %v3445_v24  ;;  %4449 = vst [vmem:[#allocation90_spill] sm:$0xff] %v3447_v8  ;;  %v4460_v8 = vld [vmem:[#allocation16_spill] sm:$0xff] }
 0x149   : > { %534 = vrot.lane.b32.xlu1 %v517_v9, %s2587_s24  ;;  %779 = vrot.lane.b32.xlu0 %v4450_v17, %s2596_s9  ;;  %v3465_v17 = vld [vmem:[%s2643_s20 + $0x40] sm:$0xff]  }
 0x14a   : > { %v520_v44 = vrot.slane %v3465_v17, 2 }
 0x14b   : > { %v3452_v30 = vpop.permute.xlu1 %1311  ;;  %v3454_v10 = vpop.permute.xlu0 %1253 }
 0x14c   : > { %4451 = vst [vmem:[#allocation14_spill] sm:$0xff] %v3452_v30  ;;  %4452 = vst [vmem:[#allocation91_spill] sm:$0xff] %v3454_v10  ;;  %v4459_v30 = vld [vmem:[#allocation4_spill] sm:$0xff] }
 0x14d   : > { %833 = vrot.lane.b32.xlu1 %v2564_v31, %s2599_s19  ;;  %804 = vrot.lane.b32.xlu0 %v517_v9, %s2598_s10 }
 0x14f   : > { %v3459_v23 = vpop.permute.xlu1 %1325  ;;  %v3461_v55 = vpop.permute.xlu0 %1317 }
 0x150   : > { %4453 = vst [vmem:[#allocation92_spill] sm:$0xff] %v3459_v23  ;;  %4454 = vst [vmem:[#allocation93_spill] sm:$0xff] %v3461_v55 }
 0x151   : > { %669 = vrot.lane.b32.xlu1 %v517_v9, %s2592_s29  ;;  %1523 = vrot.lane.b32.xlu0 %v1468_v1, %s2601_s23 }
 0x153   : > { %v3469_v50 = vpop.permute.xlu1 %1341  ;;  %v3471_v54 = vpop.permute.xlu0 %1332 }
 0x154   : > { %4455 = vst [vmem:[#allocation94_spill] sm:$0xff] %v3469_v50  ;;  %4456 = vst [vmem:[#allocation95_spill] sm:$0xff] %v3471_v54  ;;  %v4457_v54 = vld [vmem:[#allocation5_spill] sm:$0xff] }
 0x155   : > { %675 = vrot.lane.b32.xlu1 %v520_v44, %s2592_s29  ;;  %673 = vrot.lane.b32.xlu0 %v3431_v27, %s2592_s29 }
 0x157   : > { %v3476_v29 = vpop.permute.xlu1 %524  ;;  %v3478_v5 = vpop.permute.xlu0 %488 }
 0x159   : > { %702 = vrot.lane.b32.xlu1 %v3465_v17, %s2593_s30  ;;  %698 = vrot.lane.b32.xlu0 %v2564_v31, %s2593_s30  ;;  %v4458_v31 = vld [vmem:[#allocation3_spill] sm:$0xff] }
 0x15b   : > { %v3483_v9 = vpop.permute.xlu1 %553  ;;  %v3485_v1 = vpop.permute.xlu0 %490 }
 0x15d   : > { %671 = vrot.lane.b32.xlu1 %v3415_v57, %s2592_s29  ;;  %704 = vrot.lane.b32.xlu0 %v3490_v4, %s2593_s30 }
 0x15f   : > { %v3494_v18 = vpop.permute.xlu1 %584  ;;  %v3496_v50 = vpop.permute.xlu0 %526 }
 0x161   : > { %733 = vrot.lane.b32.xlu1 %v4457_v54, %s2594_s5  ;;  %729 = vrot.lane.b32.xlu0 %v4458_v31, %s2594_s5  ;;  %v3516_v54 = vld [vmem:[%s2643_s20 + $0x38] sm:$0xff]  }
 0x163   : > { %v3502_v23 = vpop.permute.xlu1 %609  ;;  %v3504_v55 = vpop.permute.xlu0 %555 }
 0x165   : > { %540 = vrot.lane.b32.xlu1 %v520_v44, %s2587_s24  ;;  %735 = vrot.lane.b32.xlu0 %v4459_v30, %s2594_s5  ;;  %v4462_v30 = vld [vmem:[#allocation20_spill] sm:$0xff] }
 0x167   : > { %v3509_v10 = vpop.permute.xlu1 %636  ;;  %v3511_v24 = vpop.permute.xlu0 %586 }
 0x169   : > { %754 = vrot.lane.b32.xlu1 %v4460_v8, %s2595_s6  ;;  %700 = vrot.lane.b32.xlu0 %v3516_v54, %s2593_s30  ;;  %v4463_v8 = vld [vmem:[#allocation15_spill] sm:$0xff] }
 0x16b   : > { %v3520_v31 = vpop.permute.xlu1 %661  ;;  %v3522_v36 = vpop.permute.xlu0 %611 }
 0x16d   : > { %760 = vrot.lane.b32.xlu1 %v4461_v25, %s2595_s6  ;;  %758 = vrot.lane.b32.xlu0 %v4462_v30, %s2595_s6  ;;  %v4466_v25 = vld [vmem:[#allocation11_spill] sm:$0xff]  ;;  %v3545_v30 = vrot.slane %v3490_v4, 2 }
 0x16f   : > { %v3528_v37 = vpop.permute.xlu1 %690  ;;  %v3530_v21 = vpop.permute.xlu0 %638 }
 0x171   : > { %781 = vrot.lane.b32.xlu1 %v4463_v8, %s2596_s9  ;;  %731 = vrot.lane.b32.xlu0 %v4464_v53, %s2594_s5  ;;  %v871_v53 = vsel %vm851_vm0, %v3490_v4, %v4467_v42 }
 0x173   : > { %v3536_v15 = vpop.permute.xlu1 %663  ;;  %v3538_v43 = vpop.permute.xlu0 %492 }
 0x175   : > { %787 = vrot.lane.b32.xlu1 %v4465_v12, %s2596_s9  ;;  %785 = vrot.lane.b32.xlu0 %v4466_v25, %s2596_s9  ;;  %v867_v12 = vsel %vm851_vm0, %v3516_v54, %v4469_v59  ;;  %v896_v25 = vsel %vm876_vm2, %v871_v53, %v3141_v52  ;;  %v3587_v53 = vld [vmem:[%s2643_s20 + $0x50] sm:$0xff]  }
 0x176   : > { %v892_v39 = vsel %vm876_vm2, %v867_v12, %v3128_v60  ;;  %v3567_v28 = vsel %vm901_vm1, %v896_v25, %v3148_v16  ;;  %v4471_v12 = vld [vmem:[#allocation29_spill] sm:$0xff] }
 0x177   : > { %v3547_v22 = vpop.permute.xlu1 %528  ;;  %v3549_v8 = vpop.permute.xlu0 %721  ;;  %4470 = vst [vmem:[#allocation5_spill] sm:$0xff] %v3567_v28  ;;  %v1374_v52 = vsel %vm926_vm3, %v3567_v28, %v3163_v32  ;;  %v4480_v28 = vld [vmem:[#allocation31_spill] sm:$0xff] }
 0x178   : > { %v1391_v16 = vsel %vm951_vm4, %v1374_v52, %v3183_v7  ;;  %v4473_v7 = vld [vmem:[#allocation57_spill] sm:$0xff] }
 0x179   : > { %756 = vrot.lane.b32.xlu1 %v4468_v38, %s2595_s6  ;;  %542 = vrot.lane.b32.xlu0 %v3545_v30, %s2587_s24  ;;  %v3573_v38 = vsel %vm901_vm1, %v892_v39, %v3150_v63  ;;  %v873_v63 = vsel %vm851_vm0, %v3587_v53, %v4471_v12  ;;  %v1406_v39 = vsel %vm976_vm5, %v1391_v16, %v3200_v48 }
 0x17a   : > { %v1370_v60 = vsel %vm926_vm3, %v3573_v38, %v3165_v33  ;;  %v4472_v33 = vld [vmem:[#allocation55_spill] sm:$0xff]  ;;  %v1421_v52 = vsel %vm1001_vm6, %v1406_v39, %v3211_v0 }
 0x17b   : > { %v3569_v42 = vpop.permute.xlu1 %746  ;;  %v3578_v59 = vpop.permute.xlu0 %692  ;;  %v1389_v32 = vsel %vm951_vm4, %v1370_v60, %v3185_v40  ;;  %v898_v25 = vsel %vm876_vm2, %v873_v63, %v4472_v33  ;;  %v4475_v63 = vld [vmem:[#allocation59_spill] sm:$0xff]  ;;  %v4476_v33 = vld [vmem:[#allocation8_spill] sm:$0xff] }
 0x17c   : > { %v3608_v60 = vsel %vm901_vm1, %v898_v25, %v4473_v7  ;;  %v2569_v25 = vld [vmem:[%s2643_s20] sm:$0xff]  }
 0x17d   : > { %810 = vrot.lane.b32.xlu1 %v520_v44, %s2598_s10  ;;  %806 = vrot.lane.b32.xlu0 %v3415_v57, %s2598_s10  ;;  %v1404_v44 = vsel %vm976_vm5, %v1389_v32, %v3190_v35  ;;  %4474 = vst [vmem:[#allocation3_spill] sm:$0xff] %v3608_v60  ;;  %v1436_v57 = vsel %vm1026_vm7, %v1421_v52, %v3241_v41  ;;  %v4478_v41 = vld [vmem:[#allocation63_spill] sm:$0xff]  ;;  %v4481_v35 = vld [vmem:[#allocation56_spill] sm:$0xff] }
 0x17e   : > { %v1419_v16 = vsel %vm1001_vm6, %v1404_v44, %v3213_v56  ;;  %v1376_v32 = vsel %vm926_vm3, %v3608_v60, %v4475_v63  ;;  %v4477_v44 = vld [vmem:[#allocation22_spill] sm:$0xff]  ;;  %v1483_v60 = vshll.u32 %v1436_v57, 16 }
 0x17f   : > { %v3604_v12 = vpop.permute.xlu1 %723  ;;  %v3614_v48 = vpop.permute.xlu0 %557  ;;  %v1434_v39 = vsel %vm1026_vm7, %v1419_v16, %v3243_v11  ;;  %v1392_v7 = vsel %vm951_vm4, %v1376_v32, %v3192_v26  ;;  %v853_v52 = vsel %vm851_vm0, %v2569_v25, %v4477_v44  ;;  %v4479_v16 = vld [vmem:[#allocation27_spill] sm:$0xff] }
 0x180   : > { %v1407_v63 = vsel %vm976_vm5, %v1392_v7, %v4478_v41  ;;  %v878_v32 = vsel %vm876_vm2, %v853_v52, %v4480_v28  ;;  %v1471_v11 = vshll.u32 %v1434_v39, 16  ;;  %v2570_v52 = vld [vmem:[%s2643_s20 + $0x8] sm:$0xff]   ;;  %v1469_v41 = vshrl.u32 %v1434_v39, 16 }
 0x181   : > { %783 = vrot.lane.b32.xlu1 %v4476_v33, %s2596_s9  ;;  %812 = vrot.lane.b32.xlu0 %v3545_v30, %s2598_s10  ;;  %v869_v33 = vsel %vm851_vm0, %v3465_v17, %v4479_v16  ;;  %v1422_v26 = vsel %vm1001_vm6, %v1407_v63, %v3226_v49  ;;  %v903_v44 = vsel %vm901_vm1, %v878_v32, %v3478_v5  ;;  %v4482_v16 = vld [vmem:[#allocation58_spill] sm:$0xff]  ;;  %v4483_v63 = vld [vmem:[#allocation23_spill] sm:$0xff] }
 0x182   : > { %v894_v25 = vsel %vm876_vm2, %v869_v33, %v4481_v35  ;;  %v1437_v7 = vsel %vm1026_vm7, %v1422_v26, %v3266_v47  ;;  %v855_v35 = vsel %vm851_vm0, %v2570_v52, %v4483_v63  ;;  %v4484_v33 = vld [vmem:[#allocation66_spill] sm:$0xff]  ;;  %v1485_v47 = vrot.slane %v1483_v60, 1 }
 0x183   : > { %v3632_v0 = vpop.permute.xlu1 %588  ;;  %v774_v56 = vpop.permute.xlu0 %773  ;;  %v3651_v28 = vsel %vm901_vm1, %v894_v25, %v4482_v16  ;;  %v1473_v32 = vrot.slane %v1471_v11, 1  ;;  %v928_v25 = vsel %vm926_vm3, %v903_v44, %v3476_v29  ;;  %v2603_v52 = vmov 1983009808  }
 0x184   : > { %v1372_v26 = vsel %vm926_vm3, %v3651_v28, %v4484_v33  ;;  %v953_v49 = vsel %vm951_vm4, %v928_v25, %v3483_v9  ;;  %v1580_v63 = vunpack.c.l.s4 %v2603_v52  ;;  %v1582_v60 = vlaneseq  ;;  %v4485_v33 = vld [vmem:[#allocation65_spill] sm:$0xff] }
 0x185   : > { %839 = vrot.lane.b32.xlu1 %v3490_v4, %s2599_s19  ;;  %835 = vrot.lane.b32.xlu0 %v3516_v54, %s2599_s19  ;;  %v1489_v4 = vshll.u32 %v1437_v7, 16  ;;  %v1481_v54 = vshrl.u32 %v1436_v57, 16  ;;  %v1390_v11 = vsel %vm951_vm4, %v1372_v26, %v4485_v33  ;;  %v978_v29 = vsel %vm976_vm5, %v953_v49, %v3494_v18  ;;  %v4486_v57 = vld [vmem:[#allocation69_spill] sm:$0xff] }
 0x186   : > { %v1405_v9 = vsel %vm976_vm5, %v1390_v11, %v4486_v57  ;;  %v1474_v52 = vor.u32 %v1473_v32, %v1469_v41  ;;  %v4487_v41 = vld [vmem:[#allocation30_spill] sm:$0xff]  ;;  %v1487_v11 = vshrl.u32 %v1437_v7, 16 }
 0x187   : > { %v799_v5 = vpop.permute.xlu1 %798  ;;  %v3663_v16 = vpop.permute.xlu0 %748  ;;  %v1486_v44 = vor.u32 %v1485_v47, %v1481_v54  ;;  %v1420_v39 = vsel %vm1001_vm6, %v1405_v9, %v3259_v13  ;;  %v1491_v26 = vrot.slane %v1489_v4, 1  ;;  %v1583_v54 = vshrl.u32 %v1582_v60, 7 }
 0x188   : > { %v1435_v33 = vsel %vm1026_vm7, %v1420_v39, %v3283_v3  ;;  %v880_v32 = vsel %vm876_vm2, %v855_v35, %v4487_v41 }
 0x189   : > { %808 = vrot.lane.b32.xlu1 %v3431_v27, %s2598_s10  ;;  %841 = vrot.lane.b32.xlu0 %v3587_v53, %s2599_s19  ;;  %v1003_v27 = vsel %vm1001_vm6, %v978_v29, %v3502_v23  ;;  %v1581_v23 = vunpack.c.0.s8 %v1580_v63  ;;  %v1492_v63 = vor.u32 %v1491_v26, %v1487_v11  ;;  %v1477_v60 = vshll.u32 %v1435_v33, 16  ;;  %v4489_v11 = vld [vmem:[#allocation33_spill] sm:$0xff] }
 0x18a   : > { %v1028_v49 = vsel %vm1026_vm7, %v1003_v27, %v3509_v10  ;;  %v905_v10 = vsel %vm901_vm1, %v880_v32, %v3485_v1  ;;  %v1475_v26 = vshrl.u32 %v1435_v33, 16  ;;  %v4488_v32 = vld [vmem:[#allocation21_spill] sm:$0xff] }
 0x18b   : > { %v776_v25 = vpop.permute.xlu1 %775  ;;  %v3683_v18 = vpop.permute.xlu0 %613  ;;  %v1053_v47 = vsel %vm1051_vm11, %v1028_v49, %v3520_v31  ;;  %v930_v7 = vsel %vm926_vm3, %v905_v10, %v3496_v50 }
 0x18c   : > { %v1078_v4 = vsel %vm4350_vm12, %v1053_v47, %v3528_v37  ;;  %v955_v9 = vsel %vm951_vm4, %v930_v7, %v3504_v55 }
 0x18d   : > { %1529 = vrot.lane.b32.xlu1 %v1486_v44, %s2601_s23  ;;  %1525 = vrot.lane.b32.xlu0 %v1474_v52, %s2601_s23  ;;  %v1103_v31 = vsel %vm1101_vm13, %v1078_v4, %v3549_v8  ;;  %v3710_v8 = vsub.s32 %v1581_v23, %v1583_v54  ;;  %v980_v44 = vsel %vm976_vm5, %v955_v9, %v3511_v24 }
 0x18e   : > { %v1128_v37 = vsel %vm1126_vm14, %v1103_v31, %v3569_v42  ;;  %v1005_v42 = vsel %vm1001_vm6, %v980_v44, %v3522_v36  ;;  %v3728_v36 = vrot.slane %v3587_v53, 2  ;;  %v4490_v31 = vld [vmem:[#allocation28_spill] sm:$0xff] }
 0x18f   : > { %v3699_v29 = vpop.permute.xlu1 %640  ;;  %v828_v35 = vpop.permute.xlu0 %827  ;;  %v1153_v1 = vsel %vm1151_vm15, %v1128_v37, %v774_v56  ;;  %v1479_v56 = vrot.slane %v1477_v60, 1 }
 0x190   : > { %v1178_v50 = vsel %vm4351_vm8, %v1153_v1, %v799_v5 }
 0x191   : > { %677 = vrot.lane.b32.xlu1 %v3545_v30, %s2592_s29  ;;  %1531 = vrot.lane.b32.xlu0 %v1492_v63, %s2601_s23  ;;  %v1203_v55 = vsel %vm1201_vm9, %v1178_v50, %v828_v35  ;;  %v1030_v30 = vsel %vm1026_vm7, %v1005_v42, %v3530_v21  ;;  %v1480_v47 = vor.u32 %v1479_v56, %v1475_v26  ;;  %v4491_v42 = vld [vmem:[#allocation7_spill] sm:$0xff] }
 0x192   : > { %v1055_v24 = vsel %vm1051_vm11, %v1030_v30, %v3536_v15 }
 0x193   : > { %v1518_v27 = vpop.permute.xlu1 %1517  ;;  %v801_v39 = vpop.permute.xlu0 %800  ;;  %v1080_v49 = vsel %vm4350_vm12, %v1055_v24, %v3578_v59  ;;  %v2571_v59 = vld [vmem:[%s2643_s20 + $0x10] sm:$0xff]   ;;  %v4492_v24 = vld [vmem:[#allocation18_spill] sm:$0xff] }
 0x194   : > { %v1543_v52 = vsel %vm4349_vm10, %v1203_v55, %v1518_v27  ;;  %v1105_v21 = vsel %vm1101_vm13, %v1080_v49, %v3604_v12 }
 0x195   : > { %v1585_v5 = vrot.slane %v1543_v52, %v3710_v8  ;;  %706 = vrot.lane.b32.xlu1 %v3587_v53, %s2593_s30  ;;  %837 = vrot.lane.b32.xlu0 %v3465_v17, %s2599_s19  ;;  %v1130_v23 = vsel %vm1126_vm14, %v1105_v21, %v3663_v16  ;;  %v1578_v41 = vcombine.high %v1543_v52, %v1543_v52 }
 0x196   : > { %v1155_v53 = vsel %vm1151_vm15, %v1130_v23, %v776_v25  ;;  %v857_v17 = vsel %vm851_vm0, %v2571_v59, %v4488_v32  ;;  %v3750_v25 = vld [vmem:[%s2643_s20 + $0x58] sm:$0xff]  }
 0x197   : > { %v830_v15 = vpop.permute.xlu1 %829  ;;  %v666_v54 = vpop.permute.xlu0 %665  ;;  %v1593_v33 = vcombine.high %v1585_v5, %v1585_v5  ;;  %v1180_v12 = vsel %vm4351_vm8, %v1155_v53, %v801_v39  ;;  %v882_v4 = vsel %vm876_vm2, %v857_v17, %v4489_v11  ;;  %v875_v63 = vsel %vm851_vm0, %v3750_v25, %v4490_v31 }
 0x198   : > { %v1205_v16 = vsel %vm1201_vm9, %v1180_v12, %v830_v15  ;;  %v907_v60 = vsel %vm901_vm1, %v882_v4, %v3538_v43  ;;  %v1592_v9 = vrot.slane %v1578_v41, %v3710_v8  ;;  %v900_v50 = vsel %vm876_vm2, %v875_v63, %v3285_v2  ;;  %v4493_v41 = vld [vmem:[#allocation10_spill] sm:$0xff] }
 0x199   : > { %679 = vrot.lane.b32.xlu1 %v3728_v36, %s2592_s29  ;;  %1527 = vrot.lane.b32.xlu0 %v1480_v47, %s2601_s23  ;;  %v932_v35 = vsel %vm926_vm3, %v907_v60, %v3547_v22  ;;  %v1780_v1 = vcombine.low %v1585_v5, %v1593_v33  ;;  %v3774_v22 = vsel %vm901_vm1, %v900_v50, %v3306_v19  ;;  %v4494_v33 = vld [vmem:[#allocation6_spill] sm:$0xff]  ;;  %v4498_v60 = vld [vmem:[#allocation24_spill] sm:$0xff] }
 0x19a   : > { %v957_v43 = vsel %vm951_vm4, %v932_v35, %v3614_v48  ;;  %v1378_v2 = vsel %vm926_vm3, %v3774_v22, %v3318_v20  ;;  %v4497_v63 = vld [vmem:[#allocation78_spill] sm:$0xff] }
 0x19b   : > { %v1520_v10 = vpop.permute.xlu1 %1519  ;;  %v695_v37 = vpop.permute.xlu0 %694  ;;  %v982_v55 = vsel %vm976_vm5, %v957_v43, %v3632_v0  ;;  %v1393_v52 = vsel %vm951_vm4, %v1378_v2, %v3340_v51  ;;  %v1788_v39 = vrot.slane %v1780_v1, %v3710_v8 }
 0x19c   : > { %v1545_v7 = vsel %vm4349_vm10, %v1205_v16, %v1520_v10  ;;  %v1007_v48 = vsel %vm1001_vm6, %v982_v55, %v3683_v18  ;;  %v1408_v20 = vsel %vm976_vm5, %v1393_v52, %v3356_v46  ;;  %vm1962_vm10 = vcmask 613376   ;;  %v3798_v18 = vld [vmem:[%s2643_s20 + $0x60] sm:$0xff]   ;;  %v4496_v10 = vld [vmem:[#allocation77_spill] sm:$0xff]  ;;  %v4503_v52 = vld [vmem:[#allocation12_spill] sm:$0xff] }
 0x19d   : > { %v3762_v44 = vrot.slane %v1545_v7, %v3710_v8  ;;  %544 = vrot.lane.b32.xlu1 %v3728_v36, %s2587_s24  ;;  %737 = vrot.lane.b32.xlu0 %v4491_v42, %s2594_s5  ;;  %v1032_v19 = vsel %vm1026_vm7, %v1007_v48, %v3699_v29  ;;  %v1344_v29 = vsel %vm851_vm0, %v3798_v18, %v3302_v61 }
 0x19e   : > { %v1057_v5 = vsel %vm1051_vm11, %v1032_v19, %v666_v54  ;;  %v1423_v26 = vsel %vm1001_vm6, %v1408_v20, %v3367_v45  ;;  %v1350_v61 = vsel %vm876_vm2, %v1344_v29, %v3326_v14  ;;  %v1594_v11 = vcombine.high %v1545_v7, %v1545_v7  ;;  %v4505_v29 = vld [vmem:[#allocation37_spill] sm:$0xff] }
 0x19f   : > { %v1781_v27 = vcombine.low %v1592_v9, %v3762_v44  ;;  %v531_v56 = vpop.permute.xlu1 %530  ;;  %v726_v30 = vpop.permute.xlu0 %725  ;;  %v1082_v49 = vsel %vm4350_vm12, %v1057_v5, %v695_v37  ;;  %v1438_v47 = vsel %vm1026_vm7, %v1423_v26, %v3376_v62  ;;  %vm4495_vm12 = vmmov 0   ;;  %v4500_v9 = vld [vmem:[#allocation81_spill] sm:$0xff] }
 0x1a0   : > { %v1107_v23 = vsel %vm1101_vm13, %v1082_v49, %v726_v30  ;;  %v1356_v59 = vsel %vm901_vm1, %v1350_v61, %v3338_v34  ;;  %v1495_v32 = vshll.u32 %v1438_v47, 16  ;;  %v1608_v50 = vrot.slane %v1594_v11, %v3710_v8  ;;  %v4509_v11 = vld [vmem:[#allocation83_spill] sm:$0xff] }
 0x1a1   : > { %v1795_v0 = vrot.slane %v1781_v27, %v3710_v8  ;;  %762 = vrot.lane.b32.xlu1 %v4492_v24, %s2595_s6  ;;  %708 = vrot.lane.b32.xlu0 %v3750_v25, %s2593_s30  ;;  %v1380_v12 = vsel %vm926_vm3, %v1356_v59, %v3354_v58  ;;  %v4499_v58 = vld [vmem:[#allocation79_spill] sm:$0xff]  ;;  %v1493_v55 = vshrl.u32 %v1438_v47, 16 }
 0x1a2   : > { %v1395_v14 = vsel %vm951_vm4, %v1380_v12, %v4496_v10  ;;  %v1497_v37 = vrot.slane %v1495_v32, 1  ;;  %v4501_v27 = vld [vmem:[#allocation71_spill] sm:$0xff] }
 0x1a3   : > { %v778_v21 = vpop.permute.xlu1 %777  ;;  %v1796_v15 = vcombine.low %v1788_v39, %v1795_v0  ;;  %v751_v54 = vpop.permute.xlu0 %750  ;;  %v1410_v34 = vsel %vm976_vm5, %v1395_v14, %v4497_v63  ;;  %v934_v2 = vsel %vm926_vm3, %v4501_v27, %v531_v56  ;;  %v3854_v24 = vld [vmem:[%s2643_s20 + $0x68] sm:$0xff]   ;;  %v4504_v56 = vld [vmem:[#allocation80_spill] sm:$0xff]  ;;  %v4511_v14 = vld [vmem:[#allocation41_spill] sm:$0xff] }
 0x1a4   : > { %v1132_v53 = vsel %vm1126_vm14, %v1107_v23, %v751_v54  ;;  %v1425_v7 = vsel %vm1001_vm6, %v1410_v34, %v4499_v58  ;;  %v1498_v19 = vor.u32 %v1497_v37, %v1493_v55  ;;  %v1346_v20 = vsel %vm851_vm0, %v3854_v24, %v4504_v56  ;;  %v4516_v27 = vld [vmem:[#allocation38_spill] sm:$0xff] }
 0x1a5   : > { %789 = vrot.lane.b32.xlu1 %v4493_v41, %s2596_s9  ;;  %2468 = vmatmul.mubr.msk.bf16.vlgmr.msra.gmra.mrb[0].mxu0 %vm1962_vm10, %v1796_v15  ;;  %v1157_v4 = vsel %vm1151_vm15, %v1132_v53, %v778_v21  ;;  %v1440_v1 = vsel %vm1026_vm7, %v1425_v7, %v4500_v9  ;;  %v959_v26 = vsel %vm951_vm4, %v934_v2, %v4505_v29  ;;  %v4506_v15 = vld [vmem:[#allocation82_spill] sm:$0xff]  ;;  %v4508_v41 = vld [vmem:[#allocation36_spill] sm:$0xff] }
 0x1a6   : > { %739 = vrot.lane.b32.xlu0 %v4494_v33, %s2594_s5  ;;  %2471 = vmatprep.mubr.msk.bf16.mxu0 %vm4495_vm12, %v4432_v6  ;;  %v1501_v39 = vshll.u32 %v1440_v1, 16  ;;  %v1352_v47 = vsel %vm876_vm2, %v1346_v20, %v4506_v15  ;;  %v984_v61 = vsel %vm976_vm5, %v959_v26, %v4508_v41  ;;  %v1499_v12 = vshrl.u32 %v1440_v1, 16  ;;  %v4513_v9 = vld [vmem:[#allocation86_spill] sm:$0xff]  ;;  %v4519_v20 = vld [vmem:[#allocation40_spill] sm:$0xff] }
 0x1a7   : > { %v832_v17 = vpop.permute.xlu1 %831  ;;  %v803_v16 = vpop.permute.xlu0 %802  ;;  %v4520_v29 = vld [vmem:[#allocation90_spill] sm:$0xff]  ;;  %v4521_v15 = vld [vmem:[#allocation32_spill] sm:$0xff] }
 0x1a8   : > { %v1182_v31 = vsel %vm4351_vm8, %v1157_v4, %v803_v16  ;;  %vm4502_vm8 = vcmask 392192   ;;  %v1503_v53 = vrot.slane %v1501_v39, 1  ;;  %v4510_v16 = vld [vmem:[#allocation87_spill] sm:$0xff]  ;;  %v4518_v39 = vld [vmem:[#allocation88_spill] sm:$0xff] }
 0x1a9   : > { %814 = vrot.lane.b32.xlu1 %v3728_v36, %s2598_s10  ;;  %v1609_v36 = vcombine.high %v3762_v44, %v3762_v44  ;;  %v1207_v43 = vsel %vm1201_vm9, %v1182_v31, %v832_v17  ;;  %v523_v44 = vrot.slane %v3750_v25, 2  ;;  %v1009_v31 = vsel %vm1001_vm6, %v984_v61, %v4511_v14 }
 0x1aa   : > { %764 = vrot.lane.b32.xlu0 %v4498_v60, %s2595_s6  ;;  %v1504_v34 = vor.u32 %v1503_v53, %v1499_v12  ;;  %v4512_v60 = vld [vmem:[#allocation75_spill] sm:$0xff] }
 0x1ab   : > { %v668_v35 = vpop.permute.xlu1 %667  ;;  %v1522_v42 = vpop.permute.xlu0 %1521  ;;  %v1797_v5 = vcombine.low %v1609_v36, %v1608_v50  ;;  %v4514_v50 = vld [vmem:[#allocation44_spill] sm:$0xff]  ;;  %v4522_v53 = vld [vmem:[#allocation43_spill] sm:$0xff] }
 0x1ac   : > { %v3844_v48 = vsel %vm4502_vm8, %v1207_v43, %v1522_v42  ;;  %v1034_v36 = vsel %vm1026_vm7, %v1009_v31, %v4514_v50  ;;  %v4515_v43 = vld [vmem:[#allocation89_spill] sm:$0xff]  ;;  %vm4517_vm8 = vcmask 244736  }
 0x1ad   : > { %843 = vrot.lane.b32.xlu1 %v3750_v25, %s2599_s19  ;;  %v1617_v30 = vrot.slane %v3844_v48, %v3710_v8  ;;  %v4507_v25 = vld [vmem:[#allocation85_spill] sm:$0xff]  ;;  %v1805_v59 = vrot.slane %v1797_v5, %v3710_v8  ;;  %v1059_v55 = vsel %vm1051_vm11, %v1034_v36, %v668_v35  ;;  %v2575_v35 = vld [vmem:[%s2643_s20 + $0x70] sm:$0xff]   ;;  %v1610_v12 = vcombine.high %v3844_v48, %v3844_v48  ;;  %s2513_s20 = smul.u32 192, %s4583_s16 }
 0x1ae   : > { %791 = vrot.lane.b32.xlu0 %v4503_v52, %s2596_s9  ;;  %v1358_v23 = vsel %vm901_vm1, %v1352_v47, %v4507_v25  ;;  %v1348_v26 = vsel %vm851_vm0, %v2575_v35, %v4520_v29  ;;  %vm4530_vm0 = vcmask 392192  }
 0x1af   : > { %v728_v0 = vpop.permute.xlu1 %727  ;;  %v1625_v49 = vcombine.high %v1617_v30, %v1617_v30  ;;  %v697_v21 = vpop.permute.xlu0 %696  ;;  %v1382_v4 = vsel %vm926_vm3, %v1358_v23, %v4509_v11  ;;  %v4527_v11 = vld [vmem:[#allocation34_spill] sm:$0xff]  ;;  %v1624_v50 = vrot.slane %v1610_v12, %v3710_v8  ;;  %s4177_s26 = scalar_lea.vmem %s4276_s2, %s2513_s20 }
 0x1b0   : > { %v1397_v10 = vsel %vm951_vm4, %v1382_v4, %v4510_v16  ;;  %v660_v4 = vrot.slane %v3798_v18, 2 }
 0x1b1   : > { %1533 = vrot.lane.b32.xlu1 %v1498_v19, %s2601_s23  ;;  %v1798_v54 = vcombine.low %v1617_v30, %v1625_v49  ;;  %v1412_v1 = vsel %vm976_vm5, %v1397_v10, %v4513_v9  ;;  %v1084_v30 = vsel %vm4517_vm8, %v1059_v55, %v697_v21  ;;  %vm4524_vm8 = vcmask 343040   ;;  %v4528_v10 = vld [vmem:[#allocation46_spill] sm:$0xff] }
 0x1b2   : > { %816 = vrot.lane.b32.xlu0 %v523_v44, %s2598_s10  ;;  %v1427_v42 = vsel %vm1001_vm6, %v1412_v1, %v4515_v43  ;;  %v1109_v49 = vsel %vm1101_vm13, %v1084_v30, %v728_v0  ;;  %v4525_v0 = vld [vmem:[#allocation35_spill] sm:$0xff] }
 0x1b3   : > { %v3869_v33 = vpop.permute.xlu1 %536  ;;  %v1812_v32 = vrot.slane %v1798_v54, %v3710_v8  ;;  %v533_v17 = vpop.permute.xlu0 %532  ;;  %v1442_v56 = vsel %vm1026_vm7, %v1427_v42, %v4518_v39  ;;  %v4532_v39 = vld [vmem:[#allocation92_spill] sm:$0xff] }
 0x1b4   : > { %v936_v37 = vsel %vm926_vm3, %v4512_v60, %v533_v17  ;;  %v1507_v25 = vshll.u32 %v1442_v56, 16 }
 0x1b5   : > { %845 = vrot.lane.b32.xlu1 %v3798_v18, %s2599_s19  ;;  %v1813_v63 = vcombine.low %v1805_v59, %v1812_v32  ;;  %v961_v2 = vsel %vm951_vm4, %v936_v37, %v4516_v27  ;;  %v4526_v32 = vld [vmem:[#allocation91_spill] sm:$0xff]  ;;  %v1505_v37 = vshrl.u32 %v1442_v56, 16 }
 0x1b6   : > { %681 = vrot.lane.b32.xlu0 %v523_v44, %s2592_s29  ;;  %v986_v5 = vsel %vm976_vm5, %v961_v2, %v4519_v20  ;;  %v1509_v31 = vrot.slane %v1507_v25, 1  ;;  %v4533_v20 = vld [vmem:[#allocation95_spill] sm:$0xff] }
 0x1b7   : > { %v753_v58 = vpop.permute.xlu1 %752  ;;  %2472 = vmatmul.mubr.msk.bf16.gmra.mrb[4].mxu0 %vm1962_vm10, %v1813_v63  ;;  %v3885_v7 = vpop.permute.xlu0 %538  ;;  %v1011_v41 = vsel %vm1001_vm6, %v986_v5, %v4522_v53 }
 0x1b8   : > { %2475 = vmatprep.mubr.msk.bf16.mxu0 %vm4495_vm12, %v4432_v6  ;;  %v1134_v21 = vsel %vm1126_vm14, %v1109_v49, %v753_v58  ;;  %v1036_v14 = vsel %vm1026_vm7, %v1011_v41, %v4528_v10  ;;  %v4529_v58 = vld [vmem:[#allocation14_spill] sm:$0xff]  ;;  %v1510_v55 = vor.u32 %v1509_v31, %v1505_v37 }
 0x1b9   : > { %1535 = vrot.lane.b32.xlu1 %v1504_v34, %s2601_s23 }
 0x1ba   : > { %710 = vrot.lane.b32.xlu0 %v3798_v18, %s2593_s30  ;;  %v4531_v18 = vld [vmem:[#allocation93_spill] sm:$0xff] }
 0x1bb   : > { %v3902_v52 = vpop.permute.xlu1 %534  ;;  %v780_v19 = vpop.permute.xlu0 %779 }
 0x1bc   : > { %v1159_v23 = vsel %vm1151_vm15, %v1134_v21, %v780_v19 }
 0x1bd   : > { %546 = vrot.lane.b32.xlu1 %v523_v44, %s2587_s24  ;;  %v4523_v44 = vld [vmem:[#allocation13_spill] sm:$0xff] }
 0x1be   : > { %741 = vrot.lane.b32.xlu0 %v4521_v15, %s2594_s5  ;;  %v1354_v61 = vsel %vm876_vm2, %v1348_v26, %v4523_v44 }
 0x1bf   : > { %v834_v47 = vpop.permute.xlu1 %833  ;;  %v805_v54 = vpop.permute.xlu0 %804  ;;  %v1360_v17 = vsel %vm901_vm1, %v1354_v61, %v4526_v32  ;;  %v4536_v61 = vld [vmem:[#allocation45_spill] sm:$0xff]  ;;  %vm4547_vm1 = vcmask 244736  }
 0x1c0   : > { %v1184_v59 = vsel %vm4524_vm8, %v1159_v23, %v805_v54  ;;  %v1384_v48 = vsel %vm926_vm3, %v1360_v17, %v4529_v58  ;;  %v4535_v23 = vld [vmem:[#allocation39_spill] sm:$0xff]  ;;  %vm4550_vm2 = vmmov %vm4547_vm1 }
 0x1c1   : > { %793 = vrot.lane.b32.xlu1 %v4525_v0, %s2596_s9  ;;  %v1209_v34 = vsel %vm1201_vm9, %v1184_v59, %v834_v47  ;;  %v1399_v1 = vsel %vm951_vm4, %v1384_v48, %v4531_v18  ;;  %v4534_v47 = vld [vmem:[#allocation94_spill] sm:$0xff]  ;;  %v797_v0 = vrot.slane %v3854_v24, 2 }
 0x1c2   : > { %766 = vrot.lane.b32.xlu0 %v4527_v11, %s2595_s6  ;;  %v1414_v56 = vsel %vm976_vm5, %v1399_v1, %v4532_v39  ;;  %v4537_v59 = vld [vmem:[#allocation42_spill] sm:$0xff] }
 0x1c3   : > { %v670_v16 = vpop.permute.xlu1 %669  ;;  %v1524_v60 = vpop.permute.xlu0 %1523  ;;  %v1429_v5 = vsel %vm1001_vm6, %v1414_v56, %v4533_v20 }
 0x1c4   : > { %v3934_v63 = vsel %vm1051_vm11, %v1036_v14, %v670_v16  ;;  %v1549_v9 = vsel %vm4530_vm0, %v1209_v34, %v1524_v60  ;;  %v1444_v25 = vsel %vm1026_vm7, %v1429_v5, %v4534_v47  ;;  %vm4551_vm0 = vmmov %vm4547_vm1 }
 0x1c5   : > { %847 = vrot.lane.b32.xlu1 %v3854_v24, %s2599_s19  ;;  %v1626_v36 = vcombine.high %v1549_v9, %v1549_v9  ;;  %v1633_v43 = vrot.slane %v1549_v9, %v3710_v8  ;;  %v1513_v41 = vshll.u32 %v1444_v25, 16  ;;  %v1511_v11 = vshrl.u32 %v1444_v25, 16 }
 0x1c6   : > { %818 = vrot.lane.b32.xlu0 %v660_v4, %s2598_s10 }
 0x1c7   : > { %v3947_v42 = vpop.permute.xlu1 %675  ;;  %v1640_v27 = vrot.slane %v1626_v36, %v3710_v8  ;;  %v1641_v2 = vcombine.high %v1633_v43, %v1633_v43  ;;  %v1814_v30 = vcombine.low %v1624_v50, %v1633_v43  ;;  %v674_v19 = vpop.permute.xlu0 %673  ;;  %v1515_v17 = vrot.slane %v1513_v41, 1  ;;  %v4539_v50 = vld [vmem:[#allocation51_spill] sm:$0xff]  ;;  %v4545_v41 = vld [vmem:[#allocation48_spill] sm:$0xff] }
 0x1c9   : > { %683 = vrot.lane.b32.xlu1 %v660_v4, %s2592_s29  ;;  %v1815_v29 = vcombine.low %v1641_v2, %v1640_v27  ;;  %v1822_v49 = vrot.slane %v1814_v30, %v3710_v8  ;;  %v1516_v16 = vor.u32 %v1515_v17, %v1511_v11  ;;  %v942_v27 = vsel %vm926_vm3, %v3573_v38, %v3885_v7  ;;  %v4540_v2 = vld [vmem:[#allocation53_spill] sm:$0xff]  ;;  %v4544_v38 = vld [vmem:[#allocation54_spill] sm:$0xff]  ;;  %s211_s29 = scalar_lea.vmem %s4277_s3, %s4583_s16 }
 0x1ca   : > { %1537 = vrot.lane.b32.xlu0 %v1510_v55, %s2601_s23  ;;  %v967_v56 = vsel %vm951_vm4, %v942_v27, %v3185_v40 }
 0x1cb   : > { %v703_v26 = vpop.permute.xlu1 %702  ;;  %v1829_v15 = vrot.slane %v1815_v29, %v3710_v8  ;;  %v699_v21 = vpop.permute.xlu0 %698  ;;  %v4542_v29 = vld [vmem:[#allocation61_spill] sm:$0xff] }
 0x1cd   : > { %743 = vrot.lane.b32.xlu1 %v4535_v23, %s2594_s5  ;;  %v1830_v54 = vcombine.low %v1822_v49, %v1829_v15  ;;  %v992_v49 = vsel %vm976_vm5, %v967_v56, %v4542_v29  ;;  %v4543_v15 = vld [vmem:[#allocation76_spill] sm:$0xff] }
 0x1ce   : > { %712 = vrot.lane.b32.xlu0 %v3854_v24, %s2593_s30  ;;  %v938_v47 = vsel %vm926_vm3, %v4543_v15, %v3902_v52  ;;  %v4555_v15 = vld [vmem:[#allocation49_spill] sm:$0xff] }
 0x1cf   : > { %v3964_v53 = vpop.permute.xlu1 %671  ;;  %2476 = vmatmul.mubr.msk.bf16.gmra.mrb[8].mxu0 %vm1962_vm10, %v1830_v54  ;;  %v705_v44 = vpop.permute.xlu0 %704  ;;  %v963_v40 = vsel %vm951_vm4, %v938_v47, %v4545_v41 }
 0x1d0   : > { %2479 = vmatprep.mubr.msk.bf16.mxu0 %vm4495_vm12, %v4432_v6 }
 0x1d1   : > { %795 = vrot.lane.b32.xlu1 %v4536_v61, %s2596_s9  ;;  %v4546_v61 = vld [vmem:[#allocation68_spill] sm:$0xff] }
 0x1d2   : > { %768 = vrot.lane.b32.xlu0 %v4537_v59, %s2595_s6  ;;  %v1017_v59 = vsel %vm1001_vm6, %v992_v49, %v4546_v61  ;;  %s214_s6 = scalar_lea.vmem %s4278_s4, %s4583_s16 }
 0x1d3   : > { %v734_v32 = vpop.permute.xlu1 %733  ;;  %v730_v12 = vpop.permute.xlu0 %729 }
 0x1d5   : > { %849 = vrot.lane.b32.xlu1 %v2575_v35, %s2599_s19  ;;  %v4538_v35 = vld [vmem:[#allocation84_spill] sm:$0xff] }
 0x1d6   : > { %820 = vrot.lane.b32.xlu0 %v797_v0, %s2598_s10  ;;  %v940_v18 = vsel %vm926_vm3, %v4538_v35, %v3869_v33  ;;  %v4541_v33 = vld [vmem:[#allocation52_spill] sm:$0xff]  ;;  %v4548_v35 = vld [vmem:[#allocation47_spill] sm:$0xff] }
 0x1d7   : > { %v3976_v4 = vpop.permute.xlu1 %540  ;;  %v736_v10 = vpop.permute.xlu0 %735  ;;  %v965_v36 = vsel %vm951_vm4, %v940_v18, %v4539_v50  ;;  %v988_v18 = vsel %vm976_vm5, %v963_v40, %v4548_v35  ;;  %v4549_v50 = vld [vmem:[#allocation73_spill] sm:$0xff] }
 0x1d8   : > { %v990_v30 = vsel %vm976_vm5, %v965_v36, %v4540_v2  ;;  %v1086_v36 = vsel %vm4550_vm2, %v3934_v63, %v699_v21  ;;  %vm4554_vm2 = vmmov %vm4524_vm8 }
 0x1d9   : > { %v1015_v5 = vsel %vm1001_vm6, %v990_v30, %v4541_v33 }
 0x1da   : > { %1539 = vrot.lane.b32.xlu0 %v1516_v16, %s2601_s23  ;;  %v1040_v7 = vsel %vm1026_vm7, %v1015_v5, %v4544_v38  ;;  %v4552_v5 = vld [vmem:[#allocation50_spill] sm:$0xff] }
 0x1db   : > { %v755_v14 = vpop.permute.xlu1 %754  ;;  %v701_v31 = vpop.permute.xlu0 %700  ;;  %v1065_v54 = vsel %vm1051_vm11, %v1040_v7, %v674_v19  ;;  %v1042_v19 = vsel %vm1026_vm7, %v1017_v59, %v4549_v50  ;;  %v1013_v29 = vsel %vm1001_vm6, %v988_v18, %v4552_v5 }
 0x1dc   : > { %v1090_v0 = vsel %vm4547_vm1, %v1065_v54, %v703_v26  ;;  %v1067_v26 = vsel %vm1051_vm11, %v1042_v19, %v3947_v42  ;;  %vm4553_vm1 = vcmask 392192   ;;  %v1038_v47 = vsel %vm1026_vm7, %v1013_v29, %v4555_v15 }
 0x1dd   : > { %v1115_v17 = vsel %vm1101_vm13, %v1090_v0, %v734_v32  ;;  %v1111_v32 = vsel %vm1101_vm13, %v1086_v36, %v730_v12  ;;  %v1063_v38 = vsel %vm1051_vm11, %v1038_v47, %v3964_v53 }
 0x1de   : > { %v1136_v30 = vsel %vm1126_vm14, %v1111_v32, %v755_v14 }
 0x1df   : > { %v761_v34 = vpop.permute.xlu1 %760  ;;  %v759_v60 = vpop.permute.xlu0 %758 }
 0x1e0   : > { %v1140_v52 = vsel %vm1126_vm14, %v1115_v17, %v759_v60  ;;  %v1092_v60 = vsel %vm4551_vm0, %v1067_v26, %v705_v44  ;;  %vm4557_vm0 = vmmov %vm4553_vm1 }
 0x1e1   : > { %v1117_v63 = vsel %vm1101_vm13, %v1092_v60, %v736_v10 }
 0x1e2   : > { %v1142_v12 = vsel %vm1126_vm14, %v1117_v63, %v761_v34 }
 0x1e3   : > { %v782_v37 = vpop.permute.xlu1 %781  ;;  %v3979_v24 = vpop.permute.xlu0 %731 }
 0x1e4   : > { %v1161_v21 = vsel %vm1151_vm15, %v1136_v30, %v782_v37 }
 0x1e7   : > { %v788_v58 = vpop.permute.xlu1 %787  ;;  %v786_v48 = vpop.permute.xlu0 %785 }
 0x1e8   : > { %v1165_v27 = vsel %vm1151_vm15, %v1140_v52, %v786_v48  ;;  %v1167_v44 = vsel %vm1151_vm15, %v1142_v12, %v788_v58 }
 0x1eb   : > { %v3981_v9 = vpop.permute.xlu1 %756  ;;  %v3986_v1 = vpop.permute.xlu0 %542 }
 0x1ef   : > { %v811_v43 = vpop.permute.xlu1 %810  ;;  %v807_v55 = vpop.permute.xlu0 %806 }
 0x1f0   : > { %v1190_v2 = vsel %vm4524_vm8, %v1165_v27, %v811_v43  ;;  %v1186_v43 = vsel %vm4554_vm2, %v1161_v21, %v807_v55  ;;  %vm4556_vm8 = vmmov %vm4554_vm2 }
 0x1f1   : > { %vm4559_vm2 = vmmov %vm4557_vm0 }
 0x1f3   : > { %v784_v39 = vpop.permute.xlu1 %783  ;;  %v813_v20 = vpop.permute.xlu0 %812 }
 0x1f7   : > { %v840_v25 = vpop.permute.xlu1 %839  ;;  %v836_v23 = vpop.permute.xlu0 %835 }
 0x1f8   : > { %v1215_v56 = vsel %vm1201_vm9, %v1190_v2, %v840_v25  ;;  %v1211_v14 = vsel %vm1201_vm9, %v1186_v43, %v836_v23  ;;  %v1192_v25 = vsel %vm4556_vm8, %v1167_v44, %v813_v20 }
 0x1fb   : > { %v809_v11 = vpop.permute.xlu1 %808  ;;  %v842_v16 = vpop.permute.xlu0 %841 }
 0x1fc   : > { %v1217_v34 = vsel %vm1201_vm9, %v1192_v25, %v842_v16 }
 0x1ff   : > { %v1530_v33 = vpop.permute.xlu1 %1529  ;;  %v1526_v48 = vpop.permute.xlu0 %1525 }
 0x200   : > { %v1555_v42 = vsel %vm4553_vm1, %v1215_v56, %v1530_v33  ;;  %v1551_v10 = vsel %vm4557_vm0, %v1211_v14, %v1526_v48  ;;  %vm4558_vm1 = vcmask 244736   ;;  %v4560_v14 = vld [vmem:[#allocation65_spill] sm:$0xff] }
 0x201   : > { %v1674_v49 = vcombine.high %v1555_v42, %v1555_v42  ;;  %v1088_v58 = vsel %vm4558_vm1, %v1063_v38, %v701_v31  ;;  %v1649_v54 = vrot.slane %v1551_v10, %v3710_v8  ;;  %v1681_v53 = vrot.slane %v1555_v42, %v3710_v8 }
 0x202   : > { %v1113_v40 = vsel %vm1101_vm13, %v1088_v58, %v3979_v24  ;;  %v1642_v16 = vcombine.high %v1551_v10, %v1551_v10 }
 0x203   : > { %v4041_v37 = vpop.permute.xlu1 %677  ;;  %v1532_v55 = vpop.permute.xlu0 %1531  ;;  %v1688_v23 = vrot.slane %v1674_v49, %v3710_v8  ;;  %v1138_v52 = vsel %vm1126_vm14, %v1113_v40, %v3981_v9  ;;  %v1657_v18 = vcombine.high %v1649_v54, %v1649_v54  ;;  %v1689_v24 = vcombine.high %v1681_v53, %v1681_v53 }
 0x204   : > { %v1557_v7 = vsel %vm4559_vm2, %v1217_v34, %v1532_v55  ;;  %v1163_v35 = vsel %vm1151_vm15, %v1138_v52, %v784_v39  ;;  %v1656_v60 = vrot.slane %v1642_v16, %v3710_v8  ;;  %v4561_v55 = vld [vmem:[#allocation5_spill] sm:$0xff]  ;;  %v4564_v16 = vld [vmem:[#allocation67_spill] sm:$0xff]  ;;  %vm4565_vm2 = vmmov %vm4556_vm8 }
 0x205   : > { %v1690_v41 = vcombine.high %v1557_v7, %v1557_v7  ;;  %v1697_v20 = vrot.slane %v1557_v7, %v3710_v8  ;;  %v1188_v19 = vsel %vm4556_vm8, %v1163_v35, %v809_v11  ;;  %v1831_v30 = vcombine.low %v1649_v54, %v1657_v18  ;;  %v4562_v54 = vld [vmem:[#allocation60_spill] sm:$0xff]  ;;  %vm4567_vm8 = vmmov %vm4557_vm0 }
 0x206   : > { %v944_v11 = vsel %vm926_vm3, %v3651_v28, %v3976_v4  ;;  %v1849_v29 = vcombine.low %v1681_v53, %v1689_v24  ;;  %v946_v58 = vsel %vm926_vm3, %v4561_v55, %v3986_v1  ;;  %v4575_v55 = vld [vmem:[#allocation74_spill] sm:$0xff] }
 0x207   : > { %v707_v61 = vpop.permute.xlu1 %706  ;;  %v1704_v59 = vrot.slane %v1690_v41, %v3710_v8  ;;  %v1705_v0 = vcombine.high %v1697_v20, %v1697_v20  ;;  %v1865_v17 = vcombine.low %v1688_v23, %v1697_v20  ;;  %v838_v31 = vpop.permute.xlu0 %837  ;;  %v1839_v12 = vrot.slane %v1831_v30, %v3710_v8 }
 0x208   : > { %v1213_v32 = vsel %vm1201_vm9, %v1188_v19, %v838_v31  ;;  %v969_v28 = vsel %vm951_vm4, %v944_v11, %v4560_v14  ;;  %v1863_v49 = vrot.slane %v1849_v29, %v3710_v8  ;;  %v971_v41 = vsel %vm951_vm4, %v946_v58, %v4562_v54  ;;  %v4566_v19 = vld [vmem:[#allocation72_spill] sm:$0xff] }
 0x209   : > { %v1866_v50 = vcombine.low %v1705_v0, %v1704_v59  ;;  %v1873_v27 = vrot.slane %v1865_v17, %v3710_v8  ;;  %v994_v10 = vsel %vm976_vm5, %v969_v28, %v4486_v57  ;;  %v4563_v59 = vld [vmem:[#allocation64_spill] sm:$0xff] }
 0x20a   : > { %v1019_v23 = vsel %vm1001_vm6, %v994_v10, %v3259_v13  ;;  %v996_v0 = vsel %vm976_vm5, %v971_v41, %v4563_v59 }
 0x20b   : > { %v680_v36 = vpop.permute.xlu1 %679  ;;  %v1880_v26 = vrot.slane %v1866_v50, %v3710_v8  ;;  %v1528_v2 = vpop.permute.xlu0 %1527  ;;  %v1044_v57 = vsel %vm1026_vm7, %v1019_v23, %v3283_v3  ;;  %v1021_v3 = vsel %vm1001_vm6, %v996_v0, %v4564_v16 }
 0x20c   : > { %v1553_v9 = vsel %vm4557_vm0, %v1213_v32, %v1528_v2  ;;  %v1069_v53 = vsel %vm1051_vm11, %v1044_v57, %v4041_v37  ;;  %v4568_v32 = vld [vmem:[#allocation3_spill] sm:$0xff]  ;;  %vm4569_vm0 = vmmov %vm4558_vm1 }
 0x20d   : > { %v1658_v56 = vcombine.high %v1553_v9, %v1553_v9  ;;  %v1665_v39 = vrot.slane %v1553_v9, %v3710_v8  ;;  %v1881_v33 = vcombine.low %v1873_v27, %v1880_v26  ;;  %v1094_v1 = vsel %vm4558_vm1, %v1069_v53, %v707_v61  ;;  %vm4571_vm1 = vmmov %vm4565_vm2 }
 0x20e   : > { %v1046_v61 = vsel %vm1026_vm7, %v1021_v3, %v4566_v19 }
 0x20f   : > { %v545_v5 = vpop.permute.xlu1 %544  ;;  %v1672_v63 = vrot.slane %v1658_v56, %v3710_v8  ;;  %v1673_v21 = vcombine.high %v1665_v39, %v1665_v39  ;;  %v1832_v42 = vcombine.low %v1656_v60, %v1665_v39  ;;  %2488 = vmatmul.mubr.msk.bf16.vlgmr.msra.gmra.mrb[0].mxu1 %vm1962_vm10, %v1881_v33  ;;  %v738_v48 = vpop.permute.xlu0 %737  ;;  %v1071_v26 = vsel %vm1051_vm11, %v1046_v61, %v680_v36  ;;  %v4570_v39 = vld [vmem:[#allocation62_spill] sm:$0xff] }
 0x210   : > { %2491 = vmatprep.mubr.msk.bf16.mxu1 %vm4495_vm12, %v4432_v6  ;;  %v1119_v13 = vsel %vm1101_vm13, %v1094_v1, %v738_v48  ;;  %v948_v2 = vsel %vm926_vm3, %v4568_v32, %v545_v5  ;;  %v4572_v5 = vld [vmem:[#allocation63_spill] sm:$0xff] }
 0x211   : > { %v1846_v43 = vrot.slane %v1832_v42, %v3710_v8  ;;  %v1848_v44 = vcombine.low %v1673_v21, %v1672_v63  ;;  %v973_v33 = vsel %vm951_vm4, %v948_v2, %v4570_v39 }
 0x212   : > { %v998_v48 = vsel %vm976_vm5, %v973_v33, %v4572_v5 }
 0x213   : > { %v763_v4 = vpop.permute.xlu1 %762  ;;  %v1856_v15 = vrot.slane %v1848_v44, %v3710_v8  ;;  %v709_v47 = vpop.permute.xlu0 %708  ;;  %v1847_v25 = vcombine.low %v1839_v12, %v1846_v43 }
 0x214   : > { %v1144_v31 = vsel %vm1126_vm14, %v1119_v13, %v763_v4  ;;  %v1096_v9 = vsel %vm4569_vm0, %v1071_v26, %v709_v47 }
 0x215   : > { %2480 = vmatmul.mubr.msk.bf16.gmra.mrb[12].mxu0 %vm1962_vm10, %v1847_v25  ;;  %v1864_v38 = vcombine.low %v1856_v15, %v1863_v49  ;;  %v4574_v15 = vld [vmem:[#allocation70_spill] sm:$0xff] }
 0x216   : > { %2483 = vmatprep.mubr.msk.bf16.mxu0 %vm4495_vm12, %v4432_v6  ;;  %v1023_v47 = vsel %vm1001_vm6, %v998_v48, %v4574_v15 }
 0x217   : > { %v790_v34 = vpop.permute.xlu1 %789  ;;  %v1048_v58 = vsel %vm1026_vm7, %v1023_v47, %v4575_v55 }
 0x218   : > { %v740_v7 = vpop.permute.xlu0 %739  ;;  %v1169_v35 = vsel %vm1151_vm15, %v1144_v31, %v790_v34 }
 0x219   : > { %v1121_v30 = vsel %vm1101_vm13, %v1096_v9, %v740_v7 }
 0x21b   : > { %v815_v20 = vpop.permute.xlu1 %814 }
 0x21c   : > { %v765_v40 = vpop.permute.xlu0 %764  ;;  %v1194_v37 = vsel %vm4565_vm2, %v1169_v35, %v815_v20  ;;  %vm4573_vm2 = vmmov %vm4567_vm8 }
 0x21d   : > { %2484 = vmatmul.mubr.msk.bf16.gmra.mrb[16].mxu0 %vm1962_vm10, %v1864_v38  ;;  %v1146_v11 = vsel %vm1126_vm14, %v1121_v30, %v765_v40 }
 0x21f   : > { %v844_v17 = vpop.permute.xlu1 %843 }
 0x220   : > { %v792_v52 = vpop.permute.xlu0 %791  ;;  %v1219_v18 = vsel %vm1201_vm9, %v1194_v37, %v844_v17 }
 0x221   : > { %v1171_v63 = vsel %vm1151_vm15, %v1146_v11, %v792_v52 }
 0x223   : > { %v1534_v50 = vpop.permute.xlu1 %1533 }
 0x224   : > { %v1559_v24 = vsel %vm4567_vm8, %v1219_v18, %v1534_v50  ;;  %v817_v27 = vpop.permute.xlu0 %816  ;;  %vm4576_vm8 = vmmov %vm4569_vm0 }
 0x225   : > { %v1713_v60 = vrot.slane %v1559_v24, %v3710_v8  ;;  %v1706_v21 = vcombine.high %v1559_v24, %v1559_v24  ;;  %v1196_v42 = vsel %vm4571_vm1, %v1171_v63, %v817_v27 }
 0x227   : > { %v846_v56 = vpop.permute.xlu1 %845  ;;  %v1721_v36 = vcombine.high %v1713_v60, %v1713_v60  ;;  %v1720_v28 = vrot.slane %v1706_v21, %v3710_v8 }
 0x228   : > { %v682_v29 = vpop.permute.xlu0 %681  ;;  %v1221_v12 = vsel %vm1201_vm9, %v1196_v42, %v846_v56 }
 0x229   : > { %v1882_v4 = vcombine.low %v1713_v60, %v1721_v36  ;;  %v1073_v23 = vsel %vm1051_vm11, %v1048_v58, %v682_v29 }
 0x22b   : > { %v1536_v43 = vpop.permute.xlu1 %1535  ;;  %v1890_v34 = vrot.slane %v1882_v4, %v3710_v8 }
 0x22c   : > { %v1561_v44 = vsel %vm4573_vm2, %v1221_v12, %v1536_v43  ;;  %v711_v14 = vpop.permute.xlu0 %710 }
 0x22d   : > { %v1729_v49 = vrot.slane %v1561_v44, %v3710_v8  ;;  %v1098_v54 = vsel %vm4576_vm8, %v1073_v23, %v711_v14  ;;  %v1722_v13 = vcombine.high %v1561_v44, %v1561_v44 }
 0x22f   : > { %v1883_v25 = vcombine.low %v1720_v28, %v1729_v49  ;;  %v547_v10 = vpop.permute.xlu1 %546  ;;  %v1736_v3 = vrot.slane %v1722_v13, %v3710_v8  ;;  %v1737_v35 = vcombine.high %v1729_v49, %v1729_v49 }
 0x230   : > { %v742_v38 = vpop.permute.xlu0 %741  ;;  %v950_v41 = vsel %vm926_vm3, %v3774_v22, %v547_v10  ;;  %vm4577_vm3 = vmmov %vm4571_vm1 }
 0x231   : > { %v1897_v7 = vrot.slane %v1883_v25, %v3710_v8  ;;  %v1123_v40 = vsel %vm1101_vm13, %v1098_v54, %v742_v38  ;;  %v975_v0 = vsel %vm951_vm4, %v950_v41, %v3340_v51  ;;  %vm4578_vm4 = vmmov %vm4573_vm2  ;;  %v1899_v24 = vcombine.low %v1737_v35, %v1736_v3 }
 0x232   : > { %v1000_v31 = vsel %vm976_vm5, %v975_v0, %v3356_v46  ;;  %vm4579_vm5 = vmmov %vm4569_vm0 }
 0x233   : > { %v794_v20 = vpop.permute.xlu1 %793  ;;  %v1898_v57 = vcombine.low %v1890_v34, %v1897_v7  ;;  %v1025_v51 = vsel %vm1001_vm6, %v1000_v31, %v3367_v45  ;;  %v1907_v9 = vrot.slane %v1899_v24, %v3710_v8  ;;  %vm4580_vm6 = vmmov %vm4571_vm1 }
 0x234   : > { %v767_v53 = vpop.permute.xlu0 %766  ;;  %v1050_v61 = vsel %vm1026_vm7, %v1025_v51, %v3376_v62  ;;  %vm4581_vm7 = vmmov %vm4573_vm2 }
 0x235   : > { %v1148_v59 = vsel %vm1126_vm14, %v1123_v40, %v767_v53  ;;  %2492 = vmatmul.mubr.msk.bf16.gmra.mrb[4].mxu1 %vm1962_vm10, %v1898_v57 }
 0x236   : > { %2495 = vmatprep.mubr.msk.bf16.mxu1 %vm4495_vm12, %v4432_v6  ;;  %v1173_v17 = vsel %vm1151_vm15, %v1148_v59, %v794_v20 }
 0x237   : > { %v848_v1 = vpop.permute.xlu1 %847 }
 0x238   : > { %v819_v22 = vpop.permute.xlu0 %818 }
 0x239   : > { %v1198_v52 = vsel %vm4577_vm3, %v1173_v17, %v819_v22 }
 0x23a   : > { %v1223_v37 = vsel %vm1201_vm9, %v1198_v52, %v848_v1 }
 0x23b   : > { %v684_v16 = vpop.permute.xlu1 %683 }
 0x23c   : > { %v1538_v18 = vpop.permute.xlu0 %1537  ;;  %v1075_v27 = vsel %vm1051_vm11, %v1050_v61, %v684_v16  ;;  %vm2168_vm11 = vcmask 261120  }
 0x23d   : > { %v1563_v50 = vsel %vm4578_vm4, %v1223_v37, %v1538_v18 }
 0x23e   : > { %v1745_v19 = vrot.slane %v1563_v50, %v3710_v8  ;;  %v1738_v36 = vcombine.high %v1563_v50, %v1563_v50 }
 0x23f   : > { %v744_v46 = vpop.permute.xlu1 %743 }
 0x240   : > { %v1753_v26 = vcombine.high %v1745_v19, %v1745_v19  ;;  %v713_v32 = vpop.permute.xlu0 %712  ;;  %v1752_v12 = vrot.slane %v1738_v36, %v3710_v8 }
 0x241   : > { %v1100_v2 = vsel %vm4579_vm5, %v1075_v27, %v713_v32 }
 0x242   : > { %v1900_v60 = vcombine.low %v1745_v19, %v1753_v26  ;;  %v1125_v56 = vsel %vm1101_vm13, %v1100_v2, %v744_v46 }
 0x243   : > { %v796_v45 = vpop.permute.xlu1 %795 }
 0x244   : > { %v1914_v30 = vrot.slane %v1900_v60, %v3710_v8  ;;  %v769_v39 = vpop.permute.xlu0 %768 }
 0x245   : > { %v1150_v33 = vsel %vm1126_vm14, %v1125_v56, %v769_v39 }
 0x246   : > { %v1915_v62 = vcombine.low %v1907_v9, %v1914_v30  ;;  %v1175_v11 = vsel %vm1151_vm15, %v1150_v33, %v796_v45 }
 0x247   : > { %v850_v21 = vpop.permute.xlu1 %849 }
 0x248   : > { %2496 = vmatmul.mubr.msk.bf16.gmra.mrb[8].mxu1 %vm1962_vm10, %v1915_v62  ;;  %v821_v29 = vpop.permute.xlu0 %820 }
 0x249   : > { %v1200_v63 = vsel %vm4580_vm6, %v1175_v11, %v821_v29  ;;  %2499 = vmatprep.mubr.msk.bf16.mxu1 %vm4495_vm12, %v4432_v6  ;;  %vm2170_vm12 = vcmask 257024  }
 0x24a   : > { %v1225_v42 = vsel %vm1201_vm9, %v1200_v63, %v850_v21 }
 0x24c   : > { %v1540_v5 = vpop.permute.xlu0 %1539 }
 0x24d   : > { %v1565_v48 = vsel %vm4581_vm7, %v1225_v42, %v1540_v5 }
 0x24e   : > { %v1754_v43 = vcombine.high %v1565_v48, %v1565_v48  ;;  %v1761_v44 = vrot.slane %v1565_v48, %v3710_v8 }
 0x250   : > { %v1768_v14 = vrot.slane %v1754_v43, %v3710_v8  ;;  %v1769_v28 = vcombine.high %v1761_v44, %v1761_v44  ;;  %v1916_v4 = vcombine.low %v1752_v12, %v1761_v44 }
 0x252   : > { %v1917_v49 = vcombine.low %v1769_v28, %v1768_v14  ;;  %v1924_v15 = vrot.slane %v1916_v4, %v3710_v8 }
 0x254   : > { %v1931_v6 = vrot.slane %v1917_v49, %v3710_v8 }
 0x256   : > { %v1932_v47 = vcombine.low %v1924_v15, %v1931_v6 }
 0x258   : > { %2500 = vmatmul.mubr.msk.bf16.gmra.mrb[12].mxu1 %vm1962_vm10, %v1932_v47  ;;  %vm2235_vm10 = vcmask 253952  }
 0x278   : > { %v2031_v25 = vpop.f32.mrb[0].mxu0 }
 0x279   : > { %v2120_v10 = vcombine.high %v2031_v25, %v2031_v25  ;;  %v2469_v38 = vpop.f32.mrb[1].mxu0  ;;  %v2237_v34 = vmul.f32 %v2031_v25, %v2031_v25  ;;  %v2194_v8 = vsel %vm2168_vm11, %v2031_v25, 0.0 }
 0x27a   : > { %v2034_v55 = vpop.f32.mrb[2].mxu0 }
 0x27b   : > { %v2144_v58 = vcombine.low %v2031_v25, %v2120_v10  ;;  %2171 = vst.msk [vmem:[%s4177_s26 + $0x8] sm:$0xf] %vm2170_vm12, %v2034_v55  ;;  %v2195_v7 = vsel %vm2168_vm11, %v2034_v55, 0.0  ;;  %v2470_v23 = vpop.f32.mrb[3].mxu0  ;;  %v2238_v41 = vmul.f32 %v2034_v55, %v2034_v55  ;;  %v2255_v20 = vsel %vm2168_vm11, %v2237_v34, 0.0 }
 0x27c   : > { %v2196_v54 = vadd.f32 %v2195_v7, %v2194_v8  ;;  %v2121_v53 = vcombine.high %v2034_v55, %v2034_v55 }
 0x27d   : > { %2169 = vst.msk [vmem:[%s4177_s26] sm:$0xff] %vm2168_vm11, %v2144_v58  ;;  %v2256_v57 = vsel %vm2168_vm11, %v2238_v41, 0.0 }
 0x27e   : > { %v2257_v40 = vadd.f32 %v2256_v57, %v2255_v20 }
 0x28a   : > { %v2039_v59 = vpop.f32.mrb[4].mxu0 }
 0x28b   : > { %v2122_v0 = vcombine.high %v2039_v59, %v2039_v59  ;;  %v2145_v1 = vcombine.low %v2121_v53, %v2039_v59  ;;  %v2197_v13 = vsel %vm2168_vm11, %v2039_v59, 0.0  ;;  %v2239_v17 = vmul.f32 %v2039_v59, %v2039_v59  ;;  %v2473_v22 = vpop.f32.mrb[5].mxu0 }
 0x28c   : > { %v2198_v31 = vadd.f32 %v2197_v13, %v2196_v54  ;;  %v2042_v52 = vpop.f32.mrb[6].mxu0 }
 0x28d   : > { %2172 = vst.msk [vmem:[%s4177_s26 + $0x10] sm:$0xff] %vm2168_vm11, %v2145_v1  ;;  %v2258_v16 = vsel %vm2168_vm11, %v2239_v17, 0.0  ;;  %v2123_v3 = vcombine.high %v2042_v52, %v2042_v52  ;;  %v2199_v35 = vsel %vm2168_vm11, %v2042_v52, 0.0  ;;  %v2240_v51 = vmul.f32 %v2042_v52, %v2042_v52  ;;  %v2474_v37 = vpop.f32.mrb[7].mxu0 }
 0x28e   : > { %2173 = vst.msk [vmem:[%s4177_s26 + $0x18] sm:$0xf] %vm2170_vm12, %v2122_v0  ;;  %v2259_v18 = vadd.f32 %v2258_v16, %v2257_v40  ;;  %v2200_v50 = vadd.f32 %v2199_v35, %v2198_v31 }
 0x28f   : > { %v2146_v19 = vcombine.low %v2042_v52, %v2123_v3  ;;  %v2260_v61 = vsel %vm2168_vm11, %v2240_v51, 0.0 }
 0x290   : > { %v2261_v46 = vadd.f32 %v2260_v61, %v2259_v18 }
 0x291   : > { %2174 = vst.msk [vmem:[%s4177_s26 + $0x20] sm:$0xff] %vm2168_vm11, %v2146_v19 }
 0x2a2   : > { %v2047_v24 = vpop.f32.mrb[8].mxu0 }
 0x2a3   : > { %v2124_v27 = vcombine.high %v2047_v24, %v2047_v24  ;;  %2175 = vst.msk [vmem:[%s4177_s26 + $0x28] sm:$0xf] %vm2170_vm12, %v2047_v24  ;;  %v2201_v26 = vsel %vm2168_vm11, %v2047_v24, 0.0  ;;  %v2241_v32 = vmul.f32 %v2047_v24, %v2047_v24  ;;  %v2477_v2 = vpop.f32.mrb[9].mxu0 }
 0x2a4   : > { %v2202_v60 = vadd.f32 %v2201_v26, %v2200_v50  ;;  %v2050_v45 = vpop.f32.mrb[10].mxu0 }
 0x2a5   : > { %v2262_v9 = vsel %vm2168_vm11, %v2241_v32, 0.0  ;;  %v2125_v30 = vcombine.high %v2050_v45, %v2050_v45  ;;  %v2147_v56 = vcombine.low %v2124_v27, %v2050_v45  ;;  %v2203_v39 = vsel %vm2168_vm11, %v2050_v45, 0.0  ;;  %v2478_v33 = vpop.f32.mrb[11].mxu0 }
 0x2a6   : > { %v2263_v62 = vadd.f32 %v2262_v9, %v2261_v46  ;;  %v2204_v11 = vadd.f32 %v2203_v39, %v2202_v60  ;;  %v2242_v29 = vmul.f32 %v2050_v45, %v2050_v45 }
 0x2a7   : > { %2176 = vst.msk [vmem:[%s4177_s26 + $0x30] sm:$0xff] %vm2168_vm11, %v2147_v56 }
 0x2a8   : > { %2177 = vst.msk [vmem:[%s4177_s26 + $0x38] sm:$0xf] %vm2170_vm12, %v2125_v30  ;;  %v2264_v63 = vsel %vm2168_vm11, %v2242_v29, 0.0 }
 0x2a9   : > { %v2265_v21 = vadd.f32 %v2264_v63, %v2263_v62 }
 0x2e2   : > { %v2071_v36 = vpop.f32.mrb[0].mxu1 }
 0x2e3   : > { %v2130_v42 = vcombine.high %v2071_v36, %v2071_v36  ;;  %2183 = vst.msk [vmem:[%s4177_s26 + $0x68] sm:$0xf] %vm2170_vm12, %v2071_v36  ;;  %v2489_v5 = vpop.f32.mrb[1].mxu1  ;;  %v2247_v0 = vmul.f32 %v2071_v36, %v2071_v36  ;;  %v2213_v51 = vsel %vm2168_vm11, %v2071_v36, 0.0 }
 0x2e4   : > { %v2074_v48 = vpop.f32.mrb[2].mxu1 }
 0x2e5   : > { %v2131_v12 = vcombine.high %v2074_v48, %v2074_v48  ;;  %v2151_v43 = vcombine.low %v2130_v42, %v2074_v48  ;;  %v2490_v44 = vpop.f32.mrb[3].mxu1  ;;  %v2248_v37 = vmul.f32 %v2074_v48, %v2074_v48  ;;  %v2274_v46 = vsel %vm2168_vm11, %v2247_v0, 0.0 }
 0x2e6   : > { %v2215_v24 = vsel %vm2168_vm11, %v2074_v48, 0.0 }
 0x2e7   : > { %2184 = vst.msk [vmem:[%s4177_s26 + $0x70] sm:$0xff] %vm2168_vm11, %v2151_v43  ;;  %v2276_v32 = vsel %vm2168_vm11, %v2248_v37, 0.0 }
 0x2e8   : > { %2185 = vst.msk [vmem:[%s4177_s26 + $0x78] sm:$0xf] %vm2170_vm12, %v2131_v12  ;;  %v2055_v14 = vpop.f32.mrb[12].mxu0 }
 0x2e9   : > { %v2126_v28 = vcombine.high %v2055_v14, %v2055_v14  ;;  %v2205_v4 = vsel %vm2168_vm11, %v2055_v14, 0.0  ;;  %v2243_v49 = vmul.f32 %v2055_v14, %v2055_v14  ;;  %v2481_v15 = vpop.f32.mrb[13].mxu0 }
 0x2ea   : > { %v2206_v6 = vadd.f32 %v2205_v4, %v2204_v11  ;;  %v2058_v47 = vpop.f32.mrb[14].mxu0 }
 0x2eb   : > { %v2148_v25 = vcombine.low %v2055_v14, %v2126_v28  ;;  %v2266_v10 = vsel %vm2168_vm11, %v2243_v49, 0.0  ;;  %2179 = vst.msk [vmem:[%s4177_s26 + $0x48] sm:$0xf] %vm2170_vm12, %v2058_v47  ;;  %v2207_v38 = vsel %vm2168_vm11, %v2058_v47, 0.0  ;;  %v2482_v34 = vpop.f32.mrb[15].mxu0  ;;  %v2244_v8 = vmul.f32 %v2058_v47, %v2058_v47 }
 0x2ec   : > { %v2267_v55 = vadd.f32 %v2266_v10, %v2265_v21  ;;  %v2208_v58 = vadd.f32 %v2207_v38, %v2206_v6  ;;  %v2127_v23 = vcombine.high %v2058_v47, %v2058_v47 }
 0x2ed   : > { %2178 = vst.msk [vmem:[%s4177_s26 + $0x40] sm:$0xff] %vm2168_vm11, %v2148_v25  ;;  %v2268_v7 = vsel %vm2168_vm11, %v2244_v8, 0.0 }
 0x2ee   : > { %v2269_v54 = vadd.f32 %v2268_v7, %v2267_v55 }
 0x2f0   : > { %v2063_v41 = vpop.f32.mrb[16].mxu0 }
 0x2f1   : > { %v2128_v20 = vcombine.high %v2063_v41, %v2063_v41  ;;  %v2149_v57 = vcombine.low %v2127_v23, %v2063_v41  ;;  %v2209_v40 = vsel %vm2168_vm11, %v2063_v41, 0.0  ;;  %v2245_v53 = vmul.f32 %v2063_v41, %v2063_v41  ;;  %v2485_v59 = vpop.f32.mrb[17].mxu0 }
 0x2f2   : > { %v2210_v1 = vadd.f32 %v2209_v40, %v2208_v58  ;;  %v2066_v13 = vpop.f32.mrb[18].mxu0 }
 0x2f3   : > { %2180 = vst.msk [vmem:[%s4177_s26 + $0x50] sm:$0xff] %vm2168_vm11, %v2149_v57  ;;  %v2270_v17 = vsel %vm2168_vm11, %v2245_v53, 0.0  ;;  %v2129_v22 = vcombine.high %v2066_v13, %v2066_v13  ;;  %v2211_v31 = vsel %vm2168_vm11, %v2066_v13, 0.0  ;;  %v2246_v52 = vmul.f32 %v2066_v13, %v2066_v13  ;;  %v2486_v16 = vpop.f32.mrb[19].mxu0 }
 0x2f4   : > { %2181 = vst.msk [vmem:[%s4177_s26 + $0x58] sm:$0xf] %vm2170_vm12, %v2128_v20  ;;  %v2271_v3 = vadd.f32 %v2270_v17, %v2269_v54  ;;  %v2212_v35 = vadd.f32 %v2211_v31, %v2210_v1 }
 0x2f5   : > { %v2150_v18 = vcombine.low %v2066_v13, %v2129_v22  ;;  %v2272_v50 = vsel %vm2168_vm11, %v2246_v52, 0.0 }
 0x2f6   : > { %v2214_v19 = vadd.f32 %v2213_v51, %v2212_v35  ;;  %v2273_v61 = vadd.f32 %v2272_v50, %v2271_v3 }
 0x2f7   : > { %2182 = vst.msk [vmem:[%s4177_s26 + $0x60] sm:$0xff] %vm2168_vm11, %v2150_v18 }
 0x2f8   : > { %v2275_v27 = vadd.f32 %v2274_v46, %v2273_v61  ;;  %v2216_v26 = vadd.f32 %v2215_v24, %v2214_v19 }
 0x2fa   : > { %v2277_v2 = vadd.f32 %v2276_v32, %v2275_v27 }
 0x308   : > { %v2079_v60 = vpop.f32.mrb[4].mxu1 }
 0x309   : > { %v2132_v45 = vcombine.high %v2079_v60, %v2079_v60  ;;  %v2217_v9 = vsel %vm2168_vm11, %v2079_v60, 0.0  ;;  %v2249_v30 = vmul.f32 %v2079_v60, %v2079_v60  ;;  %v2493_v56 = vpop.f32.mrb[5].mxu1 }
 0x30a   : > { %v2218_v39 = vadd.f32 %v2217_v9, %v2216_v26  ;;  %v2082_v33 = vpop.f32.mrb[6].mxu1 }
 0x30b   : > { %v2152_v62 = vcombine.low %v2079_v60, %v2132_v45  ;;  %v2278_v11 = vsel %vm2168_vm11, %v2249_v30, 0.0  ;;  %2187 = vst.msk [vmem:[%s4177_s26 + $0x88] sm:$0xf] %vm2170_vm12, %v2082_v33  ;;  %v2219_v29 = vsel %vm2168_vm11, %v2082_v33, 0.0  ;;  %v2494_v63 = vpop.f32.mrb[7].mxu1  ;;  %v2250_v42 = vmul.f32 %v2082_v33, %v2082_v33 }
 0x30c   : > { %v2279_v21 = vadd.f32 %v2278_v11, %v2277_v2  ;;  %v2220_v36 = vadd.f32 %v2219_v29, %v2218_v39  ;;  %v2133_v12 = vcombine.high %v2082_v33, %v2082_v33 }
 0x30d   : > { %2186 = vst.msk [vmem:[%s4177_s26 + $0x80] sm:$0xff] %vm2168_vm11, %v2152_v62  ;;  %v2280_v5 = vsel %vm2168_vm11, %v2250_v42, 0.0 }
 0x30e   : > { %v2281_v48 = vadd.f32 %v2280_v5, %v2279_v21 }
 0x31b   : > { %v2087_v43 = vpop.f32.mrb[8].mxu1 }
 0x31c   : > { %v2134_v44 = vcombine.high %v2087_v43, %v2087_v43  ;;  %v2153_v14 = vcombine.low %v2133_v12, %v2087_v43  ;;  %v2221_v28 = vsel %vm2168_vm11, %v2087_v43, 0.0  ;;  %v2251_v4 = vmul.f32 %v2087_v43, %v2087_v43  ;;  %v2497_v49 = vpop.f32.mrb[9].mxu1 }
 0x31d   : > { %v2222_v15 = vadd.f32 %v2221_v28, %v2220_v36  ;;  %v2090_v6 = vpop.f32.mrb[10].mxu1 }
 0x31e   : > { %2188 = vst.msk [vmem:[%s4177_s26 + $0x90] sm:$0xff] %vm2168_vm11, %v2153_v14  ;;  %v2282_v47 = vsel %vm2168_vm11, %v2251_v4, 0.0  ;;  %v2135_v25 = vcombine.high %v2090_v6, %v2090_v6  ;;  %v2223_v10 = vsel %vm2168_vm11, %v2090_v6, 0.0  ;;  %v2252_v38 = vmul.f32 %v2090_v6, %v2090_v6  ;;  %v2498_v34 = vpop.f32.mrb[11].mxu1 }
 0x31f   : > { %2189 = vst.msk [vmem:[%s4177_s26 + $0x98] sm:$0xf] %vm2170_vm12, %v2134_v44  ;;  %v2283_v55 = vadd.f32 %v2282_v47, %v2281_v48  ;;  %v2224_v58 = vadd.f32 %v2223_v10, %v2222_v15 }
 0x320   : > { %v2154_v8 = vcombine.low %v2090_v6, %v2135_v25  ;;  %v2284_v7 = vsel %vm2168_vm11, %v2252_v38, 0.0 }
 0x321   : > { %v2285_v23 = vadd.f32 %v2284_v7, %v2283_v55 }
 0x322   : > { %2190 = vst.msk [vmem:[%s4177_s26 + $0xa0] sm:$0xff] %vm2168_vm11, %v2154_v8 }
 0x32b   : > { %v2095_v54 = vpop.f32.mrb[12].mxu1 }
 0x32c   : > { %v2136_v41 = vcombine.high %v2095_v54, %v2095_v54  ;;  %2191 = vst.msk [vmem:[%s4177_s26 + $0xa8] sm:$0xf] %vm2170_vm12, %v2095_v54  ;;  %v2225_v20 = vsel %vm2168_vm11, %v2095_v54, 0.0  ;;  %v2253_v57 = vmul.f32 %v2095_v54, %v2095_v54  ;;  %v2501_v40 = vpop.f32.mrb[13].mxu1 }
 0x32d   : > { %v2226_v53 = vadd.f32 %v2225_v20, %v2224_v58  ;;  %v2098_v59 = vpop.f32.mrb[14].mxu1 }
 0x32e   : > { %v2286_v0 = vsel %vm2168_vm11, %v2253_v57, 0.0  ;;  %v2137_v1 = vcombine.high %v2098_v59, %v2098_v59  ;;  %v2155_v13 = vcombine.low %v2136_v41, %v2098_v59  ;;  %v2227_v17 = vsel %vm2168_vm11, %v2098_v59, 0.0  ;;  %v2502_v22 = vpop.f32.mrb[15].mxu1 }
 0x32f   : > { %v2287_v31 = vadd.f32 %v2286_v0, %v2285_v23  ;;  %v2228_v52 = vadd.f32 %v2227_v17, %v2226_v53  ;;  %v2254_v16 = vmul.f32 %v2098_v59, %v2098_v59 }
 0x330   : > { %2192 = vst.msk [vmem:[%s4177_s26 + $0xb0] sm:$0xff] %vm2168_vm11, %v2155_v13 }
 0x331   : > { %2193 = vst.msk [vmem:[%s4177_s26 + $0xb8] sm:$0xf] %vm2170_vm12, %v2137_v1  ;;  %v2229_v3 = vrot.slane %v2228_v52, 4  ;;  %v2288_v35 = vsel %vm2168_vm11, %v2254_v16, 0.0 }
 0x332   : > { %v2289_v51 = vadd.f32 %v2288_v35, %v2287_v31 }
 0x333   : > { %v2230_v37 = vadd.f32 %v2229_v3, %v2228_v52 }
 0x334   : > { %v2290_v18 = vrot.slane %v2289_v51, 4 }
 0x335   : > { %v2231_v50 = vrot.slane %v2230_v37, 2 }
 0x336   : > { %v2291_v19 = vadd.f32 %v2290_v18, %v2289_v51 }
 0x337   : > { %v2232_v61 = vadd.f32 %v2231_v50, %v2230_v37 }
 0x338   : > { %v2292_v46 = vrot.slane %v2291_v19, 2 }
 0x339   : > { %v2233_v24 = vrot.slane %v2232_v61, 1 }
 0x33a   : > { %v2293_v27 = vadd.f32 %v2292_v46, %v2291_v19 }
 0x33b   : > { %v2234_v26 = vadd.f32 %v2233_v24, %v2232_v61 }
 0x33c   : > { %v2294_v32 = vrot.slane %v2293_v27, 1 }
 0x33d   : > { %2236 = vst.msk [vmem:[%s211_s29] sm:$0x1] %vm2235_vm10, %v2234_v26 }
 0x33e   : > { %v2295_v2 = vadd.f32 %v2294_v32, %v2293_v27 }
 0x340   : > { %2296 = vst.msk [vmem:[%s214_s6] sm:$0x1] %vm2235_vm10, %v2295_v2 }
 0x341 PF: > { %s15_s15 = sadd.s32 1, %s2582_s15  }
 0x342   : > { %p12_p4 = scmp.ge.s32.totalorder %s15_s15, 4  }
 0x344   :  { %14 = sbr.rel (!%p12_p4) target bundleno = 1 (0x1), region = 82 }

</bundles_post_ra>
